<compile_context>
chip_gen: v5e
topology: v5e:2x2
jax: 0.10.0
libtpu: 0.0.40
codegen_flags: <defaults>
</compile_context>

<pallas_src>
import functools

import jax
import jax.numpy as jnp
from jax.experimental import pallas as pl
from jax.experimental.pallas import tpu as pltpu

NLABEL = 28
BN_EPS = 1e-5

# Static architecture config (ResNet-"10": BasicBlock, layers=(1,1,1,1)).
PLANES = (64, 128, 256, 512)
STRIDES = (1, 2, 2, 2)
LAYERS = (1, 1, 1, 1)


def _round_up(x, m):
    return (x + m - 1) // m * m


# --------------------------------------------------------------------------
# Pallas kernels
# --------------------------------------------------------------------------
def _mm_bn_kernel(a_ref, b_ref, s_ref, c_ref, o_ref, acc_ref, *, relu):
    """Tiled (A @ B) * scale + bias, optional ReLU.  A/B bf16, acc f32."""
    k = pl.program_id(2)

    @pl.when(k == 0)
    def _init():
        acc_ref[...] = jnp.zeros_like(acc_ref)

    acc_ref[...] += jnp.dot(a_ref[...], b_ref[...],
                            preferred_element_type=jnp.float32)

    @pl.when(k == pl.num_programs(2) - 1)
    def _epilogue():
        out = acc_ref[...] * s_ref[...] + c_ref[...]
        if relu:
            out = jnp.maximum(out, 0.0)
        o_ref[...] = out


def _mm_bn_res_kernel(a_ref, b_ref, s_ref, c_ref, r_ref, o_ref, acc_ref, *, relu):
    """Same as above but with a fused residual add in the epilogue."""
    k = pl.program_id(2)

    @pl.when(k == 0)
    def _init():
        acc_ref[...] = jnp.zeros_like(acc_ref)

    acc_ref[...] += jnp.dot(a_ref[...], b_ref[...],
                            preferred_element_type=jnp.float32)

    @pl.when(k == pl.num_programs(2) - 1)
    def _epilogue():
        out = acc_ref[...] * s_ref[...] + c_ref[...] + r_ref[...]
        if relu:
            out = jnp.maximum(out, 0.0)
        o_ref[...] = out


def _maxpool_kernel(p_ref, o_ref):
    # p_ref: (kh*kw, M, C) window-shifted copies -> elementwise max over taps.
    r = p_ref[0]
    for t in range(1, p_ref.shape[0]):
        r = jnp.maximum(r, p_ref[t])
    o_ref[...] = r


def _avgpool_kernel(x_ref, o_ref):
    # x_ref: (H*W, N, C) -> global spatial mean.
    hw = x_ref.shape[0]
    acc = x_ref[0]
    for t in range(1, hw):
        acc = acc + x_ref[t]
    o_ref[...] = acc * (1.0 / hw)


# --------------------------------------------------------------------------
# Pallas wrappers
# --------------------------------------------------------------------------
def matmul_scale_bias(a, b_p, s_p, c_p, residual=None, relu=False):
    """out = relu?((a @ b_p) * s_p + c_p [+ residual]).

    a:        (M, K)  f32/bf16 activation (unpadded)
    b_p:      (Kp, Np) bf16 weight, pre-padded (Kp, Np multiples of 128)
    s_p, c_p: (1, Np) f32 scale / bias, pre-padded
    residual: optional (M, N_logical) f32
    Returns the padded (Mp, Np) f32 result; caller slices to the logical size.
    """
    M, K = a.shape
    Kp, Np = b_p.shape

    # Tile selection: whole dim when small, capped tiles when large.
    Mp = _round_up(M, 8)
    if Mp <= 256:
        tm = Mp
    else:
        tm = 256
        Mp = _round_up(M, 256)
    tn = 256 if Np % 256 == 0 else 128
    tk = 512 if Kp % 512 == 0 else (256 if Kp % 256 == 0 else 128)

    # Only the tiny alignment remainder of the activation is padded.
    a_p = a.astype(jnp.bfloat16)
    if (M, K) != (Mp, Kp):
        a_p = jnp.pad(a_p, ((0, Mp - M), (0, Kp - K)))

    grid = (Mp // tm, Np // tn, Kp // tk)
    a_spec = pl.BlockSpec((tm, tk), lambda i, j, k: (i, k))
    b_spec = pl.BlockSpec((tk, tn), lambda i, j, k: (k, j))
    v_spec = pl.BlockSpec((1, tn), lambda i, j, k: (0, j))
    o_spec = pl.BlockSpec((tm, tn), lambda i, j, k: (i, j))

    out_shape = jax.ShapeDtypeStruct((Mp, Np), jnp.float32)
    scratch = [pltpu.VMEM((tm, tn), jnp.float32)]
    cparams = pltpu.CompilerParams(
        dimension_semantics=("parallel", "parallel", "arbitrary"))

    if residual is None:
        out = pl.pallas_call(
            functools.partial(_mm_bn_kernel, relu=relu),
            out_shape=out_shape,
            grid=grid,
            in_specs=[a_spec, b_spec, v_spec, v_spec],
            out_specs=o_spec,
            scratch_shapes=scratch,
            compiler_params=cparams,
        )(a_p, b_p, s_p, c_p)
    else:
        r = residual.astype(jnp.float32)
        rM, rN = r.shape
        if (rM, rN) != (Mp, Np):
            r = jnp.pad(r, ((0, Mp - rM), (0, Np - rN)))
        out = pl.pallas_call(
            functools.partial(_mm_bn_res_kernel, relu=relu),
            out_shape=out_shape,
            grid=grid,
            in_specs=[a_spec, b_spec, v_spec, v_spec, o_spec],
            out_specs=o_spec,
            scratch_shapes=scratch,
            compiler_params=cparams,
        )(a_p, b_p, s_p, c_p, r)
    return out


def _im2col(x, kh, kw, stride, pad):
    """x: NHWC -> (N*Ho*Wo, kh*kw*C) patches (pure XLA data movement / glue)."""
    N, H, W, C = x.shape
    xp = jnp.pad(x, ((0, 0), (pad, pad), (pad, pad), (0, 0)))
    Ho = (H + 2 * pad - kh) // stride + 1
    Wo = (W + 2 * pad - kw) // stride + 1
    cols = []
    for dy in range(kh):
        for dx in range(kw):
            cols.append(
                xp[:, dy:dy + stride * Ho:stride, dx:dx + stride * Wo:stride, :])
    patches = jnp.stack(cols, axis=3)            # (N, Ho, Wo, kh*kw, C)
    return patches.reshape(N * Ho * Wo, kh * kw * C), Ho, Wo


def conv_bn(x, p, *, kh, kw, stride, pad, cout, relu, residual=None):
    """x: NHWC. p holds pre-packed {'w','scale','bias'}. Fused conv+BN(+res)(+ReLU)."""
    n = x.shape[0]
    patches, Ho, Wo = _im2col(x, kh, kw, stride, pad)
    res = None
    if residual is not None:
        res = residual.reshape(n * Ho * Wo, cout)
    out = matmul_scale_bias(patches, p["w"], p["scale"], p["bias"],
                            residual=res, relu=relu)
    return out[:n * Ho * Wo, :cout].reshape(n, Ho, Wo, cout)


def maxpool2d(x, k=3, stride=2, pad=1):
    """x: NHWC, PyTorch-style max pool (padding never wins the max)."""
    N, H, W, C = x.shape
    xp = jnp.pad(x, ((0, 0), (pad, pad), (pad, pad), (0, 0)),
                 constant_values=-jnp.inf)
    Ho = (H + 2 * pad - k) // stride + 1
    Wo = (W + 2 * pad - k) // stride + 1
    cols = [xp[:, dy:dy + stride * Ho:stride, dx:dx + stride * Wo:stride, :]
            for dy in range(k) for dx in range(k)]
    p = jnp.stack(cols, axis=0).reshape(k * k, N * Ho * Wo, C)
    out = pl.pallas_call(
        _maxpool_kernel,
        out_shape=jax.ShapeDtypeStruct((N * Ho * Wo, C), jnp.float32),
    )(p)
    return out.reshape(N, Ho, Wo, C)


def avgpool_global(x):
    """x: NHWC -> (N, C): AdaptiveAvgPool2d((1,1)) + flatten."""
    N, H, W, C = x.shape
    p = jnp.transpose(x, (1, 2, 0, 3)).reshape(H * W, N, C)
    return pl.pallas_call(
        _avgpool_kernel,
        out_shape=jax.ShapeDtypeStruct((N, C), jnp.float32),
    )(p)


# --------------------------------------------------------------------------
# Parameter construction (deterministic, in-script, pre-packed for the kernels)
# --------------------------------------------------------------------------
def _kaiming_conv(key, cout, cin, kh, kw):
    fan_out = cout * kh * kw
    std = (2.0 / fan_out) ** 0.5
    return jax.random.normal(key, (cout, cin, kh, kw), jnp.float32) * std


def _bn_params(c):
    # gamma=1, beta=0, running_mean=0, running_var=1 (init values), eval mode.
    gamma = jnp.ones((c,), jnp.float32)
    beta = jnp.zeros((c,), jnp.float32)
    mean = jnp.zeros((c,), jnp.float32)
    var = jnp.ones((c,), jnp.float32)
    scale = gamma / jnp.sqrt(var + BN_EPS)
    bias = beta - mean * scale
    return scale, bias


def _conv_bn_param(key, cout, cin, kh, kw):
    """Conv weight in matmul layout + fused BN affine, padded once to (Kp, Np)."""
    w = _kaiming_conv(key, cout, cin, kh, kw)
    scale, bias = _bn_params(cout)
    K = kh * kw * cin
    Kp = _round_up(K, 128)
    Np = _round_up(cout, 128)
    wmat = jnp.transpose(w, (2, 3, 1, 0)).reshape(K, cout)       # matches im2col order
    wmat = jnp.pad(wmat, ((0, Kp - K), (0, Np - cout))).astype(jnp.bfloat16)
    return {
        "w": wmat,
        "scale": jnp.pad(scale, (0, Np - cout)).reshape(1, Np),
        "bias": jnp.pad(bias, (0, Np - cout)).reshape(1, Np),
    }


def make_resnet_params(key, layers=LAYERS, num_classes=NLABEL):
    """BasicBlock ResNet (expansion=1). Only jnp arrays (and None) in the pytree."""
    keys = iter(jax.random.split(key, 64))
    params = {"conv1": _conv_bn_param(next(keys), 64, 4, 7, 7)}

    inplanes = 64
    all_layers = []
    for planes, nblocks, stride0 in zip(PLANES, layers, STRIDES):
        blocks = []
        for bi in range(nblocks):
            stride = stride0 if bi == 0 else 1
            blk = {
                "conv1": _conv_bn_param(next(keys), planes, inplanes, 3, 3),
                "conv2": _conv_bn_param(next(keys), planes, planes, 3, 3),
                "down": (_conv_bn_param(next(keys), planes, inplanes, 1, 1)
                         if (stride != 1 or inplanes != planes) else None),
            }
            blocks.append(blk)
            inplanes = planes
        all_layers.append(blocks)
    params["layers"] = all_layers

    bound = 1.0 / (512 ** 0.5)
    fc_w = jax.random.uniform(next(keys), (num_classes, 512), jnp.float32,
                              -bound, bound)
    fc_b = jax.random.uniform(next(keys), (num_classes,), jnp.float32,
                              -bound, bound)
    Np = _round_up(num_classes, 128)
    params["fc"] = {
        "w": jnp.pad(fc_w.T, ((0, 0), (0, Np - num_classes))).astype(jnp.bfloat16),
        "scale": jnp.pad(jnp.ones((num_classes,), jnp.float32),
                         (0, Np - num_classes)).reshape(1, Np),
        "bias": jnp.pad(fc_b, (0, Np - num_classes)).reshape(1, Np),
    }
    return params


# --------------------------------------------------------------------------
# Forward pass
# --------------------------------------------------------------------------
def _basic_block(x, p, *, stride, planes):
    if p["down"] is not None:
        identity = conv_bn(x, p["down"], kh=1, kw=1, stride=stride, pad=0,
                           cout=planes, relu=False)
    else:
        identity = x
    out = conv_bn(x, p["conv1"], kh=3, kw=3, stride=stride, pad=1,
                  cout=planes, relu=True)
    # conv2 + bn2 + residual add + relu, all fused in one Pallas call.
    out = conv_bn(out, p["conv2"], kh=3, kw=3, stride=1, pad=1,
                  cout=planes, relu=True, residual=identity)
    return out


def resnet_forward(params, x_nchw):
    x = jnp.transpose(x_nchw, (0, 2, 3, 1)).astype(jnp.float32)   # NCHW -> NHWC
    x = conv_bn(x, params["conv1"], kh=7, kw=7, stride=2, pad=3,
                cout=64, relu=True)
    x = maxpool2d(x, k=3, stride=2, pad=1)
    for li, layer in enumerate(params["layers"]):
        planes = PLANES[li]
        for bi, blk in enumerate(layer):
            stride = STRIDES[li] if bi == 0 else 1                # static ints
            x = _basic_block(x, blk, stride=stride, planes=planes)
    feat = avgpool_global(x)                                      # (N, 512)
    # Dropout(p=0.2): eval-mode identity (see TODO at top).
    n = feat.shape[0]
    out = matmul_scale_bias(feat, params["fc"]["w"], params["fc"]["scale"],
                            params["fc"]["bias"], relu=False)
    return out[:n, :NLABEL]                                       # no sigmoid in forward


# --------------------------------------------------------------------------
if __name__ == "__main__":
    key = jax.random.PRNGKey(0)
    pkey, xkey = jax.random.split(key)
    params = make_resnet_params(pkey, layers=LAYERS, num_classes=NLABEL)

    x = jax.random.normal(xkey, (2, 4, 16, 16), jnp.float32)      # NCHW, 4 input channels

    fwd = jax.jit(resnet_forward)
    out = jax.block_until_ready(fwd(params, x))

    assert out.shape == (2, NLABEL), out.shape
    assert bool(jnp.all(jnp.isfinite(out)))
    print("KERNEL_OK")
</pallas_src>

<mosaic_0001>
module attributes {stable_mosaic.version = 11 : i64} {
  func.func @_mm_bn_kernel(%arg0: i32, %arg1: i32, %arg2: i32, %arg3: memref<128x256xbf16, #tpu.memory_space<vmem>>, %arg4: memref<256x128xbf16, #tpu.memory_space<vmem>>, %arg5: memref<1x128xf32, #tpu.memory_space<vmem>>, %arg6: memref<1x128xf32, #tpu.memory_space<vmem>>, %arg7: memref<128x128xf32, #tpu.memory_space<vmem>>, %arg8: memref<128x128xf32, #tpu.memory_space<vmem>>) attributes {dimension_semantics = [#tpu.dimension_semantics<parallel>, #tpu.dimension_semantics<parallel>, #tpu.dimension_semantics<arbitrary>], iteration_bounds = array<i64: 1, 1, 1>, scalar_prefetch = 0 : i64, scratch_operands = 1 : i64, tpu.core_type = #tpu.core_type<tc>, window_params = [{transform_indices = @transform_0, window_bounds = array<i64: 128, 256>}, {transform_indices = @transform_1, window_bounds = array<i64: 256, 128>}, {transform_indices = @transform_2, window_bounds = array<i64: 1, 128>}, {transform_indices = @transform_3, window_bounds = array<i64: 1, 128>}, {transform_indices = @transform_4, window_bounds = array<i64: 128, 128>}]} {
    %c0_i32 = arith.constant 0 : i32
    %0 = arith.cmpi eq, %arg2, %c0_i32 : i32
    %1 = arith.extui %0 : i1 to i32
    %c0_i32_0 = arith.constant 0 : i32
    %2 = arith.cmpi ne, %1, %c0_i32_0 : i32
    scf.if %2 {
      %cst_10 = arith.constant 0.000000e+00 : f32
      %12 = vector.broadcast %cst_10 : f32 to vector<128x128xf32>
      %c0_11 = arith.constant 0 : index
      %c0_12 = arith.constant 0 : index
      %13 = vector.load %arg8[%c0_11, %c0_12] : memref<128x128xf32, #tpu.memory_space<vmem>>, vector<128x128xf32>
      tpu.vector_store %arg8[%c0_11, %c0_12], %12 {strides = array<i32>} : memref<128x128xf32, #tpu.memory_space<vmem>>, vector<128x128xf32>,
    } else {
    }
    %c0 = arith.constant 0 : index
    %c0_1 = arith.constant 0 : index
    %3 = vector.load %arg8[%c0, %c0_1] : memref<128x128xf32, #tpu.memory_space<vmem>>, vector<128x128xf32>
    %c0_2 = arith.constant 0 : index
    %c0_3 = arith.constant 0 : index
    %4 = vector.load %arg3[%c0_2, %c0_3] : memref<128x256xbf16, #tpu.memory_space<vmem>>, vector<128x256xbf16>
    %c0_4 = arith.constant 0 : index
    %c0_5 = arith.constant 0 : index
    %5 = vector.load %arg4[%c0_4, %c0_5] : memref<256x128xbf16, #tpu.memory_space<vmem>>, vector<256x128xbf16>
    %cst = arith.constant dense<0.000000e+00> : vector<128x128xf32>
    %6 = tpu.matmul %4, %5, %cst {dimension_numbers = #tpu.dot_dimension_numbers<[1], [0], [0], [1], [0, 0, 1, 1], [], []>} : vector<128x256xbf16>, vector<256x128xbf16>, vector<128x128xf32> -> vector<128x128xf32>
    %7 = arith.addf %3, %6 : vector<128x128xf32>
    %c0_6 = arith.constant 0 : index
    %c0_7 = arith.constant 0 : index
    %8 = vector.load %arg8[%c0_6, %c0_7] : memref<128x128xf32, #tpu.memory_space<vmem>>, vector<128x128xf32>
    tpu.vector_store %arg8[%c0_6, %c0_7], %7 {strides = array<i32>} : memref<128x128xf32, #tpu.memory_space<vmem>>, vector<128x128xf32>,
    %c0_i32_8 = arith.constant 0 : i32
    %9 = arith.cmpi eq, %arg2, %c0_i32_8 : i32
    %10 = arith.extui %9 : i1 to i32
    %c0_i32_9 = arith.constant 0 : i32
    %11 = arith.cmpi ne, %10, %c0_i32_9 : i32
    scf.if %11 {
      %c0_10 = arith.constant 0 : index
      %c0_11 = arith.constant 0 : index
      %12 = vector.load %arg8[%c0_10, %c0_11] : memref<128x128xf32, #tpu.memory_space<vmem>>, vector<128x128xf32>
      %c0_12 = arith.constant 0 : index
      %c0_13 = arith.constant 0 : index
      %13 = vector.load %arg5[%c0_12, %c0_13] : memref<1x128xf32, #tpu.memory_space<vmem>>, vector<1x128xf32>
      %14 = vector.broadcast %13 : vector<1x128xf32> to vector<128x128xf32>
      %15 = arith.mulf %12, %14 : vector<128x128xf32>
      %c0_14 = arith.constant 0 : index
      %c0_15 = arith.constant 0 : index
      %16 = vector.load %arg6[%c0_14, %c0_15] : memref<1x128xf32, #tpu.memory_space<vmem>>, vector<1x128xf32>
      %17 = vector.broadcast %16 : vector<1x128xf32> to vector<128x128xf32>
      %18 = arith.addf %15, %17 : vector<128x128xf32>
      %cst_16 = arith.constant 0.000000e+00 : f32
      %19 = vector.broadcast %cst_16 : f32 to vector<128x128xf32>
      %20 = arith.maximumf %18, %19 : vector<128x128xf32>
      %c0_17 = arith.constant 0 : index
      %c0_18 = arith.constant 0 : index
      %21 = vector.load %arg7[%c0_17, %c0_18] : memref<128x128xf32, #tpu.memory_space<vmem>>, vector<128x128xf32>
      tpu.vector_store %arg7[%c0_17, %c0_18], %20 {strides = array<i32>} : memref<128x128xf32, #tpu.memory_space<vmem>>, vector<128x128xf32>,
    } else {
    }
    return
  }
  func.func @transform_0(%arg0: i32, %arg1: i32, %arg2: i32) -> (i32, i32) {
    %c0_i32 = arith.constant 0 : i32
    return %arg0, %arg2 : i32, i32
  }
  func.func @transform_1(%arg0: i32, %arg1: i32, %arg2: i32) -> (i32, i32) {
    %c0_i32 = arith.constant 0 : i32
    return %arg2, %arg1 : i32, i32
  }
  func.func @transform_2(%arg0: i32, %arg1: i32, %arg2: i32) -> (i32, i32) {
    %c0_i32 = arith.constant 0 : i32
    %c0_i32_0 = arith.constant 0 : i32
    return %c0_i32, %arg1 : i32, i32
  }
  func.func @transform_3(%arg0: i32, %arg1: i32, %arg2: i32) -> (i32, i32) {
    %c0_i32 = arith.constant 0 : i32
    %c0_i32_0 = arith.constant 0 : i32
    return %c0_i32, %arg1 : i32, i32
  }
  func.func @transform_4(%arg0: i32, %arg1: i32, %arg2: i32) -> (i32, i32) {
    %c0_i32 = arith.constant 0 : i32
    return %arg0, %arg1 : i32, i32
  }
}

module attributes {stable_mosaic.version = 11 : i64} {
  func.func @_maxpool_kernel(%arg0: memref<9x32x64xf32, #tpu.memory_space<vmem>>, %arg1: memref<32x64xf32, #tpu.memory_space<vmem>>) attributes {dimension_semantics = [], scalar_prefetch = 0 : i64, scratch_operands = 0 : i64, tpu.core_type = #tpu.core_type<tc>} {
    %c0 = arith.constant 0 : index
    %c0_0 = arith.constant 0 : index
    %c0_1 = arith.constant 0 : index
    %0 = vector.load %arg0[%c0, %c0_0, %c0_1] : memref<9x32x64xf32, #tpu.memory_space<vmem>>, vector<1x32x64xf32>
    %1 = vector.shape_cast %0 : vector<1x32x64xf32> to vector<32x64xf32>
    %c1 = arith.constant 1 : index
    %c0_2 = arith.constant 0 : index
    %c0_3 = arith.constant 0 : index
    %2 = vector.load %arg0[%c1, %c0_2, %c0_3] : memref<9x32x64xf32, #tpu.memory_space<vmem>>, vector<1x32x64xf32>
    %3 = vector.shape_cast %2 : vector<1x32x64xf32> to vector<32x64xf32>
    %4 = arith.maximumf %1, %3 : vector<32x64xf32>
    %c2 = arith.constant 2 : index
    %c0_4 = arith.constant 0 : index
    %c0_5 = arith.constant 0 : index
    %5 = vector.load %arg0[%c2, %c0_4, %c0_5] : memref<9x32x64xf32, #tpu.memory_space<vmem>>, vector<1x32x64xf32>
    %6 = vector.shape_cast %5 : vector<1x32x64xf32> to vector<32x64xf32>
    %7 = arith.maximumf %4, %6 : vector<32x64xf32>
    %c3 = arith.constant 3 : index
    %c0_6 = arith.constant 0 : index
    %c0_7 = arith.constant 0 : index
    %8 = vector.load %arg0[%c3, %c0_6, %c0_7] : memref<9x32x64xf32, #tpu.memory_space<vmem>>, vector<1x32x64xf32>
    %9 = vector.shape_cast %8 : vector<1x32x64xf32> to vector<32x64xf32>
    %10 = arith.maximumf %7, %9 : vector<32x64xf32>
    %c4 = arith.constant 4 : index
    %c0_8 = arith.constant 0 : index
    %c0_9 = arith.constant 0 : index
    %11 = vector.load %arg0[%c4, %c0_8, %c0_9] : memref<9x32x64xf32, #tpu.memory_space<vmem>>, vector<1x32x64xf32>
    %12 = vector.shape_cast %11 : vector<1x32x64xf32> to vector<32x64xf32>
    %13 = arith.maximumf %10, %12 : vector<32x64xf32>
    %c5 = arith.constant 5 : index
    %c0_10 = arith.constant 0 : index
    %c0_11 = arith.constant 0 : index
    %14 = vector.load %arg0[%c5, %c0_10, %c0_11] : memref<9x32x64xf32, #tpu.memory_space<vmem>>, vector<1x32x64xf32>
    %15 = vector.shape_cast %14 : vector<1x32x64xf32> to vector<32x64xf32>
    %16 = arith.maximumf %13, %15 : vector<32x64xf32>
    %c6 = arith.constant 6 : index
    %c0_12 = arith.constant 0 : index
    %c0_13 = arith.constant 0 : index
    %17 = vector.load %arg0[%c6, %c0_12, %c0_13] : memref<9x32x64xf32, #tpu.memory_space<vmem>>, vector<1x32x64xf32>
    %18 = vector.shape_cast %17 : vector<1x32x64xf32> to vector<32x64xf32>
    %19 = arith.maximumf %16, %18 : vector<32x64xf32>
    %c7 = arith.constant 7 : index
    %c0_14 = arith.constant 0 : index
    %c0_15 = arith.constant 0 : index
    %20 = vector.load %arg0[%c7, %c0_14, %c0_15] : memref<9x32x64xf32, #tpu.memory_space<vmem>>, vector<1x32x64xf32>
    %21 = vector.shape_cast %20 : vector<1x32x64xf32> to vector<32x64xf32>
    %22 = arith.maximumf %19, %21 : vector<32x64xf32>
    %c8 = arith.constant 8 : index
    %c0_16 = arith.constant 0 : index
    %c0_17 = arith.constant 0 : index
    %23 = vector.load %arg0[%c8, %c0_16, %c0_17] : memref<9x32x64xf32, #tpu.memory_space<vmem>>, vector<1x32x64xf32>
    %24 = vector.shape_cast %23 : vector<1x32x64xf32> to vector<32x64xf32>
    %25 = arith.maximumf %22, %24 : vector<32x64xf32>
    %c0_18 = arith.constant 0 : index
    %c0_19 = arith.constant 0 : index
    %26 = vector.load %arg1[%c0_18, %c0_19] : memref<32x64xf32, #tpu.memory_space<vmem>>, vector<32x64xf32>
    tpu.vector_store %arg1[%c0_18, %c0_19], %25 {strides = array<i32>} : memref<32x64xf32, #tpu.memory_space<vmem>>, vector<32x64xf32>,
    return
  }
}

module attributes {stable_mosaic.version = 11 : i64} {
  func.func @_mm_bn_kernel(%arg0: i32, %arg1: i32, %arg2: i32, %arg3: memref<32x128xbf16, #tpu.memory_space<vmem>>, %arg4: memref<128x128xbf16, #tpu.memory_space<vmem>>, %arg5: memref<1x128xf32, #tpu.memory_space<vmem>>, %arg6: memref<1x128xf32, #tpu.memory_space<vmem>>, %arg7: memref<32x128xf32, #tpu.memory_space<vmem>>, %arg8: memref<32x128xf32, #tpu.memory_space<vmem>>) attributes {dimension_semantics = [#tpu.dimension_semantics<parallel>, #tpu.dimension_semantics<parallel>, #tpu.dimension_semantics<arbitrary>], iteration_bounds = array<i64: 1, 1, 5>, scalar_prefetch = 0 : i64, scratch_operands = 1 : i64, tpu.core_type = #tpu.core_type<tc>, window_params = [{transform_indices = @transform_0, window_bounds = array<i64: 32, 128>}, {transform_indices = @transform_1, window_bounds = array<i64: 128, 128>}, {transform_indices = @transform_2, window_bounds = array<i64: 1, 128>}, {transform_indices = @transform_3, window_bounds = array<i64: 1, 128>}, {transform_indices = @transform_4, window_bounds = array<i64: 32, 128>}]} {
    %c0_i32 = arith.constant 0 : i32
    %0 = arith.cmpi eq, %arg2, %c0_i32 : i32
    %1 = arith.extui %0 : i1 to i32
    %c0_i32_0 = arith.constant 0 : i32
    %2 = arith.cmpi ne, %1, %c0_i32_0 : i32
    scf.if %2 {
      %cst_9 = arith.constant 0.000000e+00 : f32
      %12 = vector.broadcast %cst_9 : f32 to vector<32x128xf32>
      %c0_10 = arith.constant 0 : index
      %c0_11 = arith.constant 0 : index
      %13 = vector.load %arg8[%c0_10, %c0_11] : memref<32x128xf32, #tpu.memory_space<vmem>>, vector<32x128xf32>
      tpu.vector_store %arg8[%c0_10, %c0_11], %12 {strides = array<i32>} : memref<32x128xf32, #tpu.memory_space<vmem>>, vector<32x128xf32>,
    } else {
    }
    %c0 = arith.constant 0 : index
    %c0_1 = arith.constant 0 : index
    %3 = vector.load %arg8[%c0, %c0_1] : memref<32x128xf32, #tpu.memory_space<vmem>>, vector<32x128xf32>
    %c0_2 = arith.constant 0 : index
    %c0_3 = arith.constant 0 : index
    %4 = vector.load %arg3[%c0_2, %c0_3] : memref<32x128xbf16, #tpu.memory_space<vmem>>, vector<32x128xbf16>
    %c0_4 = arith.constant 0 : index
    %c0_5 = arith.constant 0 : index
    %5 = vector.load %arg4[%c0_4, %c0_5] : memref<128x128xbf16, #tpu.memory_space<vmem>>, vector<128x128xbf16>
    %cst = arith.constant dense<0.000000e+00> : vector<32x128xf32>
    %6 = tpu.matmul %4, %5, %cst {dimension_numbers = #tpu.dot_dimension_numbers<[1], [0], [0], [1], [0, 0, 1, 1], [], []>} : vector<32x128xbf16>, vector<128x128xbf16>, vector<32x128xf32> -> vector<32x128xf32>
    %7 = arith.addf %3, %6 : vector<32x128xf32>
    %c0_6 = arith.constant 0 : index
    %c0_7 = arith.constant 0 : index
    %8 = vector.load %arg8[%c0_6, %c0_7] : memref<32x128xf32, #tpu.memory_space<vmem>>, vector<32x128xf32>
    tpu.vector_store %arg8[%c0_6, %c0_7], %7 {strides = array<i32>} : memref<32x128xf32, #tpu.memory_space<vmem>>, vector<32x128xf32>,
    %c4_i32 = arith.constant 4 : i32
    %9 = arith.cmpi eq, %arg2, %c4_i32 : i32
    %10 = arith.extui %9 : i1 to i32
    %c0_i32_8 = arith.constant 0 : i32
    %11 = arith.cmpi ne, %10, %c0_i32_8 : i32
    scf.if %11 {
      %c0_9 = arith.constant 0 : index
      %c0_10 = arith.constant 0 : index
      %12 = vector.load %arg8[%c0_9, %c0_10] : memref<32x128xf32, #tpu.memory_space<vmem>>, vector<32x128xf32>
      %c0_11 = arith.constant 0 : index
      %c0_12 = arith.constant 0 : index
      %13 = vector.load %arg5[%c0_11, %c0_12] : memref<1x128xf32, #tpu.memory_space<vmem>>, vector<1x128xf32>
      %14 = vector.broadcast %13 : vector<1x128xf32> to vector<32x128xf32>
      %15 = arith.mulf %12, %14 : vector<32x128xf32>
      %c0_13 = arith.constant 0 : index
      %c0_14 = arith.constant 0 : index
      %16 = vector.load %arg6[%c0_13, %c0_14] : memref<1x128xf32, #tpu.memory_space<vmem>>, vector<1x128xf32>
      %17 = vector.broadcast %16 : vector<1x128xf32> to vector<32x128xf32>
      %18 = arith.addf %15, %17 : vector<32x128xf32>
      %cst_15 = arith.constant 0.000000e+00 : f32
      %19 = vector.broadcast %cst_15 : f32 to vector<32x128xf32>
      %20 = arith.maximumf %18, %19 : vector<32x128xf32>
      %c0_16 = arith.constant 0 : index
      %c0_17 = arith.constant 0 : index
      %21 = vector.load %arg7[%c0_16, %c0_17] : memref<32x128xf32, #tpu.memory_space<vmem>>, vector<32x128xf32>
      tpu.vector_store %arg7[%c0_16, %c0_17], %20 {strides = array<i32>} : memref<32x128xf32, #tpu.memory_space<vmem>>, vector<32x128xf32>,
    } else {
    }
    return
  }
  func.func @transform_0(%arg0: i32, %arg1: i32, %arg2: i32) -> (i32, i32) {
    %c0_i32 = arith.constant 0 : i32
    return %arg0, %arg2 : i32, i32
  }
  func.func @transform_1(%arg0: i32, %arg1: i32, %arg2: i32) -> (i32, i32) {
    %c0_i32 = arith.constant 0 : i32
    return %arg2, %arg1 : i32, i32
  }
  func.func @transform_2(%arg0: i32, %arg1: i32, %arg2: i32) -> (i32, i32) {
    %c0_i32 = arith.constant 0 : i32
    %c0_i32_0 = arith.constant 0 : i32
    return %c0_i32, %arg1 : i32, i32
  }
  func.func @transform_3(%arg0: i32, %arg1: i32, %arg2: i32) -> (i32, i32) {
    %c0_i32 = arith.constant 0 : i32
    %c0_i32_0 = arith.constant 0 : i32
    return %c0_i32, %arg1 : i32, i32
  }
  func.func @transform_4(%arg0: i32, %arg1: i32, %arg2: i32) -> (i32, i32) {
    %c0_i32 = arith.constant 0 : i32
    return %arg0, %arg1 : i32, i32
  }
}

module attributes {stable_mosaic.version = 11 : i64} {
  func.func @_mm_bn_res_kernel(%arg0: i32, %arg1: i32, %arg2: i32, %arg3: memref<32x128xbf16, #tpu.memory_space<vmem>>, %arg4: memref<128x128xbf16, #tpu.memory_space<vmem>>, %arg5: memref<1x128xf32, #tpu.memory_space<vmem>>, %arg6: memref<1x128xf32, #tpu.memory_space<vmem>>, %arg7: memref<32x128xf32, #tpu.memory_space<vmem>>, %arg8: memref<32x128xf32, #tpu.memory_space<vmem>>, %arg9: memref<32x128xf32, #tpu.memory_space<vmem>>) attributes {dimension_semantics = [#tpu.dimension_semantics<parallel>, #tpu.dimension_semantics<parallel>, #tpu.dimension_semantics<arbitrary>], iteration_bounds = array<i64: 1, 1, 5>, scalar_prefetch = 0 : i64, scratch_operands = 1 : i64, tpu.core_type = #tpu.core_type<tc>, window_params = [{transform_indices = @transform_0, window_bounds = array<i64: 32, 128>}, {transform_indices = @transform_1, window_bounds = array<i64: 128, 128>}, {transform_indices = @transform_2, window_bounds = array<i64: 1, 128>}, {transform_indices = @transform_3, window_bounds = array<i64: 1, 128>}, {transform_indices = @transform_4, window_bounds = array<i64: 32, 128>}, {transform_indices = @transform_5, window_bounds = array<i64: 32, 128>}]} {
    %c0_i32 = arith.constant 0 : i32
    %0 = arith.cmpi eq, %arg2, %c0_i32 : i32
    %1 = arith.extui %0 : i1 to i32
    %c0_i32_0 = arith.constant 0 : i32
    %2 = arith.cmpi ne, %1, %c0_i32_0 : i32
    scf.if %2 {
      %cst_9 = arith.constant 0.000000e+00 : f32
      %12 = vector.broadcast %cst_9 : f32 to vector<32x128xf32>
      %c0_10 = arith.constant 0 : index
      %c0_11 = arith.constant 0 : index
      %13 = vector.load %arg9[%c0_10, %c0_11] : memref<32x128xf32, #tpu.memory_space<vmem>>, vector<32x128xf32>
      tpu.vector_store %arg9[%c0_10, %c0_11], %12 {strides = array<i32>} : memref<32x128xf32, #tpu.memory_space<vmem>>, vector<32x128xf32>,
    } else {
    }
    %c0 = arith.constant 0 : index
    %c0_1 = arith.constant 0 : index
    %3 = vector.load %arg9[%c0, %c0_1] : memref<32x128xf32, #tpu.memory_space<vmem>>, vector<32x128xf32>
    %c0_2 = arith.constant 0 : index
    %c0_3 = arith.constant 0 : index
    %4 = vector.load %arg3[%c0_2, %c0_3] : memref<32x128xbf16, #tpu.memory_space<vmem>>, vector<32x128xbf16>
    %c0_4 = arith.constant 0 : index
    %c0_5 = arith.constant 0 : index
    %5 = vector.load %arg4[%c0_4, %c0_5] : memref<128x128xbf16, #tpu.memory_space<vmem>>, vector<128x128xbf16>
    %cst = arith.constant dense<0.000000e+00> : vector<32x128xf32>
    %6 = tpu.matmul %4, %5, %cst {dimension_numbers = #tpu.dot_dimension_numbers<[1], [0], [0], [1], [0, 0, 1, 1], [], []>} : vector<32x128xbf16>, vector<128x128xbf16>, vector<32x128xf32> -> vector<32x128xf32>
    %7 = arith.addf %3, %6 : vector<32x128xf32>
    %c0_6 = arith.constant 0 : index
    %c0_7 = arith.constant 0 : index
    %8 = vector.load %arg9[%c0_6, %c0_7] : memref<32x128xf32, #tpu.memory_space<vmem>>, vector<32x128xf32>
    tpu.vector_store %arg9[%c0_6, %c0_7], %7 {strides = array<i32>} : memref<32x128xf32, #tpu.memory_space<vmem>>, vector<32x128xf32>,
    %c4_i32 = arith.constant 4 : i32
    %9 = arith.cmpi eq, %arg2, %c4_i32 : i32
    %10 = arith.extui %9 : i1 to i32
    %c0_i32_8 = arith.constant 0 : i32
    %11 = arith.cmpi ne, %10, %c0_i32_8 : i32
    scf.if %11 {
      %c0_9 = arith.constant 0 : index
      %c0_10 = arith.constant 0 : index
      %12 = vector.load %arg9[%c0_9, %c0_10] : memref<32x128xf32, #tpu.memory_space<vmem>>, vector<32x128xf32>
      %c0_11 = arith.constant 0 : index
      %c0_12 = arith.constant 0 : index
      %13 = vector.load %arg5[%c0_11, %c0_12] : memref<1x128xf32, #tpu.memory_space<vmem>>, vector<1x128xf32>
      %14 = vector.broadcast %13 : vector<1x128xf32> to vector<32x128xf32>
      %15 = arith.mulf %12, %14 : vector<32x128xf32>
      %c0_13 = arith.constant 0 : index
      %c0_14 = arith.constant 0 : index
      %16 = vector.load %arg6[%c0_13, %c0_14] : memref<1x128xf32, #tpu.memory_space<vmem>>, vector<1x128xf32>
      %17 = vector.broadcast %16 : vector<1x128xf32> to vector<32x128xf32>
      %18 = arith.addf %15, %17 : vector<32x128xf32>
      %c0_15 = arith.constant 0 : index
      %c0_16 = arith.constant 0 : index
      %19 = vector.load %arg7[%c0_15, %c0_16] : memref<32x128xf32, #tpu.memory_space<vmem>>, vector<32x128xf32>
      %20 = arith.addf %18, %19 : vector<32x128xf32>
      %cst_17 = arith.constant 0.000000e+00 : f32
      %21 = vector.broadcast %cst_17 : f32 to vector<32x128xf32>
      %22 = arith.maximumf %20, %21 : vector<32x128xf32>
      %c0_18 = arith.constant 0 : index
      %c0_19 = arith.constant 0 : index
      %23 = vector.load %arg8[%c0_18, %c0_19] : memref<32x128xf32, #tpu.memory_space<vmem>>, vector<32x128xf32>
      tpu.vector_store %arg8[%c0_18, %c0_19], %22 {strides = array<i32>} : memref<32x128xf32, #tpu.memory_space<vmem>>, vector<32x128xf32>,
    } else {
    }
    return
  }
  func.func @transform_0(%arg0: i32, %arg1: i32, %arg2: i32) -> (i32, i32) {
    %c0_i32 = arith.constant 0 : i32
    return %arg0, %arg2 : i32, i32
  }
  func.func @transform_1(%arg0: i32, %arg1: i32, %arg2: i32) -> (i32, i32) {
    %c0_i32 = arith.constant 0 : i32
    return %arg2, %arg1 : i32, i32
  }
  func.func @transform_2(%arg0: i32, %arg1: i32, %arg2: i32) -> (i32, i32) {
    %c0_i32 = arith.constant 0 : i32
    %c0_i32_0 = arith.constant 0 : i32
    return %c0_i32, %arg1 : i32, i32
  }
  func.func @transform_3(%arg0: i32, %arg1: i32, %arg2: i32) -> (i32, i32) {
    %c0_i32 = arith.constant 0 : i32
    %c0_i32_0 = arith.constant 0 : i32
    return %c0_i32, %arg1 : i32, i32
  }
  func.func @transform_4(%arg0: i32, %arg1: i32, %arg2: i32) -> (i32, i32) {
    %c0_i32 = arith.constant 0 : i32
    return %arg0, %arg1 : i32, i32
  }
  func.func @transform_5(%arg0: i32, %arg1: i32, %arg2: i32) -> (i32, i32) {
    %c0_i32 = arith.constant 0 : i32
    return %arg0, %arg1 : i32, i32
  }
}

module attributes {stable_mosaic.version = 11 : i64} {
  func.func @_mm_bn_kernel(%arg0: i32, %arg1: i32, %arg2: i32, %arg3: memref<8x128xbf16, #tpu.memory_space<vmem>>, %arg4: memref<128x128xbf16, #tpu.memory_space<vmem>>, %arg5: memref<1x128xf32, #tpu.memory_space<vmem>>, %arg6: memref<1x128xf32, #tpu.memory_space<vmem>>, %arg7: memref<8x128xf32, #tpu.memory_space<vmem>>, %arg8: memref<8x128xf32, #tpu.memory_space<vmem>>) attributes {dimension_semantics = [#tpu.dimension_semantics<parallel>, #tpu.dimension_semantics<parallel>, #tpu.dimension_semantics<arbitrary>], iteration_bounds = array<i64: 1, 1, 5>, scalar_prefetch = 0 : i64, scratch_operands = 1 : i64, tpu.core_type = #tpu.core_type<tc>, window_params = [{transform_indices = @transform_0, window_bounds = array<i64: 8, 128>}, {transform_indices = @transform_1, window_bounds = array<i64: 128, 128>}, {transform_indices = @transform_2, window_bounds = array<i64: 1, 128>}, {transform_indices = @transform_3, window_bounds = array<i64: 1, 128>}, {transform_indices = @transform_4, window_bounds = array<i64: 8, 128>}]} {
    %c0_i32 = arith.constant 0 : i32
    %0 = arith.cmpi eq, %arg2, %c0_i32 : i32
    %1 = arith.extui %0 : i1 to i32
    %c0_i32_0 = arith.constant 0 : i32
    %2 = arith.cmpi ne, %1, %c0_i32_0 : i32
    scf.if %2 {
      %cst_9 = arith.constant 0.000000e+00 : f32
      %12 = vector.broadcast %cst_9 : f32 to vector<8x128xf32>
      %c0_10 = arith.constant 0 : index
      %c0_11 = arith.constant 0 : index
      %13 = vector.load %arg8[%c0_10, %c0_11] : memref<8x128xf32, #tpu.memory_space<vmem>>, vector<8x128xf32>
      tpu.vector_store %arg8[%c0_10, %c0_11], %12 {strides = array<i32>} : memref<8x128xf32, #tpu.memory_space<vmem>>, vector<8x128xf32>,
    } else {
    }
    %c0 = arith.constant 0 : index
    %c0_1 = arith.constant 0 : index
    %3 = vector.load %arg8[%c0, %c0_1] : memref<8x128xf32, #tpu.memory_space<vmem>>, vector<8x128xf32>
    %c0_2 = arith.constant 0 : index
    %c0_3 = arith.constant 0 : index
    %4 = vector.load %arg3[%c0_2, %c0_3] : memref<8x128xbf16, #tpu.memory_space<vmem>>, vector<8x128xbf16>
    %c0_4 = arith.constant 0 : index
    %c0_5 = arith.constant 0 : index
    %5 = vector.load %arg4[%c0_4, %c0_5] : memref<128x128xbf16, #tpu.memory_space<vmem>>, vector<128x128xbf16>
    %cst = arith.constant dense<0.000000e+00> : vector<8x128xf32>
    %6 = tpu.matmul %4, %5, %cst {dimension_numbers = #tpu.dot_dimension_numbers<[1], [0], [0], [1], [0, 0, 1, 1], [], []>} : vector<8x128xbf16>, vector<128x128xbf16>, vector<8x128xf32> -> vector<8x128xf32>
    %7 = arith.addf %3, %6 : vector<8x128xf32>
    %c0_6 = arith.constant 0 : index
    %c0_7 = arith.constant 0 : index
    %8 = vector.load %arg8[%c0_6, %c0_7] : memref<8x128xf32, #tpu.memory_space<vmem>>, vector<8x128xf32>
    tpu.vector_store %arg8[%c0_6, %c0_7], %7 {strides = array<i32>} : memref<8x128xf32, #tpu.memory_space<vmem>>, vector<8x128xf32>,
    %c4_i32 = arith.constant 4 : i32
    %9 = arith.cmpi eq, %arg2, %c4_i32 : i32
    %10 = arith.extui %9 : i1 to i32
    %c0_i32_8 = arith.constant 0 : i32
    %11 = arith.cmpi ne, %10, %c0_i32_8 : i32
    scf.if %11 {
      %c0_9 = arith.constant 0 : index
      %c0_10 = arith.constant 0 : index
      %12 = vector.load %arg8[%c0_9, %c0_10] : memref<8x128xf32, #tpu.memory_space<vmem>>, vector<8x128xf32>
      %c0_11 = arith.constant 0 : index
      %c0_12 = arith.constant 0 : index
      %13 = vector.load %arg5[%c0_11, %c0_12] : memref<1x128xf32, #tpu.memory_space<vmem>>, vector<1x128xf32>
      %14 = vector.broadcast %13 : vector<1x128xf32> to vector<8x128xf32>
      %15 = arith.mulf %12, %14 : vector<8x128xf32>
      %c0_13 = arith.constant 0 : index
      %c0_14 = arith.constant 0 : index
      %16 = vector.load %arg6[%c0_13, %c0_14] : memref<1x128xf32, #tpu.memory_space<vmem>>, vector<1x128xf32>
      %17 = vector.broadcast %16 : vector<1x128xf32> to vector<8x128xf32>
      %18 = arith.addf %15, %17 : vector<8x128xf32>
      %cst_15 = arith.constant 0.000000e+00 : f32
      %19 = vector.broadcast %cst_15 : f32 to vector<8x128xf32>
      %20 = arith.maximumf %18, %19 : vector<8x128xf32>
      %c0_16 = arith.constant 0 : index
      %c0_17 = arith.constant 0 : index
      %21 = vector.load %arg7[%c0_16, %c0_17] : memref<8x128xf32, #tpu.memory_space<vmem>>, vector<8x128xf32>
      tpu.vector_store %arg7[%c0_16, %c0_17], %20 {strides = array<i32>} : memref<8x128xf32, #tpu.memory_space<vmem>>, vector<8x128xf32>,
    } else {
    }
    return
  }
  func.func @transform_0(%arg0: i32, %arg1: i32, %arg2: i32) -> (i32, i32) {
    %c0_i32 = arith.constant 0 : i32
    return %arg0, %arg2 : i32, i32
  }
  func.func @transform_1(%arg0: i32, %arg1: i32, %arg2: i32) -> (i32, i32) {
    %c0_i32 = arith.constant 0 : i32
    return %arg2, %arg1 : i32, i32
  }
  func.func @transform_2(%arg0: i32, %arg1: i32, %arg2: i32) -> (i32, i32) {
    %c0_i32 = arith.constant 0 : i32
    %c0_i32_0 = arith.constant 0 : i32
    return %c0_i32, %arg1 : i32, i32
  }
  func.func @transform_3(%arg0: i32, %arg1: i32, %arg2: i32) -> (i32, i32) {
    %c0_i32 = arith.constant 0 : i32
    %c0_i32_0 = arith.constant 0 : i32
    return %c0_i32, %arg1 : i32, i32
  }
  func.func @transform_4(%arg0: i32, %arg1: i32, %arg2: i32) -> (i32, i32) {
    %c0_i32 = arith.constant 0 : i32
    return %arg0, %arg1 : i32, i32
  }
}

module attributes {stable_mosaic.version = 11 : i64} {
  func.func @_mm_bn_kernel(%arg0: i32, %arg1: i32, %arg2: i32, %arg3: memref<8x128xbf16, #tpu.memory_space<vmem>>, %arg4: memref<128x128xbf16, #tpu.memory_space<vmem>>, %arg5: memref<1x128xf32, #tpu.memory_space<vmem>>, %arg6: memref<1x128xf32, #tpu.memory_space<vmem>>, %arg7: memref<8x128xf32, #tpu.memory_space<vmem>>, %arg8: memref<8x128xf32, #tpu.memory_space<vmem>>) attributes {dimension_semantics = [#tpu.dimension_semantics<parallel>, #tpu.dimension_semantics<parallel>, #tpu.dimension_semantics<arbitrary>], iteration_bounds = array<i64: 1, 1, 1>, scalar_prefetch = 0 : i64, scratch_operands = 1 : i64, tpu.core_type = #tpu.core_type<tc>, window_params = [{transform_indices = @transform_0, window_bounds = array<i64: 8, 128>}, {transform_indices = @transform_1, window_bounds = array<i64: 128, 128>}, {transform_indices = @transform_2, window_bounds = array<i64: 1, 128>}, {transform_indices = @transform_3, window_bounds = array<i64: 1, 128>}, {transform_indices = @transform_4, window_bounds = array<i64: 8, 128>}]} {
    %c0_i32 = arith.constant 0 : i32
    %0 = arith.cmpi eq, %arg2, %c0_i32 : i32
    %1 = arith.extui %0 : i1 to i32
    %c0_i32_0 = arith.constant 0 : i32
    %2 = arith.cmpi ne, %1, %c0_i32_0 : i32
    scf.if %2 {
      %cst_10 = arith.constant 0.000000e+00 : f32
      %12 = vector.broadcast %cst_10 : f32 to vector<8x128xf32>
      %c0_11 = arith.constant 0 : index
      %c0_12 = arith.constant 0 : index
      %13 = vector.load %arg8[%c0_11, %c0_12] : memref<8x128xf32, #tpu.memory_space<vmem>>, vector<8x128xf32>
      tpu.vector_store %arg8[%c0_11, %c0_12], %12 {strides = array<i32>} : memref<8x128xf32, #tpu.memory_space<vmem>>, vector<8x128xf32>,
    } else {
    }
    %c0 = arith.constant 0 : index
    %c0_1 = arith.constant 0 : index
    %3 = vector.load %arg8[%c0, %c0_1] : memref<8x128xf32, #tpu.memory_space<vmem>>, vector<8x128xf32>
    %c0_2 = arith.constant 0 : index
    %c0_3 = arith.constant 0 : index
    %4 = vector.load %arg3[%c0_2, %c0_3] : memref<8x128xbf16, #tpu.memory_space<vmem>>, vector<8x128xbf16>
    %c0_4 = arith.constant 0 : index
    %c0_5 = arith.constant 0 : index
    %5 = vector.load %arg4[%c0_4, %c0_5] : memref<128x128xbf16, #tpu.memory_space<vmem>>, vector<128x128xbf16>
    %cst = arith.constant dense<0.000000e+00> : vector<8x128xf32>
    %6 = tpu.matmul %4, %5, %cst {dimension_numbers = #tpu.dot_dimension_numbers<[1], [0], [0], [1], [0, 0, 1, 1], [], []>} : vector<8x128xbf16>, vector<128x128xbf16>, vector<8x128xf32> -> vector<8x128xf32>
    %7 = arith.addf %3, %6 : vector<8x128xf32>
    %c0_6 = arith.constant 0 : index
    %c0_7 = arith.constant 0 : index
    %8 = vector.load %arg8[%c0_6, %c0_7] : memref<8x128xf32, #tpu.memory_space<vmem>>, vector<8x128xf32>
    tpu.vector_store %arg8[%c0_6, %c0_7], %7 {strides = array<i32>} : memref<8x128xf32, #tpu.memory_space<vmem>>, vector<8x128xf32>,
    %c0_i32_8 = arith.constant 0 : i32
    %9 = arith.cmpi eq, %arg2, %c0_i32_8 : i32
    %10 = arith.extui %9 : i1 to i32
    %c0_i32_9 = arith.constant 0 : i32
    %11 = arith.cmpi ne, %10, %c0_i32_9 : i32
    scf.if %11 {
      %c0_10 = arith.constant 0 : index
      %c0_11 = arith.constant 0 : index
      %12 = vector.load %arg8[%c0_10, %c0_11] : memref<8x128xf32, #tpu.memory_space<vmem>>, vector<8x128xf32>
      %c0_12 = arith.constant 0 : index
      %c0_13 = arith.constant 0 : index
      %13 = vector.load %arg5[%c0_12, %c0_13] : memref<1x128xf32, #tpu.memory_space<vmem>>, vector<1x128xf32>
      %14 = vector.broadcast %13 : vector<1x128xf32> to vector<8x128xf32>
      %15 = arith.mulf %12, %14 : vector<8x128xf32>
      %c0_14 = arith.constant 0 : index
      %c0_15 = arith.constant 0 : index
      %16 = vector.load %arg6[%c0_14, %c0_15] : memref<1x128xf32, #tpu.memory_space<vmem>>, vector<1x128xf32>
      %17 = vector.broadcast %16 : vector<1x128xf32> to vector<8x128xf32>
      %18 = arith.addf %15, %17 : vector<8x128xf32>
      %c0_16 = arith.constant 0 : index
      %c0_17 = arith.constant 0 : index
      %19 = vector.load %arg7[%c0_16, %c0_17] : memref<8x128xf32, #tpu.memory_space<vmem>>, vector<8x128xf32>
      tpu.vector_store %arg7[%c0_16, %c0_17], %18 {strides = array<i32>} : memref<8x128xf32, #tpu.memory_space<vmem>>, vector<8x128xf32>,
    } else {
    }
    return
  }
  func.func @transform_0(%arg0: i32, %arg1: i32, %arg2: i32) -> (i32, i32) {
    %c0_i32 = arith.constant 0 : i32
    return %arg0, %arg2 : i32, i32
  }
  func.func @transform_1(%arg0: i32, %arg1: i32, %arg2: i32) -> (i32, i32) {
    %c0_i32 = arith.constant 0 : i32
    return %arg2, %arg1 : i32, i32
  }
  func.func @transform_2(%arg0: i32, %arg1: i32, %arg2: i32) -> (i32, i32) {
    %c0_i32 = arith.constant 0 : i32
    %c0_i32_0 = arith.constant 0 : i32
    return %c0_i32, %arg1 : i32, i32
  }
  func.func @transform_3(%arg0: i32, %arg1: i32, %arg2: i32) -> (i32, i32) {
    %c0_i32 = arith.constant 0 : i32
    %c0_i32_0 = arith.constant 0 : i32
    return %c0_i32, %arg1 : i32, i32
  }
  func.func @transform_4(%arg0: i32, %arg1: i32, %arg2: i32) -> (i32, i32) {
    %c0_i32 = arith.constant 0 : i32
    return %arg0, %arg1 : i32, i32
  }
}

module attributes {stable_mosaic.version = 11 : i64} {
  func.func @_mm_bn_res_kernel(%arg0: i32, %arg1: i32, %arg2: i32, %arg3: memref<8x128xbf16, #tpu.memory_space<vmem>>, %arg4: memref<128x128xbf16, #tpu.memory_space<vmem>>, %arg5: memref<1x128xf32, #tpu.memory_space<vmem>>, %arg6: memref<1x128xf32, #tpu.memory_space<vmem>>, %arg7: memref<8x128xf32, #tpu.memory_space<vmem>>, %arg8: memref<8x128xf32, #tpu.memory_space<vmem>>, %arg9: memref<8x128xf32, #tpu.memory_space<vmem>>) attributes {dimension_semantics = [#tpu.dimension_semantics<parallel>, #tpu.dimension_semantics<parallel>, #tpu.dimension_semantics<arbitrary>], iteration_bounds = array<i64: 1, 1, 9>, scalar_prefetch = 0 : i64, scratch_operands = 1 : i64, tpu.core_type = #tpu.core_type<tc>, window_params = [{transform_indices = @transform_0, window_bounds = array<i64: 8, 128>}, {transform_indices = @transform_1, window_bounds = array<i64: 128, 128>}, {transform_indices = @transform_2, window_bounds = array<i64: 1, 128>}, {transform_indices = @transform_3, window_bounds = array<i64: 1, 128>}, {transform_indices = @transform_4, window_bounds = array<i64: 8, 128>}, {transform_indices = @transform_5, window_bounds = array<i64: 8, 128>}]} {
    %c0_i32 = arith.constant 0 : i32
    %0 = arith.cmpi eq, %arg2, %c0_i32 : i32
    %1 = arith.extui %0 : i1 to i32
    %c0_i32_0 = arith.constant 0 : i32
    %2 = arith.cmpi ne, %1, %c0_i32_0 : i32
    scf.if %2 {
      %cst_9 = arith.constant 0.000000e+00 : f32
      %12 = vector.broadcast %cst_9 : f32 to vector<8x128xf32>
      %c0_10 = arith.constant 0 : index
      %c0_11 = arith.constant 0 : index
      %13 = vector.load %arg9[%c0_10, %c0_11] : memref<8x128xf32, #tpu.memory_space<vmem>>, vector<8x128xf32>
      tpu.vector_store %arg9[%c0_10, %c0_11], %12 {strides = array<i32>} : memref<8x128xf32, #tpu.memory_space<vmem>>, vector<8x128xf32>,
    } else {
    }
    %c0 = arith.constant 0 : index
    %c0_1 = arith.constant 0 : index
    %3 = vector.load %arg9[%c0, %c0_1] : memref<8x128xf32, #tpu.memory_space<vmem>>, vector<8x128xf32>
    %c0_2 = arith.constant 0 : index
    %c0_3 = arith.constant 0 : index
    %4 = vector.load %arg3[%c0_2, %c0_3] : memref<8x128xbf16, #tpu.memory_space<vmem>>, vector<8x128xbf16>
    %c0_4 = arith.constant 0 : index
    %c0_5 = arith.constant 0 : index
    %5 = vector.load %arg4[%c0_4, %c0_5] : memref<128x128xbf16, #tpu.memory_space<vmem>>, vector<128x128xbf16>
    %cst = arith.constant dense<0.000000e+00> : vector<8x128xf32>
    %6 = tpu.matmul %4, %5, %cst {dimension_numbers = #tpu.dot_dimension_numbers<[1], [0], [0], [1], [0, 0, 1, 1], [], []>} : vector<8x128xbf16>, vector<128x128xbf16>, vector<8x128xf32> -> vector<8x128xf32>
    %7 = arith.addf %3, %6 : vector<8x128xf32>
    %c0_6 = arith.constant 0 : index
    %c0_7 = arith.constant 0 : index
    %8 = vector.load %arg9[%c0_6, %c0_7] : memref<8x128xf32, #tpu.memory_space<vmem>>, vector<8x128xf32>
    tpu.vector_store %arg9[%c0_6, %c0_7], %7 {strides = array<i32>} : memref<8x128xf32, #tpu.memory_space<vmem>>, vector<8x128xf32>,
    %c8_i32 = arith.constant 8 : i32
    %9 = arith.cmpi eq, %arg2, %c8_i32 : i32
    %10 = arith.extui %9 : i1 to i32
    %c0_i32_8 = arith.constant 0 : i32
    %11 = arith.cmpi ne, %10, %c0_i32_8 : i32
    scf.if %11 {
      %c0_9 = arith.constant 0 : index
      %c0_10 = arith.constant 0 : index
      %12 = vector.load %arg9[%c0_9, %c0_10] : memref<8x128xf32, #tpu.memory_space<vmem>>, vector<8x128xf32>
      %c0_11 = arith.constant 0 : index
      %c0_12 = arith.constant 0 : index
      %13 = vector.load %arg5[%c0_11, %c0_12] : memref<1x128xf32, #tpu.memory_space<vmem>>, vector<1x128xf32>
      %14 = vector.broadcast %13 : vector<1x128xf32> to vector<8x128xf32>
      %15 = arith.mulf %12, %14 : vector<8x128xf32>
      %c0_13 = arith.constant 0 : index
      %c0_14 = arith.constant 0 : index
      %16 = vector.load %arg6[%c0_13, %c0_14] : memref<1x128xf32, #tpu.memory_space<vmem>>, vector<1x128xf32>
      %17 = vector.broadcast %16 : vector<1x128xf32> to vector<8x128xf32>
      %18 = arith.addf %15, %17 : vector<8x128xf32>
      %c0_15 = arith.constant 0 : index
      %c0_16 = arith.constant 0 : index
      %19 = vector.load %arg7[%c0_15, %c0_16] : memref<8x128xf32, #tpu.memory_space<vmem>>, vector<8x128xf32>
      %20 = arith.addf %18, %19 : vector<8x128xf32>
      %cst_17 = arith.constant 0.000000e+00 : f32
      %21 = vector.broadcast %cst_17 : f32 to vector<8x128xf32>
      %22 = arith.maximumf %20, %21 : vector<8x128xf32>
      %c0_18 = arith.constant 0 : index
      %c0_19 = arith.constant 0 : index
      %23 = vector.load %arg8[%c0_18, %c0_19] : memref<8x128xf32, #tpu.memory_space<vmem>>, vector<8x128xf32>
      tpu.vector_store %arg8[%c0_18, %c0_19], %22 {strides = array<i32>} : memref<8x128xf32, #tpu.memory_space<vmem>>, vector<8x128xf32>,
    } else {
    }
    return
  }
  func.func @transform_0(%arg0: i32, %arg1: i32, %arg2: i32) -> (i32, i32) {
    %c0_i32 = arith.constant 0 : i32
    return %arg0, %arg2 : i32, i32
  }
  func.func @transform_1(%arg0: i32, %arg1: i32, %arg2: i32) -> (i32, i32) {
    %c0_i32 = arith.constant 0 : i32
    return %arg2, %arg1 : i32, i32
  }
  func.func @transform_2(%arg0: i32, %arg1: i32, %arg2: i32) -> (i32, i32) {
    %c0_i32 = arith.constant 0 : i32
    %c0_i32_0 = arith.constant 0 : i32
    return %c0_i32, %arg1 : i32, i32
  }
  func.func @transform_3(%arg0: i32, %arg1: i32, %arg2: i32) -> (i32, i32) {
    %c0_i32 = arith.constant 0 : i32
    %c0_i32_0 = arith.constant 0 : i32
    return %c0_i32, %arg1 : i32, i32
  }
  func.func @transform_4(%arg0: i32, %arg1: i32, %arg2: i32) -> (i32, i32) {
    %c0_i32 = arith.constant 0 : i32
    return %arg0, %arg1 : i32, i32
  }
  func.func @transform_5(%arg0: i32, %arg1: i32, %arg2: i32) -> (i32, i32) {
    %c0_i32 = arith.constant 0 : i32
    return %arg0, %arg1 : i32, i32
  }
}

module attributes {stable_mosaic.version = 11 : i64} {
  func.func @_mm_bn_kernel(%arg0: i32, %arg1: i32, %arg2: i32, %arg3: memref<8x128xbf16, #tpu.memory_space<vmem>>, %arg4: memref<128x256xbf16, #tpu.memory_space<vmem>>, %arg5: memref<1x256xf32, #tpu.memory_space<vmem>>, %arg6: memref<1x256xf32, #tpu.memory_space<vmem>>, %arg7: memref<8x256xf32, #tpu.memory_space<vmem>>, %arg8: memref<8x256xf32, #tpu.memory_space<vmem>>) attributes {dimension_semantics = [#tpu.dimension_semantics<parallel>, #tpu.dimension_semantics<parallel>, #tpu.dimension_semantics<arbitrary>], iteration_bounds = array<i64: 1, 1, 9>, scalar_prefetch = 0 : i64, scratch_operands = 1 : i64, tpu.core_type = #tpu.core_type<tc>, window_params = [{transform_indices = @transform_0, window_bounds = array<i64: 8, 128>}, {transform_indices = @transform_1, window_bounds = array<i64: 128, 256>}, {transform_indices = @transform_2, window_bounds = array<i64: 1, 256>}, {transform_indices = @transform_3, window_bounds = array<i64: 1, 256>}, {transform_indices = @transform_4, window_bounds = array<i64: 8, 256>}]} {
    %c0_i32 = arith.constant 0 : i32
    %0 = arith.cmpi eq, %arg2, %c0_i32 : i32
    %1 = arith.extui %0 : i1 to i32
    %c0_i32_0 = arith.constant 0 : i32
    %2 = arith.cmpi ne, %1, %c0_i32_0 : i32
    scf.if %2 {
      %cst_9 = arith.constant 0.000000e+00 : f32
      %12 = vector.broadcast %cst_9 : f32 to vector<8x256xf32>
      %c0_10 = arith.constant 0 : index
      %c0_11 = arith.constant 0 : index
      %13 = vector.load %arg8[%c0_10, %c0_11] : memref<8x256xf32, #tpu.memory_space<vmem>>, vector<8x256xf32>
      tpu.vector_store %arg8[%c0_10, %c0_11], %12 {strides = array<i32>} : memref<8x256xf32, #tpu.memory_space<vmem>>, vector<8x256xf32>,
    } else {
    }
    %c0 = arith.constant 0 : index
    %c0_1 = arith.constant 0 : index
    %3 = vector.load %arg8[%c0, %c0_1] : memref<8x256xf32, #tpu.memory_space<vmem>>, vector<8x256xf32>
    %c0_2 = arith.constant 0 : index
    %c0_3 = arith.constant 0 : index
    %4 = vector.load %arg3[%c0_2, %c0_3] : memref<8x128xbf16, #tpu.memory_space<vmem>>, vector<8x128xbf16>
    %c0_4 = arith.constant 0 : index
    %c0_5 = arith.constant 0 : index
    %5 = vector.load %arg4[%c0_4, %c0_5] : memref<128x256xbf16, #tpu.memory_space<vmem>>, vector<128x256xbf16>
    %cst = arith.constant dense<0.000000e+00> : vector<8x256xf32>
    %6 = tpu.matmul %4, %5, %cst {dimension_numbers = #tpu.dot_dimension_numbers<[1], [0], [0], [1], [0, 0, 1, 1], [], []>} : vector<8x128xbf16>, vector<128x256xbf16>, vector<8x256xf32> -> vector<8x256xf32>
    %7 = arith.addf %3, %6 : vector<8x256xf32>
    %c0_6 = arith.constant 0 : index
    %c0_7 = arith.constant 0 : index
    %8 = vector.load %arg8[%c0_6, %c0_7] : memref<8x256xf32, #tpu.memory_space<vmem>>, vector<8x256xf32>
    tpu.vector_store %arg8[%c0_6, %c0_7], %7 {strides = array<i32>} : memref<8x256xf32, #tpu.memory_space<vmem>>, vector<8x256xf32>,
    %c8_i32 = arith.constant 8 : i32
    %9 = arith.cmpi eq, %arg2, %c8_i32 : i32
    %10 = arith.extui %9 : i1 to i32
    %c0_i32_8 = arith.constant 0 : i32
    %11 = arith.cmpi ne, %10, %c0_i32_8 : i32
    scf.if %11 {
      %c0_9 = arith.constant 0 : index
      %c0_10 = arith.constant 0 : index
      %12 = vector.load %arg8[%c0_9, %c0_10] : memref<8x256xf32, #tpu.memory_space<vmem>>, vector<8x256xf32>
      %c0_11 = arith.constant 0 : index
      %c0_12 = arith.constant 0 : index
      %13 = vector.load %arg5[%c0_11, %c0_12] : memref<1x256xf32, #tpu.memory_space<vmem>>, vector<1x256xf32>
      %14 = vector.broadcast %13 : vector<1x256xf32> to vector<8x256xf32>
      %15 = arith.mulf %12, %14 : vector<8x256xf32>
      %c0_13 = arith.constant 0 : index
      %c0_14 = arith.constant 0 : index
      %16 = vector.load %arg6[%c0_13, %c0_14] : memref<1x256xf32, #tpu.memory_space<vmem>>, vector<1x256xf32>
      %17 = vector.broadcast %16 : vector<1x256xf32> to vector<8x256xf32>
      %18 = arith.addf %15, %17 : vector<8x256xf32>
      %cst_15 = arith.constant 0.000000e+00 : f32
      %19 = vector.broadcast %cst_15 : f32 to vector<8x256xf32>
      %20 = arith.maximumf %18, %19 : vector<8x256xf32>
      %c0_16 = arith.constant 0 : index
      %c0_17 = arith.constant 0 : index
      %21 = vector.load %arg7[%c0_16, %c0_17] : memref<8x256xf32, #tpu.memory_space<vmem>>, vector<8x256xf32>
      tpu.vector_store %arg7[%c0_16, %c0_17], %20 {strides = array<i32>} : memref<8x256xf32, #tpu.memory_space<vmem>>, vector<8x256xf32>,
    } else {
    }
    return
  }
  func.func @transform_0(%arg0: i32, %arg1: i32, %arg2: i32) -> (i32, i32) {
    %c0_i32 = arith.constant 0 : i32
    return %arg0, %arg2 : i32, i32
  }
  func.func @transform_1(%arg0: i32, %arg1: i32, %arg2: i32) -> (i32, i32) {
    %c0_i32 = arith.constant 0 : i32
    return %arg2, %arg1 : i32, i32
  }
  func.func @transform_2(%arg0: i32, %arg1: i32, %arg2: i32) -> (i32, i32) {
    %c0_i32 = arith.constant 0 : i32
    %c0_i32_0 = arith.constant 0 : i32
    return %c0_i32, %arg1 : i32, i32
  }
  func.func @transform_3(%arg0: i32, %arg1: i32, %arg2: i32) -> (i32, i32) {
    %c0_i32 = arith.constant 0 : i32
    %c0_i32_0 = arith.constant 0 : i32
    return %c0_i32, %arg1 : i32, i32
  }
  func.func @transform_4(%arg0: i32, %arg1: i32, %arg2: i32) -> (i32, i32) {
    %c0_i32 = arith.constant 0 : i32
    return %arg0, %arg1 : i32, i32
  }
}

module attributes {stable_mosaic.version = 11 : i64} {
  func.func @_mm_bn_kernel(%arg0: i32, %arg1: i32, %arg2: i32, %arg3: memref<8x128xbf16, #tpu.memory_space<vmem>>, %arg4: memref<128x256xbf16, #tpu.memory_space<vmem>>, %arg5: memref<1x256xf32, #tpu.memory_space<vmem>>, %arg6: memref<1x256xf32, #tpu.memory_space<vmem>>, %arg7: memref<8x256xf32, #tpu.memory_space<vmem>>, %arg8: memref<8x256xf32, #tpu.memory_space<vmem>>) attributes {dimension_semantics = [#tpu.dimension_semantics<parallel>, #tpu.dimension_semantics<parallel>, #tpu.dimension_semantics<arbitrary>], iteration_bounds = array<i64: 1, 1, 1>, scalar_prefetch = 0 : i64, scratch_operands = 1 : i64, tpu.core_type = #tpu.core_type<tc>, window_params = [{transform_indices = @transform_0, window_bounds = array<i64: 8, 128>}, {transform_indices = @transform_1, window_bounds = array<i64: 128, 256>}, {transform_indices = @transform_2, window_bounds = array<i64: 1, 256>}, {transform_indices = @transform_3, window_bounds = array<i64: 1, 256>}, {transform_indices = @transform_4, window_bounds = array<i64: 8, 256>}]} {
    %c0_i32 = arith.constant 0 : i32
    %0 = arith.cmpi eq, %arg2, %c0_i32 : i32
    %1 = arith.extui %0 : i1 to i32
    %c0_i32_0 = arith.constant 0 : i32
    %2 = arith.cmpi ne, %1, %c0_i32_0 : i32
    scf.if %2 {
      %cst_10 = arith.constant 0.000000e+00 : f32
      %12 = vector.broadcast %cst_10 : f32 to vector<8x256xf32>
      %c0_11 = arith.constant 0 : index
      %c0_12 = arith.constant 0 : index
      %13 = vector.load %arg8[%c0_11, %c0_12] : memref<8x256xf32, #tpu.memory_space<vmem>>, vector<8x256xf32>
      tpu.vector_store %arg8[%c0_11, %c0_12], %12 {strides = array<i32>} : memref<8x256xf32, #tpu.memory_space<vmem>>, vector<8x256xf32>,
    } else {
    }
    %c0 = arith.constant 0 : index
    %c0_1 = arith.constant 0 : index
    %3 = vector.load %arg8[%c0, %c0_1] : memref<8x256xf32, #tpu.memory_space<vmem>>, vector<8x256xf32>
    %c0_2 = arith.constant 0 : index
    %c0_3 = arith.constant 0 : index
    %4 = vector.load %arg3[%c0_2, %c0_3] : memref<8x128xbf16, #tpu.memory_space<vmem>>, vector<8x128xbf16>
    %c0_4 = arith.constant 0 : index
    %c0_5 = arith.constant 0 : index
    %5 = vector.load %arg4[%c0_4, %c0_5] : memref<128x256xbf16, #tpu.memory_space<vmem>>, vector<128x256xbf16>
    %cst = arith.constant dense<0.000000e+00> : vector<8x256xf32>
    %6 = tpu.matmul %4, %5, %cst {dimension_numbers = #tpu.dot_dimension_numbers<[1], [0], [0], [1], [0, 0, 1, 1], [], []>} : vector<8x128xbf16>, vector<128x256xbf16>, vector<8x256xf32> -> vector<8x256xf32>
    %7 = arith.addf %3, %6 : vector<8x256xf32>
    %c0_6 = arith.constant 0 : index
    %c0_7 = arith.constant 0 : index
    %8 = vector.load %arg8[%c0_6, %c0_7] : memref<8x256xf32, #tpu.memory_space<vmem>>, vector<8x256xf32>
    tpu.vector_store %arg8[%c0_6, %c0_7], %7 {strides = array<i32>} : memref<8x256xf32, #tpu.memory_space<vmem>>, vector<8x256xf32>,
    %c0_i32_8 = arith.constant 0 : i32
    %9 = arith.cmpi eq, %arg2, %c0_i32_8 : i32
    %10 = arith.extui %9 : i1 to i32
    %c0_i32_9 = arith.constant 0 : i32
    %11 = arith.cmpi ne, %10, %c0_i32_9 : i32
    scf.if %11 {
      %c0_10 = arith.constant 0 : index
      %c0_11 = arith.constant 0 : index
      %12 = vector.load %arg8[%c0_10, %c0_11] : memref<8x256xf32, #tpu.memory_space<vmem>>, vector<8x256xf32>
      %c0_12 = arith.constant 0 : index
      %c0_13 = arith.constant 0 : index
      %13 = vector.load %arg5[%c0_12, %c0_13] : memref<1x256xf32, #tpu.memory_space<vmem>>, vector<1x256xf32>
      %14 = vector.broadcast %13 : vector<1x256xf32> to vector<8x256xf32>
      %15 = arith.mulf %12, %14 : vector<8x256xf32>
      %c0_14 = arith.constant 0 : index
      %c0_15 = arith.constant 0 : index
      %16 = vector.load %arg6[%c0_14, %c0_15] : memref<1x256xf32, #tpu.memory_space<vmem>>, vector<1x256xf32>
      %17 = vector.broadcast %16 : vector<1x256xf32> to vector<8x256xf32>
      %18 = arith.addf %15, %17 : vector<8x256xf32>
      %c0_16 = arith.constant 0 : index
      %c0_17 = arith.constant 0 : index
      %19 = vector.load %arg7[%c0_16, %c0_17] : memref<8x256xf32, #tpu.memory_space<vmem>>, vector<8x256xf32>
      tpu.vector_store %arg7[%c0_16, %c0_17], %18 {strides = array<i32>} : memref<8x256xf32, #tpu.memory_space<vmem>>, vector<8x256xf32>,
    } else {
    }
    return
  }
  func.func @transform_0(%arg0: i32, %arg1: i32, %arg2: i32) -> (i32, i32) {
    %c0_i32 = arith.constant 0 : i32
    return %arg0, %arg2 : i32, i32
  }
  func.func @transform_1(%arg0: i32, %arg1: i32, %arg2: i32) -> (i32, i32) {
    %c0_i32 = arith.constant 0 : i32
    return %arg2, %arg1 : i32, i32
  }
  func.func @transform_2(%arg0: i32, %arg1: i32, %arg2: i32) -> (i32, i32) {
    %c0_i32 = arith.constant 0 : i32
    %c0_i32_0 = arith.constant 0 : i32
    return %c0_i32, %arg1 : i32, i32
  }
  func.func @transform_3(%arg0: i32, %arg1: i32, %arg2: i32) -> (i32, i32) {
    %c0_i32 = arith.constant 0 : i32
    %c0_i32_0 = arith.constant 0 : i32
    return %c0_i32, %arg1 : i32, i32
  }
  func.func @transform_4(%arg0: i32, %arg1: i32, %arg2: i32) -> (i32, i32) {
    %c0_i32 = arith.constant 0 : i32
    return %arg0, %arg1 : i32, i32
  }
}

module attributes {stable_mosaic.version = 11 : i64} {
  func.func @_mm_bn_res_kernel(%arg0: i32, %arg1: i32, %arg2: i32, %arg3: memref<8x256xbf16, #tpu.memory_space<vmem>>, %arg4: memref<256x256xbf16, #tpu.memory_space<vmem>>, %arg5: memref<1x256xf32, #tpu.memory_space<vmem>>, %arg6: memref<1x256xf32, #tpu.memory_space<vmem>>, %arg7: memref<8x256xf32, #tpu.memory_space<vmem>>, %arg8: memref<8x256xf32, #tpu.memory_space<vmem>>, %arg9: memref<8x256xf32, #tpu.memory_space<vmem>>) attributes {dimension_semantics = [#tpu.dimension_semantics<parallel>, #tpu.dimension_semantics<parallel>, #tpu.dimension_semantics<arbitrary>], iteration_bounds = array<i64: 1, 1, 9>, scalar_prefetch = 0 : i64, scratch_operands = 1 : i64, tpu.core_type = #tpu.core_type<tc>, window_params = [{transform_indices = @transform_0, window_bounds = array<i64: 8, 256>}, {transform_indices = @transform_1, window_bounds = array<i64: 256, 256>}, {transform_indices = @transform_2, window_bounds = array<i64: 1, 256>}, {transform_indices = @transform_3, window_bounds = array<i64: 1, 256>}, {transform_indices = @transform_4, window_bounds = array<i64: 8, 256>}, {transform_indices = @transform_5, window_bounds = array<i64: 8, 256>}]} {
    %c0_i32 = arith.constant 0 : i32
    %0 = arith.cmpi eq, %arg2, %c0_i32 : i32
    %1 = arith.extui %0 : i1 to i32
    %c0_i32_0 = arith.constant 0 : i32
    %2 = arith.cmpi ne, %1, %c0_i32_0 : i32
    scf.if %2 {
      %cst_9 = arith.constant 0.000000e+00 : f32
      %12 = vector.broadcast %cst_9 : f32 to vector<8x256xf32>
      %c0_10 = arith.constant 0 : index
      %c0_11 = arith.constant 0 : index
      %13 = vector.load %arg9[%c0_10, %c0_11] : memref<8x256xf32, #tpu.memory_space<vmem>>, vector<8x256xf32>
      tpu.vector_store %arg9[%c0_10, %c0_11], %12 {strides = array<i32>} : memref<8x256xf32, #tpu.memory_space<vmem>>, vector<8x256xf32>,
    } else {
    }
    %c0 = arith.constant 0 : index
    %c0_1 = arith.constant 0 : index
    %3 = vector.load %arg9[%c0, %c0_1] : memref<8x256xf32, #tpu.memory_space<vmem>>, vector<8x256xf32>
    %c0_2 = arith.constant 0 : index
    %c0_3 = arith.constant 0 : index
    %4 = vector.load %arg3[%c0_2, %c0_3] : memref<8x256xbf16, #tpu.memory_space<vmem>>, vector<8x256xbf16>
    %c0_4 = arith.constant 0 : index
    %c0_5 = arith.constant 0 : index
    %5 = vector.load %arg4[%c0_4, %c0_5] : memref<256x256xbf16, #tpu.memory_space<vmem>>, vector<256x256xbf16>
    %cst = arith.constant dense<0.000000e+00> : vector<8x256xf32>
    %6 = tpu.matmul %4, %5, %cst {dimension_numbers = #tpu.dot_dimension_numbers<[1], [0], [0], [1], [0, 0, 1, 1], [], []>} : vector<8x256xbf16>, vector<256x256xbf16>, vector<8x256xf32> -> vector<8x256xf32>
    %7 = arith.addf %3, %6 : vector<8x256xf32>
    %c0_6 = arith.constant 0 : index
    %c0_7 = arith.constant 0 : index
    %8 = vector.load %arg9[%c0_6, %c0_7] : memref<8x256xf32, #tpu.memory_space<vmem>>, vector<8x256xf32>
    tpu.vector_store %arg9[%c0_6, %c0_7], %7 {strides = array<i32>} : memref<8x256xf32, #tpu.memory_space<vmem>>, vector<8x256xf32>,
    %c8_i32 = arith.constant 8 : i32
    %9 = arith.cmpi eq, %arg2, %c8_i32 : i32
    %10 = arith.extui %9 : i1 to i32
    %c0_i32_8 = arith.constant 0 : i32
    %11 = arith.cmpi ne, %10, %c0_i32_8 : i32
    scf.if %11 {
      %c0_9 = arith.constant 0 : index
      %c0_10 = arith.constant 0 : index
      %12 = vector.load %arg9[%c0_9, %c0_10] : memref<8x256xf32, #tpu.memory_space<vmem>>, vector<8x256xf32>
      %c0_11 = arith.constant 0 : index
      %c0_12 = arith.constant 0 : index
      %13 = vector.load %arg5[%c0_11, %c0_12] : memref<1x256xf32, #tpu.memory_space<vmem>>, vector<1x256xf32>
      %14 = vector.broadcast %13 : vector<1x256xf32> to vector<8x256xf32>
      %15 = arith.mulf %12, %14 : vector<8x256xf32>
      %c0_13 = arith.constant 0 : index
      %c0_14 = arith.constant 0 : index
      %16 = vector.load %arg6[%c0_13, %c0_14] : memref<1x256xf32, #tpu.memory_space<vmem>>, vector<1x256xf32>
      %17 = vector.broadcast %16 : vector<1x256xf32> to vector<8x256xf32>
      %18 = arith.addf %15, %17 : vector<8x256xf32>
      %c0_15 = arith.constant 0 : index
      %c0_16 = arith.constant 0 : index
      %19 = vector.load %arg7[%c0_15, %c0_16] : memref<8x256xf32, #tpu.memory_space<vmem>>, vector<8x256xf32>
      %20 = arith.addf %18, %19 : vector<8x256xf32>
      %cst_17 = arith.constant 0.000000e+00 : f32
      %21 = vector.broadcast %cst_17 : f32 to vector<8x256xf32>
      %22 = arith.maximumf %20, %21 : vector<8x256xf32>
      %c0_18 = arith.constant 0 : index
      %c0_19 = arith.constant 0 : index
      %23 = vector.load %arg8[%c0_18, %c0_19] : memref<8x256xf32, #tpu.memory_space<vmem>>, vector<8x256xf32>
      tpu.vector_store %arg8[%c0_18, %c0_19], %22 {strides = array<i32>} : memref<8x256xf32, #tpu.memory_space<vmem>>, vector<8x256xf32>,
    } else {
    }
    return
  }
  func.func @transform_0(%arg0: i32, %arg1: i32, %arg2: i32) -> (i32, i32) {
    %c0_i32 = arith.constant 0 : i32
    return %arg0, %arg2 : i32, i32
  }
  func.func @transform_1(%arg0: i32, %arg1: i32, %arg2: i32) -> (i32, i32) {
    %c0_i32 = arith.constant 0 : i32
    return %arg2, %arg1 : i32, i32
  }
  func.func @transform_2(%arg0: i32, %arg1: i32, %arg2: i32) -> (i32, i32) {
    %c0_i32 = arith.constant 0 : i32
    %c0_i32_0 = arith.constant 0 : i32
    return %c0_i32, %arg1 : i32, i32
  }
  func.func @transform_3(%arg0: i32, %arg1: i32, %arg2: i32) -> (i32, i32) {
    %c0_i32 = arith.constant 0 : i32
    %c0_i32_0 = arith.constant 0 : i32
    return %c0_i32, %arg1 : i32, i32
  }
  func.func @transform_4(%arg0: i32, %arg1: i32, %arg2: i32) -> (i32, i32) {
    %c0_i32 = arith.constant 0 : i32
    return %arg0, %arg1 : i32, i32
  }
  func.func @transform_5(%arg0: i32, %arg1: i32, %arg2: i32) -> (i32, i32) {
    %c0_i32 = arith.constant 0 : i32
    return %arg0, %arg1 : i32, i32
  }
}

module attributes {stable_mosaic.version = 11 : i64} {
  func.func @_mm_bn_kernel(%arg0: i32, %arg1: i32, %arg2: i32, %arg3: memref<8x256xbf16, #tpu.memory_space<vmem>>, %arg4: memref<256x256xbf16, #tpu.memory_space<vmem>>, %arg5: memref<1x256xf32, #tpu.memory_space<vmem>>, %arg6: memref<1x256xf32, #tpu.memory_space<vmem>>, %arg7: memref<8x256xf32, #tpu.memory_space<vmem>>, %arg8: memref<8x256xf32, #tpu.memory_space<vmem>>) attributes {dimension_semantics = [#tpu.dimension_semantics<parallel>, #tpu.dimension_semantics<parallel>, #tpu.dimension_semantics<arbitrary>], iteration_bounds = array<i64: 1, 2, 9>, scalar_prefetch = 0 : i64, scratch_operands = 1 : i64, tpu.core_type = #tpu.core_type<tc>, window_params = [{transform_indices = @transform_0, window_bounds = array<i64: 8, 256>}, {transform_indices = @transform_1, window_bounds = array<i64: 256, 256>}, {transform_indices = @transform_2, window_bounds = array<i64: 1, 256>}, {transform_indices = @transform_3, window_bounds = array<i64: 1, 256>}, {transform_indices = @transform_4, window_bounds = array<i64: 8, 256>}]} {
    %c0_i32 = arith.constant 0 : i32
    %0 = arith.cmpi eq, %arg2, %c0_i32 : i32
    %1 = arith.extui %0 : i1 to i32
    %c0_i32_0 = arith.constant 0 : i32
    %2 = arith.cmpi ne, %1, %c0_i32_0 : i32
    scf.if %2 {
      %cst_9 = arith.constant 0.000000e+00 : f32
      %12 = vector.broadcast %cst_9 : f32 to vector<8x256xf32>
      %c0_10 = arith.constant 0 : index
      %c0_11 = arith.constant 0 : index
      %13 = vector.load %arg8[%c0_10, %c0_11] : memref<8x256xf32, #tpu.memory_space<vmem>>, vector<8x256xf32>
      tpu.vector_store %arg8[%c0_10, %c0_11], %12 {strides = array<i32>} : memref<8x256xf32, #tpu.memory_space<vmem>>, vector<8x256xf32>,
    } else {
    }
    %c0 = arith.constant 0 : index
    %c0_1 = arith.constant 0 : index
    %3 = vector.load %arg8[%c0, %c0_1] : memref<8x256xf32, #tpu.memory_space<vmem>>, vector<8x256xf32>
    %c0_2 = arith.constant 0 : index
    %c0_3 = arith.constant 0 : index
    %4 = vector.load %arg3[%c0_2, %c0_3] : memref<8x256xbf16, #tpu.memory_space<vmem>>, vector<8x256xbf16>
    %c0_4 = arith.constant 0 : index
    %c0_5 = arith.constant 0 : index
    %5 = vector.load %arg4[%c0_4, %c0_5] : memref<256x256xbf16, #tpu.memory_space<vmem>>, vector<256x256xbf16>
    %cst = arith.constant dense<0.000000e+00> : vector<8x256xf32>
    %6 = tpu.matmul %4, %5, %cst {dimension_numbers = #tpu.dot_dimension_numbers<[1], [0], [0], [1], [0, 0, 1, 1], [], []>} : vector<8x256xbf16>, vector<256x256xbf16>, vector<8x256xf32> -> vector<8x256xf32>
    %7 = arith.addf %3, %6 : vector<8x256xf32>
    %c0_6 = arith.constant 0 : index
    %c0_7 = arith.constant 0 : index
    %8 = vector.load %arg8[%c0_6, %c0_7] : memref<8x256xf32, #tpu.memory_space<vmem>>, vector<8x256xf32>
    tpu.vector_store %arg8[%c0_6, %c0_7], %7 {strides = array<i32>} : memref<8x256xf32, #tpu.memory_space<vmem>>, vector<8x256xf32>,
    %c8_i32 = arith.constant 8 : i32
    %9 = arith.cmpi eq, %arg2, %c8_i32 : i32
    %10 = arith.extui %9 : i1 to i32
    %c0_i32_8 = arith.constant 0 : i32
    %11 = arith.cmpi ne, %10, %c0_i32_8 : i32
    scf.if %11 {
      %c0_9 = arith.constant 0 : index
      %c0_10 = arith.constant 0 : index
      %12 = vector.load %arg8[%c0_9, %c0_10] : memref<8x256xf32, #tpu.memory_space<vmem>>, vector<8x256xf32>
      %c0_11 = arith.constant 0 : index
      %c0_12 = arith.constant 0 : index
      %13 = vector.load %arg5[%c0_11, %c0_12] : memref<1x256xf32, #tpu.memory_space<vmem>>, vector<1x256xf32>
      %14 = vector.broadcast %13 : vector<1x256xf32> to vector<8x256xf32>
      %15 = arith.mulf %12, %14 : vector<8x256xf32>
      %c0_13 = arith.constant 0 : index
      %c0_14 = arith.constant 0 : index
      %16 = vector.load %arg6[%c0_13, %c0_14] : memref<1x256xf32, #tpu.memory_space<vmem>>, vector<1x256xf32>
      %17 = vector.broadcast %16 : vector<1x256xf32> to vector<8x256xf32>
      %18 = arith.addf %15, %17 : vector<8x256xf32>
      %cst_15 = arith.constant 0.000000e+00 : f32
      %19 = vector.broadcast %cst_15 : f32 to vector<8x256xf32>
      %20 = arith.maximumf %18, %19 : vector<8x256xf32>
      %c0_16 = arith.constant 0 : index
      %c0_17 = arith.constant 0 : index
      %21 = vector.load %arg7[%c0_16, %c0_17] : memref<8x256xf32, #tpu.memory_space<vmem>>, vector<8x256xf32>
      tpu.vector_store %arg7[%c0_16, %c0_17], %20 {strides = array<i32>} : memref<8x256xf32, #tpu.memory_space<vmem>>, vector<8x256xf32>,
    } else {
    }
    return
  }
  func.func @transform_0(%arg0: i32, %arg1: i32, %arg2: i32) -> (i32, i32) {
    %c0_i32 = arith.constant 0 : i32
    return %arg0, %arg2 : i32, i32
  }
  func.func @transform_1(%arg0: i32, %arg1: i32, %arg2: i32) -> (i32, i32) {
    %c0_i32 = arith.constant 0 : i32
    return %arg2, %arg1 : i32, i32
  }
  func.func @transform_2(%arg0: i32, %arg1: i32, %arg2: i32) -> (i32, i32) {
    %c0_i32 = arith.constant 0 : i32
    %c0_i32_0 = arith.constant 0 : i32
    return %c0_i32, %arg1 : i32, i32
  }
  func.func @transform_3(%arg0: i32, %arg1: i32, %arg2: i32) -> (i32, i32) {
    %c0_i32 = arith.constant 0 : i32
    %c0_i32_0 = arith.constant 0 : i32
    return %c0_i32, %arg1 : i32, i32
  }
  func.func @transform_4(%arg0: i32, %arg1: i32, %arg2: i32) -> (i32, i32) {
    %c0_i32 = arith.constant 0 : i32
    return %arg0, %arg1 : i32, i32
  }
}

module attributes {stable_mosaic.version = 11 : i64} {
  func.func @_avgpool_kernel(%arg0: memref<1x2x512xf32, #tpu.memory_space<vmem>>, %arg1: memref<2x512xf32, #tpu.memory_space<vmem>>) attributes {dimension_semantics = [], scalar_prefetch = 0 : i64, scratch_operands = 0 : i64, tpu.core_type = #tpu.core_type<tc>} {
    %c0 = arith.constant 0 : index
    %c0_0 = arith.constant 0 : index
    %c0_1 = arith.constant 0 : index
    %0 = vector.load %arg0[%c0, %c0_0, %c0_1] : memref<1x2x512xf32, #tpu.memory_space<vmem>>, vector<1x2x512xf32>
    %1 = vector.shape_cast %0 : vector<1x2x512xf32> to vector<2x512xf32>
    %cst = arith.constant 1.000000e+00 : f32
    %2 = vector.broadcast %cst : f32 to vector<2x512xf32>
    %3 = arith.mulf %1, %2 : vector<2x512xf32>
    %c0_2 = arith.constant 0 : index
    %c0_3 = arith.constant 0 : index
    %4 = vector.load %arg1[%c0_2, %c0_3] : memref<2x512xf32, #tpu.memory_space<vmem>>, vector<2x512xf32>
    tpu.vector_store %arg1[%c0_2, %c0_3], %3 {strides = array<i32>} : memref<2x512xf32, #tpu.memory_space<vmem>>, vector<2x512xf32>,
    return
  }
}

module attributes {stable_mosaic.version = 11 : i64} {
  func.func @_mm_bn_res_kernel(%arg0: i32, %arg1: i32, %arg2: i32, %arg3: memref<8x512xbf16, #tpu.memory_space<vmem>>, %arg4: memref<512x256xbf16, #tpu.memory_space<vmem>>, %arg5: memref<1x256xf32, #tpu.memory_space<vmem>>, %arg6: memref<1x256xf32, #tpu.memory_space<vmem>>, %arg7: memref<8x256xf32, #tpu.memory_space<vmem>>, %arg8: memref<8x256xf32, #tpu.memory_space<vmem>>, %arg9: memref<8x256xf32, #tpu.memory_space<vmem>>) attributes {dimension_semantics = [#tpu.dimension_semantics<parallel>, #tpu.dimension_semantics<parallel>, #tpu.dimension_semantics<arbitrary>], iteration_bounds = array<i64: 1, 2, 9>, scalar_prefetch = 0 : i64, scratch_operands = 1 : i64, tpu.core_type = #tpu.core_type<tc>, window_params = [{transform_indices = @transform_0, window_bounds = array<i64: 8, 512>}, {transform_indices = @transform_1, window_bounds = array<i64: 512, 256>}, {transform_indices = @transform_2, window_bounds = array<i64: 1, 256>}, {transform_indices = @transform_3, window_bounds = array<i64: 1, 256>}, {transform_indices = @transform_4, window_bounds = array<i64: 8, 256>}, {transform_indices = @transform_5, window_bounds = array<i64: 8, 256>}]} {
    %c0_i32 = arith.constant 0 : i32
    %0 = arith.cmpi eq, %arg2, %c0_i32 : i32
    %1 = arith.extui %0 : i1 to i32
    %c0_i32_0 = arith.constant 0 : i32
    %2 = arith.cmpi ne, %1, %c0_i32_0 : i32
    scf.if %2 {
      %cst_9 = arith.constant 0.000000e+00 : f32
      %12 = vector.broadcast %cst_9 : f32 to vector<8x256xf32>
      %c0_10 = arith.constant 0 : index
      %c0_11 = arith.constant 0 : index
      %13 = vector.load %arg9[%c0_10, %c0_11] : memref<8x256xf32, #tpu.memory_space<vmem>>, vector<8x256xf32>
      tpu.vector_store %arg9[%c0_10, %c0_11], %12 {strides = array<i32>} : memref<8x256xf32, #tpu.memory_space<vmem>>, vector<8x256xf32>,
    } else {
    }
    %c0 = arith.constant 0 : index
    %c0_1 = arith.constant 0 : index
    %3 = vector.load %arg9[%c0, %c0_1] : memref<8x256xf32, #tpu.memory_space<vmem>>, vector<8x256xf32>
    %c0_2 = arith.constant 0 : index
    %c0_3 = arith.constant 0 : index
    %4 = vector.load %arg3[%c0_2, %c0_3] : memref<8x512xbf16, #tpu.memory_space<vmem>>, vector<8x512xbf16>
    %c0_4 = arith.constant 0 : index
    %c0_5 = arith.constant 0 : index
    %5 = vector.load %arg4[%c0_4, %c0_5] : memref<512x256xbf16, #tpu.memory_space<vmem>>, vector<512x256xbf16>
    %cst = arith.constant dense<0.000000e+00> : vector<8x256xf32>
    %6 = tpu.matmul %4, %5, %cst {dimension_numbers = #tpu.dot_dimension_numbers<[1], [0], [0], [1], [0, 0, 1, 1], [], []>} : vector<8x512xbf16>, vector<512x256xbf16>, vector<8x256xf32> -> vector<8x256xf32>
    %7 = arith.addf %3, %6 : vector<8x256xf32>
    %c0_6 = arith.constant 0 : index
    %c0_7 = arith.constant 0 : index
    %8 = vector.load %arg9[%c0_6, %c0_7] : memref<8x256xf32, #tpu.memory_space<vmem>>, vector<8x256xf32>
    tpu.vector_store %arg9[%c0_6, %c0_7], %7 {strides = array<i32>} : memref<8x256xf32, #tpu.memory_space<vmem>>, vector<8x256xf32>,
    %c8_i32 = arith.constant 8 : i32
    %9 = arith.cmpi eq, %arg2, %c8_i32 : i32
    %10 = arith.extui %9 : i1 to i32
    %c0_i32_8 = arith.constant 0 : i32
    %11 = arith.cmpi ne, %10, %c0_i32_8 : i32
    scf.if %11 {
      %c0_9 = arith.constant 0 : index
      %c0_10 = arith.constant 0 : index
      %12 = vector.load %arg9[%c0_9, %c0_10] : memref<8x256xf32, #tpu.memory_space<vmem>>, vector<8x256xf32>
      %c0_11 = arith.constant 0 : index
      %c0_12 = arith.constant 0 : index
      %13 = vector.load %arg5[%c0_11, %c0_12] : memref<1x256xf32, #tpu.memory_space<vmem>>, vector<1x256xf32>
      %14 = vector.broadcast %13 : vector<1x256xf32> to vector<8x256xf32>
      %15 = arith.mulf %12, %14 : vector<8x256xf32>
      %c0_13 = arith.constant 0 : index
      %c0_14 = arith.constant 0 : index
      %16 = vector.load %arg6[%c0_13, %c0_14] : memref<1x256xf32, #tpu.memory_space<vmem>>, vector<1x256xf32>
      %17 = vector.broadcast %16 : vector<1x256xf32> to vector<8x256xf32>
      %18 = arith.addf %15, %17 : vector<8x256xf32>
      %c0_15 = arith.constant 0 : index
      %c0_16 = arith.constant 0 : index
      %19 = vector.load %arg7[%c0_15, %c0_16] : memref<8x256xf32, #tpu.memory_space<vmem>>, vector<8x256xf32>
      %20 = arith.addf %18, %19 : vector<8x256xf32>
      %cst_17 = arith.constant 0.000000e+00 : f32
      %21 = vector.broadcast %cst_17 : f32 to vector<8x256xf32>
      %22 = arith.maximumf %20, %21 : vector<8x256xf32>
      %c0_18 = arith.constant 0 : index
      %c0_19 = arith.constant 0 : index
      %23 = vector.load %arg8[%c0_18, %c0_19] : memref<8x256xf32, #tpu.memory_space<vmem>>, vector<8x256xf32>
      tpu.vector_store %arg8[%c0_18, %c0_19], %22 {strides = array<i32>} : memref<8x256xf32, #tpu.memory_space<vmem>>, vector<8x256xf32>,
    } else {
    }
    return
  }
  func.func @transform_0(%arg0: i32, %arg1: i32, %arg2: i32) -> (i32, i32) {
    %c0_i32 = arith.constant 0 : i32
    return %arg0, %arg2 : i32, i32
  }
  func.func @transform_1(%arg0: i32, %arg1: i32, %arg2: i32) -> (i32, i32) {
    %c0_i32 = arith.constant 0 : i32
    return %arg2, %arg1 : i32, i32
  }
  func.func @transform_2(%arg0: i32, %arg1: i32, %arg2: i32) -> (i32, i32) {
    %c0_i32 = arith.constant 0 : i32
    %c0_i32_0 = arith.constant 0 : i32
    return %c0_i32, %arg1 : i32, i32
  }
  func.func @transform_3(%arg0: i32, %arg1: i32, %arg2: i32) -> (i32, i32) {
    %c0_i32 = arith.constant 0 : i32
    %c0_i32_0 = arith.constant 0 : i32
    return %c0_i32, %arg1 : i32, i32
  }
  func.func @transform_4(%arg0: i32, %arg1: i32, %arg2: i32) -> (i32, i32) {
    %c0_i32 = arith.constant 0 : i32
    return %arg0, %arg1 : i32, i32
  }
  func.func @transform_5(%arg0: i32, %arg1: i32, %arg2: i32) -> (i32, i32) {
    %c0_i32 = arith.constant 0 : i32
    return %arg0, %arg1 : i32, i32
  }
}

module attributes {stable_mosaic.version = 11 : i64} {
  func.func @_mm_bn_kernel(%arg0: i32, %arg1: i32, %arg2: i32, %arg3: memref<8x256xbf16, #tpu.memory_space<vmem>>, %arg4: memref<256x256xbf16, #tpu.memory_space<vmem>>, %arg5: memref<1x256xf32, #tpu.memory_space<vmem>>, %arg6: memref<1x256xf32, #tpu.memory_space<vmem>>, %arg7: memref<8x256xf32, #tpu.memory_space<vmem>>, %arg8: memref<8x256xf32, #tpu.memory_space<vmem>>) attributes {dimension_semantics = [#tpu.dimension_semantics<parallel>, #tpu.dimension_semantics<parallel>, #tpu.dimension_semantics<arbitrary>], iteration_bounds = array<i64: 1, 2, 1>, scalar_prefetch = 0 : i64, scratch_operands = 1 : i64, tpu.core_type = #tpu.core_type<tc>, window_params = [{transform_indices = @transform_0, window_bounds = array<i64: 8, 256>}, {transform_indices = @transform_1, window_bounds = array<i64: 256, 256>}, {transform_indices = @transform_2, window_bounds = array<i64: 1, 256>}, {transform_indices = @transform_3, window_bounds = array<i64: 1, 256>}, {transform_indices = @transform_4, window_bounds = array<i64: 8, 256>}]} {
    %c0_i32 = arith.constant 0 : i32
    %0 = arith.cmpi eq, %arg2, %c0_i32 : i32
    %1 = arith.extui %0 : i1 to i32
    %c0_i32_0 = arith.constant 0 : i32
    %2 = arith.cmpi ne, %1, %c0_i32_0 : i32
    scf.if %2 {
      %cst_10 = arith.constant 0.000000e+00 : f32
      %12 = vector.broadcast %cst_10 : f32 to vector<8x256xf32>
      %c0_11 = arith.constant 0 : index
      %c0_12 = arith.constant 0 : index
      %13 = vector.load %arg8[%c0_11, %c0_12] : memref<8x256xf32, #tpu.memory_space<vmem>>, vector<8x256xf32>
      tpu.vector_store %arg8[%c0_11, %c0_12], %12 {strides = array<i32>} : memref<8x256xf32, #tpu.memory_space<vmem>>, vector<8x256xf32>,
    } else {
    }
    %c0 = arith.constant 0 : index
    %c0_1 = arith.constant 0 : index
    %3 = vector.load %arg8[%c0, %c0_1] : memref<8x256xf32, #tpu.memory_space<vmem>>, vector<8x256xf32>
    %c0_2 = arith.constant 0 : index
    %c0_3 = arith.constant 0 : index
    %4 = vector.load %arg3[%c0_2, %c0_3] : memref<8x256xbf16, #tpu.memory_space<vmem>>, vector<8x256xbf16>
    %c0_4 = arith.constant 0 : index
    %c0_5 = arith.constant 0 : index
    %5 = vector.load %arg4[%c0_4, %c0_5] : memref<256x256xbf16, #tpu.memory_space<vmem>>, vector<256x256xbf16>
    %cst = arith.constant dense<0.000000e+00> : vector<8x256xf32>
    %6 = tpu.matmul %4, %5, %cst {dimension_numbers = #tpu.dot_dimension_numbers<[1], [0], [0], [1], [0, 0, 1, 1], [], []>} : vector<8x256xbf16>, vector<256x256xbf16>, vector<8x256xf32> -> vector<8x256xf32>
    %7 = arith.addf %3, %6 : vector<8x256xf32>
    %c0_6 = arith.constant 0 : index
    %c0_7 = arith.constant 0 : index
    %8 = vector.load %arg8[%c0_6, %c0_7] : memref<8x256xf32, #tpu.memory_space<vmem>>, vector<8x256xf32>
    tpu.vector_store %arg8[%c0_6, %c0_7], %7 {strides = array<i32>} : memref<8x256xf32, #tpu.memory_space<vmem>>, vector<8x256xf32>,
    %c0_i32_8 = arith.constant 0 : i32
    %9 = arith.cmpi eq, %arg2, %c0_i32_8 : i32
    %10 = arith.extui %9 : i1 to i32
    %c0_i32_9 = arith.constant 0 : i32
    %11 = arith.cmpi ne, %10, %c0_i32_9 : i32
    scf.if %11 {
      %c0_10 = arith.constant 0 : index
      %c0_11 = arith.constant 0 : index
      %12 = vector.load %arg8[%c0_10, %c0_11] : memref<8x256xf32, #tpu.memory_space<vmem>>, vector<8x256xf32>
      %c0_12 = arith.constant 0 : index
      %c0_13 = arith.constant 0 : index
      %13 = vector.load %arg5[%c0_12, %c0_13] : memref<1x256xf32, #tpu.memory_space<vmem>>, vector<1x256xf32>
      %14 = vector.broadcast %13 : vector<1x256xf32> to vector<8x256xf32>
      %15 = arith.mulf %12, %14 : vector<8x256xf32>
      %c0_14 = arith.constant 0 : index
      %c0_15 = arith.constant 0 : index
      %16 = vector.load %arg6[%c0_14, %c0_15] : memref<1x256xf32, #tpu.memory_space<vmem>>, vector<1x256xf32>
      %17 = vector.broadcast %16 : vector<1x256xf32> to vector<8x256xf32>
      %18 = arith.addf %15, %17 : vector<8x256xf32>
      %c0_16 = arith.constant 0 : index
      %c0_17 = arith.constant 0 : index
      %19 = vector.load %arg7[%c0_16, %c0_17] : memref<8x256xf32, #tpu.memory_space<vmem>>, vector<8x256xf32>
      tpu.vector_store %arg7[%c0_16, %c0_17], %18 {strides = array<i32>} : memref<8x256xf32, #tpu.memory_space<vmem>>, vector<8x256xf32>,
    } else {
    }
    return
  }
  func.func @transform_0(%arg0: i32, %arg1: i32, %arg2: i32) -> (i32, i32) {
    %c0_i32 = arith.constant 0 : i32
    return %arg0, %arg2 : i32, i32
  }
  func.func @transform_1(%arg0: i32, %arg1: i32, %arg2: i32) -> (i32, i32) {
    %c0_i32 = arith.constant 0 : i32
    return %arg2, %arg1 : i32, i32
  }
  func.func @transform_2(%arg0: i32, %arg1: i32, %arg2: i32) -> (i32, i32) {
    %c0_i32 = arith.constant 0 : i32
    %c0_i32_0 = arith.constant 0 : i32
    return %c0_i32, %arg1 : i32, i32
  }
  func.func @transform_3(%arg0: i32, %arg1: i32, %arg2: i32) -> (i32, i32) {
    %c0_i32 = arith.constant 0 : i32
    %c0_i32_0 = arith.constant 0 : i32
    return %c0_i32, %arg1 : i32, i32
  }
  func.func @transform_4(%arg0: i32, %arg1: i32, %arg2: i32) -> (i32, i32) {
    %c0_i32 = arith.constant 0 : i32
    return %arg0, %arg1 : i32, i32
  }
}

module attributes {stable_mosaic.version = 11 : i64} {
  func.func @_mm_bn_kernel(%arg0: i32, %arg1: i32, %arg2: i32, %arg3: memref<8x512xbf16, #tpu.memory_space<vmem>>, %arg4: memref<512x128xbf16, #tpu.memory_space<vmem>>, %arg5: memref<1x128xf32, #tpu.memory_space<vmem>>, %arg6: memref<1x128xf32, #tpu.memory_space<vmem>>, %arg7: memref<8x128xf32, #tpu.memory_space<vmem>>, %arg8: memref<8x128xf32, #tpu.memory_space<vmem>>) attributes {dimension_semantics = [#tpu.dimension_semantics<parallel>, #tpu.dimension_semantics<parallel>, #tpu.dimension_semantics<arbitrary>], iteration_bounds = array<i64: 1, 1, 1>, scalar_prefetch = 0 : i64, scratch_operands = 1 : i64, tpu.core_type = #tpu.core_type<tc>, window_params = [{transform_indices = @transform_0, window_bounds = array<i64: 8, 512>}, {transform_indices = @transform_1, window_bounds = array<i64: 512, 128>}, {transform_indices = @transform_2, window_bounds = array<i64: 1, 128>}, {transform_indices = @transform_3, window_bounds = array<i64: 1, 128>}, {transform_indices = @transform_4, window_bounds = array<i64: 8, 128>}]} {
    %c0_i32 = arith.constant 0 : i32
    %0 = arith.cmpi eq, %arg2, %c0_i32 : i32
    %1 = arith.extui %0 : i1 to i32
    %c0_i32_0 = arith.constant 0 : i32
    %2 = arith.cmpi ne, %1, %c0_i32_0 : i32
    scf.if %2 {
      %cst_10 = arith.constant 0.000000e+00 : f32
      %12 = vector.broadcast %cst_10 : f32 to vector<8x128xf32>
      %c0_11 = arith.constant 0 : index
      %c0_12 = arith.constant 0 : index
      %13 = vector.load %arg8[%c0_11, %c0_12] : memref<8x128xf32, #tpu.memory_space<vmem>>, vector<8x128xf32>
      tpu.vector_store %arg8[%c0_11, %c0_12], %12 {strides = array<i32>} : memref<8x128xf32, #tpu.memory_space<vmem>>, vector<8x128xf32>,
    } else {
    }
    %c0 = arith.constant 0 : index
    %c0_1 = arith.constant 0 : index
    %3 = vector.load %arg8[%c0, %c0_1] : memref<8x128xf32, #tpu.memory_space<vmem>>, vector<8x128xf32>
    %c0_2 = arith.constant 0 : index
    %c0_3 = arith.constant 0 : index
    %4 = vector.load %arg3[%c0_2, %c0_3] : memref<8x512xbf16, #tpu.memory_space<vmem>>, vector<8x512xbf16>
    %c0_4 = arith.constant 0 : index
    %c0_5 = arith.constant 0 : index
    %5 = vector.load %arg4[%c0_4, %c0_5] : memref<512x128xbf16, #tpu.memory_space<vmem>>, vector<512x128xbf16>
    %cst = arith.constant dense<0.000000e+00> : vector<8x128xf32>
    %6 = tpu.matmul %4, %5, %cst {dimension_numbers = #tpu.dot_dimension_numbers<[1], [0], [0], [1], [0, 0, 1, 1], [], []>} : vector<8x512xbf16>, vector<512x128xbf16>, vector<8x128xf32> -> vector<8x128xf32>
    %7 = arith.addf %3, %6 : vector<8x128xf32>
    %c0_6 = arith.constant 0 : index
    %c0_7 = arith.constant 0 : index
    %8 = vector.load %arg8[%c0_6, %c0_7] : memref<8x128xf32, #tpu.memory_space<vmem>>, vector<8x128xf32>
    tpu.vector_store %arg8[%c0_6, %c0_7], %7 {strides = array<i32>} : memref<8x128xf32, #tpu.memory_space<vmem>>, vector<8x128xf32>,
    %c0_i32_8 = arith.constant 0 : i32
    %9 = arith.cmpi eq, %arg2, %c0_i32_8 : i32
    %10 = arith.extui %9 : i1 to i32
    %c0_i32_9 = arith.constant 0 : i32
    %11 = arith.cmpi ne, %10, %c0_i32_9 : i32
    scf.if %11 {
      %c0_10 = arith.constant 0 : index
      %c0_11 = arith.constant 0 : index
      %12 = vector.load %arg8[%c0_10, %c0_11] : memref<8x128xf32, #tpu.memory_space<vmem>>, vector<8x128xf32>
      %c0_12 = arith.constant 0 : index
      %c0_13 = arith.constant 0 : index
      %13 = vector.load %arg5[%c0_12, %c0_13] : memref<1x128xf32, #tpu.memory_space<vmem>>, vector<1x128xf32>
      %14 = vector.broadcast %13 : vector<1x128xf32> to vector<8x128xf32>
      %15 = arith.mulf %12, %14 : vector<8x128xf32>
      %c0_14 = arith.constant 0 : index
      %c0_15 = arith.constant 0 : index
      %16 = vector.load %arg6[%c0_14, %c0_15] : memref<1x128xf32, #tpu.memory_space<vmem>>, vector<1x128xf32>
      %17 = vector.broadcast %16 : vector<1x128xf32> to vector<8x128xf32>
      %18 = arith.addf %15, %17 : vector<8x128xf32>
      %c0_16 = arith.constant 0 : index
      %c0_17 = arith.constant 0 : index
      %19 = vector.load %arg7[%c0_16, %c0_17] : memref<8x128xf32, #tpu.memory_space<vmem>>, vector<8x128xf32>
      tpu.vector_store %arg7[%c0_16, %c0_17], %18 {strides = array<i32>} : memref<8x128xf32, #tpu.memory_space<vmem>>, vector<8x128xf32>,
    } else {
    }
    return
  }
  func.func @transform_0(%arg0: i32, %arg1: i32, %arg2: i32) -> (i32, i32) {
    %c0_i32 = arith.constant 0 : i32
    return %arg0, %arg2 : i32, i32
  }
  func.func @transform_1(%arg0: i32, %arg1: i32, %arg2: i32) -> (i32, i32) {
    %c0_i32 = arith.constant 0 : i32
    return %arg2, %arg1 : i32, i32
  }
  func.func @transform_2(%arg0: i32, %arg1: i32, %arg2: i32) -> (i32, i32) {
    %c0_i32 = arith.constant 0 : i32
    %c0_i32_0 = arith.constant 0 : i32
    return %c0_i32, %arg1 : i32, i32
  }
  func.func @transform_3(%arg0: i32, %arg1: i32, %arg2: i32) -> (i32, i32) {
    %c0_i32 = arith.constant 0 : i32
    %c0_i32_0 = arith.constant 0 : i32
    return %c0_i32, %arg1 : i32, i32
  }
  func.func @transform_4(%arg0: i32, %arg1: i32, %arg2: i32) -> (i32, i32) {
    %c0_i32 = arith.constant 0 : i32
    return %arg0, %arg1 : i32, i32
  }
}

</mosaic_0001>

<bundles_post_ra>
// kernel: resnet_forward.16
= control target key start
LH: loop header
LB: loop body
LE: loop exit
PB: predicated region body
PF: predicated region fallthrough
CT: control target
= control target key end

     0   :  { %vm84_vm0 = vcmask 523264   ;;  %s259_s0 = inlined_call_operand.vmem [shape: f32[9,32,64], index: 0, kind: input, shape index: {}]   ;;  %s260_s1 = inlined_call_operand.vmem [shape: f32[32,64], index: 1, kind: output, shape index: {}]  }
   0x1   :  { %v8_v0 = vld [vmem:[%s259_s0] sm:$0xff]  ;;  %v9_v6 = vld [vmem:[%s259_s0 + $0x8] sm:$0xff]  ;;  %v10_v15 = vld [vmem:[%s259_s0 + $0x10] sm:$0xff] }
   0x2   :  { %v93_v1 = vld [vmem:[%s259_s0 + $0x20] sm:$0xff]  ;;  %v94_v7 = vld [vmem:[%s259_s0 + $0x28] sm:$0xff]  ;;  %v95_v16 = vld [vmem:[%s259_s0 + $0x30] sm:$0xff] }
   0x3   :  { %v97_v2 = vld [vmem:[%s259_s0 + $0x40] sm:$0xff]  ;;  %v17_v3 = vmax.f32 %v8_v0, %v93_v1  ;;  %v98_v8 = vld [vmem:[%s259_s0 + $0x48] sm:$0xff]  ;;  %v18_v10 = vmax.f32 %v9_v6, %v94_v7  ;;  %v99_v17 = vld [vmem:[%s259_s0 + $0x50] sm:$0xff]  ;;  %v19_v20 = vmax.f32 %v10_v15, %v95_v16 }
   0x4   :  { %v101_v4 = vld [vmem:[%s259_s0 + $0x60] sm:$0xff]  ;;  %v102_v13 = vld [vmem:[%s259_s0 + $0x68] sm:$0xff]  ;;  %v103_v24 = vld [vmem:[%s259_s0 + $0x70] sm:$0xff] }
   0x5   :  { %v26_v5 = vmax.f32 %v17_v3, %v97_v2  ;;  %v105_v9 = vld [vmem:[%s259_s0 + $0x80] sm:$0xff]  ;;  %v27_v14 = vmax.f32 %v18_v10, %v98_v8  ;;  %v106_v19 = vld [vmem:[%s259_s0 + $0x88] sm:$0xff]  ;;  %v28_v26 = vmax.f32 %v19_v20, %v99_v17  ;;  %v11_v27 = vld [vmem:[%s259_s0 + $0x18] sm:$0xff] }
   0x6   :  { %v109_v12 = vld [vmem:[%s259_s0 + $0xa0] sm:$0xff]  ;;  %v110_v23 = vld [vmem:[%s259_s0 + $0xa8] sm:$0xff]  ;;  %v96_v28 = vld [vmem:[%s259_s0 + $0x38] sm:$0xff] }
   0x7   :  { %v35_v11 = vmax.f32 %v26_v5, %v101_v4  ;;  %v113_v21 = vld [vmem:[%s259_s0 + $0xc0] sm:$0xff]  ;;  %v36_v22 = vmax.f32 %v27_v14, %v102_v13  ;;  %v100_v29 = vld [vmem:[%s259_s0 + $0x58] sm:$0xff]  ;;  %v107_v32 = vld [vmem:[%s259_s0 + $0x90] sm:$0xff]  ;;  %v20_v33 = vmax.f32 %v11_v27, %v96_v28  ;;  %v37_v36 = vmax.f32 %v28_v26, %v103_v24 }
   0x8   :  { %v117_v30 = vld [vmem:[%s259_s0 + $0xe0] sm:$0xff]  ;;  %v114_v35 = vld [vmem:[%s259_s0 + $0xc8] sm:$0xff]  ;;  %v104_v37 = vld [vmem:[%s259_s0 + $0x78] sm:$0xff] }
   0x9   :  { %v44_v18 = vmax.f32 %v35_v11, %v105_v9  ;;  %v45_v31 = vmax.f32 %v36_v22, %v106_v19  ;;  %v121_v38 = vld [vmem:[%s259_s0 + $0x100] sm:$0xff]  ;;  %v111_v40 = vld [vmem:[%s259_s0 + $0xb0] sm:$0xff]  ;;  %v29_v41 = vmax.f32 %v20_v33, %v100_v29  ;;  %v118_v43 = vld [vmem:[%s259_s0 + $0xe8] sm:$0xff]  ;;  %v46_v44 = vmax.f32 %v37_v36, %v107_v32 }
   0xa   :  { %v108_v45 = vld [vmem:[%s259_s0 + $0x98] sm:$0xff]  ;;  %v115_v47 = vld [vmem:[%s259_s0 + $0xd0] sm:$0xff]  ;;  %v122_v50 = vld [vmem:[%s259_s0 + $0x108] sm:$0xff] }
   0xb   :  { %v53_v25 = vmax.f32 %v44_v18, %v109_v12  ;;  %v54_v39 = vmax.f32 %v45_v31, %v110_v23  ;;  %v38_v48 = vmax.f32 %v29_v41, %v104_v37  ;;  %v55_v51 = vmax.f32 %v46_v44, %v111_v40  ;;  %v112_v52 = vld [vmem:[%s259_s0 + $0xb8] sm:$0xff]  ;;  %v119_v54 = vld [vmem:[%s259_s0 + $0xf0] sm:$0xff] }
   0xc   :  { %v116_v57 = vld [vmem:[%s259_s0 + $0xd8] sm:$0xff]  ;;  %v123_v59 = vld [vmem:[%s259_s0 + $0x110] sm:$0xff] }
   0xd   :  { %v62_v34 = vmax.f32 %v53_v25, %v113_v21  ;;  %v63_v46 = vmax.f32 %v54_v39, %v114_v35  ;;  %v47_v55 = vmax.f32 %v38_v48, %v108_v45  ;;  %v64_v56 = vmax.f32 %v55_v51, %v115_v47  ;;  %v120_v62 = vld [vmem:[%s259_s0 + $0xf8] sm:$0xff] }
   0xe   :  { %v124_v1 = vld [vmem:[%s259_s0 + $0x118] sm:$0xff] }
   0xf   :  { %v71_v42 = vmax.f32 %v62_v34, %v117_v30  ;;  %v72_v53 = vmax.f32 %v63_v46, %v118_v43  ;;  %v56_v60 = vmax.f32 %v47_v55, %v112_v52  ;;  %v73_v61 = vmax.f32 %v64_v56, %v119_v54 }
  0x11   :  { %v80_v49 = vmax.f32 %v71_v42, %v121_v38  ;;  %v81_v58 = vmax.f32 %v72_v53, %v122_v50  ;;  %v65_v63 = vmax.f32 %v56_v60, %v116_v57  ;;  %v82_v0 = vmax.f32 %v73_v61, %v123_v59 }
  0x13   :  { %85 = vst.msk [vmem:[%s260_s1] sm:$0xff] %vm84_vm0, %v80_v49  ;;  %v74_v2 = vmax.f32 %v65_v63, %v120_v62 }
  0x14   :  { %86 = vst.msk [vmem:[%s260_s1 + $0x8] sm:$0xff] %vm84_vm0, %v81_v58 }
  0x15   :  { %87 = vst.msk [vmem:[%s260_s1 + $0x10] sm:$0xff] %vm84_vm0, %v82_v0  ;;  %v83_v3 = vmax.f32 %v74_v2, %v124_v1 }
  0x17   :  { %88 = vst.msk [vmem:[%s260_s1 + $0x18] sm:$0xff] %vm84_vm0, %v83_v3 }

// kernel: resnet_forward.15
= control target key start
LH: loop header
LB: loop body
LE: loop exit
PB: predicated region body
PF: predicated region fallthrough
CT: control target
= control target key end

     0   :  { %9 = vsyncpa [#allocation4], 0  ;;  %s726_s18 = smov [#allocation3]   ;;  %s727_s20 = smov 64   ;;  %s943_s0 = inlined_call_operand.vmem [shape: bf16[128,256], index: 0, kind: input, shape index: {}]   ;;  %s944_s1 = inlined_call_operand.hbm [shape: bf16[256,128], index: 1, kind: input, shape index: {}]   ;;  %s945_s2 = inlined_call_operand.vmem [shape: f32[1,128], index: 2, kind: input, shape index: {}]   ;;  %s946_s3 = inlined_call_operand.vmem [shape: f32[1,128], index: 3, kind: input, shape index: {}]   ;;  %s947_s4 = inlined_call_operand.vmem [shape: f32[128,128], index: 4, kind: output, shape index: {}]  }
   0x1   :  { %s16_s17 = sshll.u32 %s944_s1, 4  ;;  %s18_s19 = sshll.u32 %s726_s18, 4  ;;  %s17_s17 = int_to_ptr.hbm [resolvable:$true] %s16_s17  ;;  %s19_s19 = int_to_ptr.vmem [resolvable:$true] %s18_s19 }
   0x2   :  { %s728_s21 = smov 4  }
   0x3   :  { %24 = dma.hbm_to_vmem [thread:$0]  %s17_s17, 2048, %s19_s19, [#allocation4], %s727_s20, %s727_s20, %s728_s21  }
   0x4   :  { %724 = dma.done.wait [#allocation4], 2048  }
   0x5   :  { %725 = vsyncadd [#allocation4], 4294965248  ;;  %v670_v0 = vld [vmem:[#allocation3 + $0x38] sm:$0xff]  ;;  %v669_v2 = vld [vmem:[#allocation3 + $0x30] sm:$0xff] }
   0x6   :  { %v678_v1 = vld [vmem:[#allocation3 + $0x78] sm:$0xff]  ;;  %293 = vmatpush.bf16.msra.mxu0 %v670_v0  ;;  %679 = vmatpush.bf16.msra.mxu2 %v670_v0  ;;  %v677_v3 = vld [vmem:[#allocation3 + $0x70] sm:$0xff]  ;;  %v668_v4 = vld [vmem:[#allocation3 + $0x28] sm:$0xff] }
   0x7   :  { %342 = vmatpush.bf16.msra.mxu1 %v678_v1  ;;  %687 = vmatpush.bf16.msra.mxu3 %v678_v1  ;;  %v676_v5 = vld [vmem:[#allocation3 + $0x68] sm:$0xff]  ;;  %v667_v6 = vld [vmem:[#allocation3 + $0x20] sm:$0xff]  ;;  %v666_v8 = vld [vmem:[#allocation3 + $0x18] sm:$0xff] }
   0x8   :  { %v675_v7 = vld [vmem:[#allocation3 + $0x60] sm:$0xff]  ;;  %v674_v9 = vld [vmem:[#allocation3 + $0x58] sm:$0xff]  ;;  %v665_v10 = vld [vmem:[#allocation3 + $0x10] sm:$0xff] }
   0x9   :  { %v673_v11 = vld [vmem:[#allocation3 + $0x50] sm:$0xff]  ;;  %v664_v12 = vld [vmem:[#allocation3 + $0x8] sm:$0xff]  ;;  %v663_v14 = vld [vmem:[#allocation3] sm:$0xff] }
   0xa   :  { %294 = vmatpush.bf16.msra.mxu0 %v669_v2  ;;  %680 = vmatpush.bf16.msra.mxu2 %v669_v2  ;;  %v672_v13 = vld [vmem:[#allocation3 + $0x48] sm:$0xff]  ;;  %v671_v15 = vld [vmem:[#allocation3 + $0x40] sm:$0xff]  ;;  %v529_v28 = vld [vmem:[%s943_s0 + $0x10] sm:$0xf] }
   0xb   :  { %343 = vmatpush.bf16.msra.mxu1 %v677_v3  ;;  %688 = vmatpush.bf16.msra.mxu3 %v677_v3  ;;  %v521_v16 = vld [vmem:[%s943_s0] sm:$0xf]  ;;  %v648_v17 = vld [vmem:[%s943_s0 + $0x4] sm:$0xf0]  ;;  %v647_v20 = vld [vmem:[%s943_s0 + $0x4] sm:$0xf] }
   0xc   :  { %v553_v18 = vld [vmem:[%s943_s0 + $0x40] sm:$0xf]  ;;  %v656_v19 = vld [vmem:[%s943_s0 + $0x44] sm:$0xf0]  ;;  %v523_v21 = vld [vmem:[%s943_s0 + $0x8] sm:$0xf0]  ;;  %v522_v24 = vor.u32 %v648_v17, %v521_v16 }
   0xd   :  { %v655_v22 = vld [vmem:[%s943_s0 + $0x44] sm:$0xf]  ;;  %v555_v23 = vld [vmem:[%s943_s0 + $0x48] sm:$0xf0]  ;;  %v554_v25 = vor.u32 %v656_v19, %v553_v18  ;;  %v526_v26 = vor.u32 %v647_v20, %v523_v21  ;;  %v650_v29 = vld [vmem:[%s943_s0 + $0x14] sm:$0xf0] }
   0xe   :  { %295 = vmatpush.bf16.msra.mxu0 %v668_v4  ;;  %681 = vmatpush.bf16.msra.mxu2 %v668_v4  ;;  %v558_v27 = vor.u32 %v655_v22, %v555_v23  ;;  %v561_v30 = vld [vmem:[%s943_s0 + $0x50] sm:$0xf]  ;;  %v658_v31 = vld [vmem:[%s943_s0 + $0x54] sm:$0xf0]  ;;  %v649_v32 = vld [vmem:[%s943_s0 + $0x14] sm:$0xf]  ;;  %v530_v36 = vor.u32 %v650_v29, %v529_v28 }
   0xf   :  { %344 = vmatpush.bf16.msra.mxu1 %v676_v5  ;;  %689 = vmatpush.bf16.msra.mxu3 %v676_v5  ;;  %v531_v33 = vld [vmem:[%s943_s0 + $0x18] sm:$0xf0]  ;;  %v657_v34 = vld [vmem:[%s943_s0 + $0x54] sm:$0xf]  ;;  %v562_v37 = vor.u32 %v658_v31, %v561_v30  ;;  %v537_v40 = vld [vmem:[%s943_s0 + $0x20] sm:$0xf] }
  0x10   :  { %v563_v35 = vld [vmem:[%s943_s0 + $0x58] sm:$0xf0]  ;;  %v534_v38 = vor.u32 %v649_v32, %v531_v33  ;;  %v652_v41 = vld [vmem:[%s943_s0 + $0x24] sm:$0xf0]  ;;  %v569_v42 = vld [vmem:[%s943_s0 + $0x60] sm:$0xf] }
  0x11   :  { %v566_v39 = vor.u32 %v657_v34, %v563_v35  ;;  %v660_v43 = vld [vmem:[%s943_s0 + $0x64] sm:$0xf0]  ;;  %v651_v44 = vld [vmem:[%s943_s0 + $0x24] sm:$0xf]  ;;  %v539_v45 = vld [vmem:[%s943_s0 + $0x28] sm:$0xf0]  ;;  %v538_v48 = vor.u32 %v652_v41, %v537_v40 }
  0x12   :  { %296 = vmatpush.bf16.msra.mxu0 %v667_v6  ;;  %682 = vmatpush.bf16.msra.mxu2 %v667_v6  ;;  %v659_v46 = vld [vmem:[%s943_s0 + $0x64] sm:$0xf]  ;;  %v571_v47 = vld [vmem:[%s943_s0 + $0x68] sm:$0xf0]  ;;  %v570_v49 = vor.u32 %v660_v43, %v569_v42  ;;  %v542_v50 = vor.u32 %v651_v44, %v539_v45  ;;  %v545_v52 = vld [vmem:[%s943_s0 + $0x30] sm:$0xf] }
  0x13   :  { %345 = vmatpush.bf16.msra.mxu1 %v675_v7  ;;  %690 = vmatpush.bf16.msra.mxu3 %v675_v7  ;;  %v574_v51 = vor.u32 %v659_v46, %v571_v47  ;;  %v654_v53 = vld [vmem:[%s943_s0 + $0x34] sm:$0xf0]  ;;  %v577_v54 = vld [vmem:[%s943_s0 + $0x70] sm:$0xf]  ;;  %v653_v56 = vld [vmem:[%s943_s0 + $0x34] sm:$0xf] }
  0x14   :  { %v662_v55 = vld [vmem:[%s943_s0 + $0x74] sm:$0xf0]  ;;  %v547_v57 = vld [vmem:[%s943_s0 + $0x38] sm:$0xf0]  ;;  %v661_v58 = vld [vmem:[%s943_s0 + $0x74] sm:$0xf]  ;;  %v546_v60 = vor.u32 %v654_v53, %v545_v52 }
  0x15   :  { %v579_v59 = vld [vmem:[%s943_s0 + $0x78] sm:$0xf0]  ;;  %v578_v61 = vor.u32 %v662_v55, %v577_v54  ;;  %v550_v62 = vor.u32 %v653_v56, %v547_v57  ;;  %v856_v1 = vld [vmem:[%s945_s2] ss:$0 sm:$0xff] }
  0x16   :  { %297 = vmatpush.bf16.msra.mxu0 %v666_v8  ;;  %683 = vmatpush.bf16.msra.mxu2 %v666_v8  ;;  %v582_v63 = vor.u32 %v661_v58, %v579_v59  ;;  %v861_v4 = vld [vmem:[%s946_s3] ss:$0 sm:$0xff] }
  0x17   :  { %346 = vmatpush.bf16.msra.mxu1 %v674_v9  ;;  %691 = vmatpush.bf16.msra.mxu3 %v674_v9 }
  0x1a   :  { %298 = vmatpush.bf16.msra.mxu0 %v665_v10  ;;  %684 = vmatpush.bf16.msra.mxu2 %v665_v10 }
  0x1b   :  { %347 = vmatpush.bf16.msra.mxu1 %v673_v11  ;;  %692 = vmatpush.bf16.msra.mxu3 %v673_v11 }
  0x1e   :  { %299 = vmatpush.bf16.msra.mxu0 %v664_v12  ;;  %685 = vmatpush.bf16.msra.mxu2 %v664_v12 }
  0x1f   :  { %348 = vmatpush.bf16.msra.mxu1 %v672_v13  ;;  %693 = vmatpush.bf16.msra.mxu3 %v672_v13 }
  0x22   :  { %300 = vmatpush.bf16.msra.mxu0 %v663_v14  ;;  %686 = vmatpush.bf16.msra.mxu2 %v663_v14 }
  0x23   :  { %349 = vmatpush.bf16.msra.mxu1 %v671_v15  ;;  %694 = vmatpush.bf16.msra.mxu3 %v671_v15 }
  0x25   :  { %301 = vmatmul.bf16.vlgmr.msra.gmra.mxu0 %v522_v24  ;;  %321 = vmatmul.bf16.vlgmr.msra.gmra.mxu2 %v554_v25 }
  0x26   :  { %350 = vmatmul.bf16.vlgmr.msra.gmra.mxu1 %v526_v26  ;;  %370 = vmatmul.bf16.vlgmr.msra.gmra.mxu3 %v558_v27 }
  0x35   :  { %306 = vmatmul.bf16.gmra.mxu0 %v530_v36  ;;  %326 = vmatmul.bf16.gmra.mxu2 %v562_v37 }
  0x36   :  { %355 = vmatmul.bf16.gmra.mxu1 %v534_v38  ;;  %375 = vmatmul.bf16.gmra.mxu3 %v566_v39 }
  0x45   :  { %311 = vmatmul.bf16.gmra.mxu0 %v538_v48  ;;  %331 = vmatmul.bf16.gmra.mxu2 %v570_v49 }
  0x46   :  { %360 = vmatmul.bf16.gmra.mxu1 %v542_v50  ;;  %380 = vmatmul.bf16.gmra.mxu3 %v574_v51 }
  0x55   :  { %316 = vmatmul.bf16.gmra.mxu0 %v546_v60  ;;  %336 = vmatmul.bf16.gmra.mxu2 %v578_v61 }
  0x56   :  { %365 = vmatmul.bf16.gmra.mxu1 %v550_v62  ;;  %385 = vmatmul.bf16.gmra.mxu3 %v582_v63 }
  0xa2   :  { %v302_v0 = vpop.f32.mrf.mxu0 }
  0xa3   :  { %v351_v2 = vpop.f32.mrf.mxu1 }
  0xa4   :  { %v352_v3 = vadd.f32 %v351_v2, %v302_v0 }
  0xa6   :  { %v446_v5 = vmul.f32 %v856_v1, %v352_v3 }
  0xa8   :  { %v466_v6 = vadd.f32 %v861_v4, %v446_v5  ;;  %v322_v7 = vpop.f32.mrf.mxu2 }
  0xa9   :  { %v371_v8 = vpop.f32.mrf.mxu3 }
  0xaa   :  { %v482_v9 = vmax.f32 %v466_v6, 0.0  ;;  %v372_v10 = vadd.f32 %v371_v8, %v322_v7  ;;  %v304_v11 = vpop.f32.mrf.mxu0 }
  0xab   :  { %v353_v12 = vpop.f32.mrf.mxu1 }
  0xac   :  { %498 = vst [vmem:[%s947_s4] sm:$0xff] %v482_v9  ;;  %v454_v13 = vmul.f32 %v856_v1, %v372_v10  ;;  %v354_v14 = vadd.f32 %v353_v12, %v304_v11 }
  0xae   :  { %v474_v15 = vadd.f32 %v861_v4, %v454_v13  ;;  %v447_v16 = vmul.f32 %v856_v1, %v354_v14 }
  0xb0   :  { %v490_v17 = vmax.f32 %v474_v15, 0.0  ;;  %v467_v18 = vadd.f32 %v861_v4, %v447_v16  ;;  %v324_v19 = vpop.f32.mrf.mxu2 }
  0xb1   :  { %v373_v20 = vpop.f32.mrf.mxu3 }
  0xb2   :  { %506 = vst [vmem:[%s947_s4 + $0x40] sm:$0xff] %v490_v17  ;;  %v483_v21 = vmax.f32 %v467_v18, 0.0  ;;  %v374_v22 = vadd.f32 %v373_v20, %v324_v19  ;;  %v307_v23 = vpop.f32.mrf.mxu0 }
  0xb3   :  { %v356_v24 = vpop.f32.mrf.mxu1 }
  0xb4   :  { %499 = vst [vmem:[%s947_s4 + $0x8] sm:$0xff] %v483_v21  ;;  %v455_v25 = vmul.f32 %v856_v1, %v374_v22  ;;  %v357_v26 = vadd.f32 %v356_v24, %v307_v23 }
  0xb6   :  { %v475_v27 = vadd.f32 %v861_v4, %v455_v25  ;;  %v448_v28 = vmul.f32 %v856_v1, %v357_v26 }
  0xb8   :  { %v491_v29 = vmax.f32 %v475_v27, 0.0  ;;  %v468_v30 = vadd.f32 %v861_v4, %v448_v28  ;;  %v327_v31 = vpop.f32.mrf.mxu2 }
  0xb9   :  { %v376_v32 = vpop.f32.mrf.mxu3 }
  0xba   :  { %507 = vst [vmem:[%s947_s4 + $0x48] sm:$0xff] %v491_v29  ;;  %v484_v33 = vmax.f32 %v468_v30, 0.0  ;;  %v377_v34 = vadd.f32 %v376_v32, %v327_v31  ;;  %v309_v35 = vpop.f32.mrf.mxu0 }
  0xbb   :  { %v358_v36 = vpop.f32.mrf.mxu1 }
  0xbc   :  { %500 = vst [vmem:[%s947_s4 + $0x10] sm:$0xff] %v484_v33  ;;  %v456_v37 = vmul.f32 %v856_v1, %v377_v34  ;;  %v359_v38 = vadd.f32 %v358_v36, %v309_v35 }
  0xbe   :  { %v476_v39 = vadd.f32 %v861_v4, %v456_v37  ;;  %v449_v40 = vmul.f32 %v856_v1, %v359_v38 }
  0xc0   :  { %v492_v41 = vmax.f32 %v476_v39, 0.0  ;;  %v469_v42 = vadd.f32 %v861_v4, %v449_v40  ;;  %v329_v43 = vpop.f32.mrf.mxu2 }
  0xc1   :  { %v378_v44 = vpop.f32.mrf.mxu3 }
  0xc2   :  { %508 = vst [vmem:[%s947_s4 + $0x50] sm:$0xff] %v492_v41  ;;  %v485_v45 = vmax.f32 %v469_v42, 0.0  ;;  %v379_v46 = vadd.f32 %v378_v44, %v329_v43  ;;  %v312_v47 = vpop.f32.mrf.mxu0 }
  0xc3   :  { %v361_v48 = vpop.f32.mrf.mxu1 }
  0xc4   :  { %501 = vst [vmem:[%s947_s4 + $0x18] sm:$0xff] %v485_v45  ;;  %v457_v49 = vmul.f32 %v856_v1, %v379_v46  ;;  %v362_v50 = vadd.f32 %v361_v48, %v312_v47 }
  0xc6   :  { %v477_v51 = vadd.f32 %v861_v4, %v457_v49  ;;  %v450_v52 = vmul.f32 %v856_v1, %v362_v50 }
  0xc8   :  { %v493_v53 = vmax.f32 %v477_v51, 0.0  ;;  %v470_v54 = vadd.f32 %v861_v4, %v450_v52  ;;  %v332_v55 = vpop.f32.mrf.mxu2 }
  0xc9   :  { %v381_v56 = vpop.f32.mrf.mxu3 }
  0xca   :  { %509 = vst [vmem:[%s947_s4 + $0x58] sm:$0xff] %v493_v53  ;;  %v486_v57 = vmax.f32 %v470_v54, 0.0  ;;  %v382_v58 = vadd.f32 %v381_v56, %v332_v55  ;;  %v314_v59 = vpop.f32.mrf.mxu0 }
  0xcb   :  { %v363_v60 = vpop.f32.mrf.mxu1 }
  0xcc   :  { %502 = vst [vmem:[%s947_s4 + $0x20] sm:$0xff] %v486_v57  ;;  %v458_v61 = vmul.f32 %v856_v1, %v382_v58  ;;  %v364_v62 = vadd.f32 %v363_v60, %v314_v59 }
  0xce   :  { %v478_v63 = vadd.f32 %v861_v4, %v458_v61  ;;  %v451_v0 = vmul.f32 %v856_v1, %v364_v62 }
  0xd0   :  { %v494_v2 = vmax.f32 %v478_v63, 0.0  ;;  %v471_v3 = vadd.f32 %v861_v4, %v451_v0  ;;  %v334_v5 = vpop.f32.mrf.mxu2 }
  0xd1   :  { %v383_v6 = vpop.f32.mrf.mxu3 }
  0xd2   :  { %510 = vst [vmem:[%s947_s4 + $0x60] sm:$0xff] %v494_v2  ;;  %v487_v7 = vmax.f32 %v471_v3, 0.0  ;;  %v384_v8 = vadd.f32 %v383_v6, %v334_v5  ;;  %v317_v9 = vpop.f32.mrf.mxu0 }
  0xd3   :  { %v366_v10 = vpop.f32.mrf.mxu1 }
  0xd4   :  { %503 = vst [vmem:[%s947_s4 + $0x28] sm:$0xff] %v487_v7  ;;  %v459_v11 = vmul.f32 %v856_v1, %v384_v8  ;;  %v367_v12 = vadd.f32 %v366_v10, %v317_v9 }
  0xd6   :  { %v479_v13 = vadd.f32 %v861_v4, %v459_v11  ;;  %v452_v14 = vmul.f32 %v856_v1, %v367_v12 }
  0xd8   :  { %v495_v15 = vmax.f32 %v479_v13, 0.0  ;;  %v472_v16 = vadd.f32 %v861_v4, %v452_v14  ;;  %v337_v17 = vpop.f32.mrf.mxu2 }
  0xd9   :  { %v386_v18 = vpop.f32.mrf.mxu3 }
  0xda   :  { %511 = vst [vmem:[%s947_s4 + $0x68] sm:$0xff] %v495_v15  ;;  %v488_v19 = vmax.f32 %v472_v16, 0.0  ;;  %v387_v20 = vadd.f32 %v386_v18, %v337_v17  ;;  %v319_v21 = vpop.f32.mrf.mxu0 }
  0xdb   :  { %v368_v22 = vpop.f32.mrf.mxu1 }
  0xdc   :  { %504 = vst [vmem:[%s947_s4 + $0x30] sm:$0xff] %v488_v19  ;;  %v460_v23 = vmul.f32 %v856_v1, %v387_v20  ;;  %v369_v24 = vadd.f32 %v368_v22, %v319_v21 }
  0xde   :  { %v480_v25 = vadd.f32 %v861_v4, %v460_v23  ;;  %v453_v26 = vmul.f32 %v856_v1, %v369_v24 }
  0xe0   :  { %v496_v27 = vmax.f32 %v480_v25, 0.0  ;;  %v473_v28 = vadd.f32 %v861_v4, %v453_v26  ;;  %v339_v29 = vpop.f32.mrf.mxu2 }
  0xe1   :  { %v388_v30 = vpop.f32.mrf.mxu3 }
  0xe2   :  { %512 = vst [vmem:[%s947_s4 + $0x70] sm:$0xff] %v496_v27  ;;  %v489_v31 = vmax.f32 %v473_v28, 0.0  ;;  %v389_v32 = vadd.f32 %v388_v30, %v339_v29 }
  0xe4   :  { %505 = vst [vmem:[%s947_s4 + $0x38] sm:$0xff] %v489_v31  ;;  %v461_v33 = vmul.f32 %v856_v1, %v389_v32 }
  0xe6   :  { %v481_v34 = vadd.f32 %v861_v4, %v461_v33 }
  0xe8   :  { %v497_v35 = vmax.f32 %v481_v34, 0.0 }
  0xea   :  { %513 = vst [vmem:[%s947_s4 + $0x78] sm:$0xff] %v497_v35 }
  0xeb   :  { %518 = vsyncpa [#allocation4], 1 }

// kernel: resnet_forward.17
= control target key start
LH: loop header
LB: loop body
LE: loop exit
PB: predicated region body
PF: predicated region fallthrough
CT: control target
= control target key end

     0   :  { %9 = vsyncpa [#allocation5], 0  ;;  %s1128_s0 = inlined_call_operand.vmem [shape: bf16[32,640], index: 0, kind: input, shape index: {}]   ;;  %s1129_s1 = inlined_call_operand.hbm [shape: bf16[640,128], index: 1, kind: input, shape index: {}]   ;;  %s1130_s2 = inlined_call_operand.hbm [shape: f32[1,128], index: 2, kind: input, shape index: {}]   ;;  %s1131_s3 = inlined_call_operand.hbm [shape: f32[1,128], index: 3, kind: input, shape index: {}]   ;;  %s1132_s4 = inlined_call_operand.vmem [shape: f32[32,128], index: 4, kind: output, shape index: {}]  }
   0x1   :  { %11 = vsyncpa [#allocation5 + $0x1], 0 }
   0x2   :  { %12 = vsyncpa [#allocation7], 0  ;;  %s984_s15 = smov 0   ;;  %s986_s16 = smov 0  }
   0x3   :  { %s988_s17 = smov 0   ;;  %s990_s18 = smov 0  }
   0x4   :  { %s992_s19 = smov 0   ;;  %s994_s20 = smov 0  }
   0x5 LB: > { %s654_s21 = sadd.s32 4294967295, %s952_s20   ;;  %s30_s22 = sadd.s32 1, %s948_s19  ;;  %s952_s20 = sphi %s994_s20, %s18_s20   ;;  %s948_s19 = sphi %s992_s19, %s1141_s19   ;;  %s944_s18 = sphi %s990_s18, %s1140_s18   ;;  %s940_s17 = sphi %s988_s17, %s1139_s17   ;;  %s936_s16 = sphi %s986_s16, %s1138_s16   ;;  %s932_s15 = sphi %s984_s15, %s1137_s15  }
   0x6   : > { %p31_p0 = scmp.ge.s32.totalorder %s30_s22, 5  ;;  %s46_s23 = sadd.s32 1, %s940_s17 }
   0x7   : > { %p53_p1 = scmp.ne.s32.totalorder %s940_s17, %s936_s16  ;;  %p54_p2 = scmp.eq.s32.totalorder %s952_s20, 0 }
   0x8   : > { %s1143_s22 = smov (%p31_p0, %s30_s22), 0  ;;  %p87_p4 = scmp.ne.s32.totalorder %s936_s16, %s932_s15 }
   0x9   : > { %p1020_p3 = por %p54_p2, %p53_p1  ;;  %s42_s25 = ssub.s32 %s948_s19, %s1143_s22 }
   0xa   : > { %p1027_p5 = scmp.eq.s32.totalorder %s654_s21, 0  ;;  %p44_p6 = scmp.eq.s32.totalorder %s42_s25, 0 }
   0xb   : > { %p655_p7 = scmp.ge.s32.totalorder %s952_s20, 1  ;;  %p178_p9 = scmp.lt.s32.totalorder %s952_s20, 6 }
   0xc   : > { %p1034_p8 = por %p1027_p5, %p87_p4  ;;  %s191_s6 = sshll.u32 %s1130_s2, 4  ;;  %s192_s6 = int_to_ptr.hbm [resolvable:$true] %s191_s6 }
   0xd   : > { %s1040_s28 = scalar_select %p44_p6, %s940_s17, %s46_s23  }
   0xe   : > { %p1042_p10 = pnand %p655_p7, %p178_p9  ;;  %s954_s7 = smov [#allocation6]  }
   0xf   : > { %s193_s8 = sshll.u32 %s954_s7, 4  ;;  %s204_s11 = sshll.u32 %s1131_s3, 4  ;;  %s194_s8 = int_to_ptr.vmem [resolvable:$true] %s193_s8  ;;  %s205_s11 = int_to_ptr.hbm [resolvable:$true] %s204_s11 }
  0x10   : > { %p744_p11 = pneg %p1042_p10  ;;  %s955_s12 = smov [#allocation8]  }
  0x11   : > { %s206_s13 = sshll.u32 %s955_s12, 4  ;;  %p658_p13 = scmp.ge.s32.totalorder %s952_s20, 5  ;;  %s207_s13 = int_to_ptr.vmem [resolvable:$true] %s206_s13 }
  0x12   : > { %p745_p12 = pnand %p744_p11, %p1027_p5 }
  0x13   : > { %213 = sbr.rel (%p658_p13) target bundleno = 38 (0x26), region = 24 }
  0x14   : > { %747 = dma.hbm_to_vmem [thread:$0]  (!%p745_p12), %s192_s6, 16, %s194_s8, [#allocation7]  }
  0x15   : > { %750 = dma.hbm_to_vmem [thread:$0]  (!%p745_p12), %s205_s11, 16, %s207_s13, [#allocation7]  }
  0x18   : > { %216 = sbr.rel (!%p1020_p3) target bundleno = 32 (0x20), region = 28  ;;  %s218_s14 = sand.u32 (%p1020_p3), 1, %s940_s17  }
  0x19   : > { %s660_s15 = sshll.u32 (%p1020_p3), %s948_s19, 2  ;;  %s659_s21 = sshll.u32 (%p1020_p3), %s218_s14, 4 }
  0x1a   : > { %s225_s30 = scalar_lea.vmem (%p1020_p3), %s1128_s0, %s660_s15  ;;  %s220_s5 = scalar_lea.vmem (%p1020_p3), [#allocation3], %s659_s21 }
  0x1b   : > { %v242_v0 = vld [vmem:[%s225_s30] sm:$0xf] (%p1020_p3)  ;;  %v244_v1 = vld [vmem:[%s225_s30 + $0x14] sm:$0xf] (%p1020_p3)  ;;  %v246_v2 = vld [vmem:[%s225_s30 + $0x28] sm:$0xf] (%p1020_p3) }
  0x1c   : > { %243 = vst [vmem:[%s220_s5] sm:$0xf] (%p1020_p3), %v242_v0  ;;  %v248_v3 = vld [vmem:[%s225_s30 + $0x3c] sm:$0xf] (%p1020_p3) }
  0x1d   : > { %245 = vst [vmem:[%s220_s5 + $0x4] sm:$0xf] %v244_v1 }
  0x1e   : > { %247 = vst [vmem:[%s220_s5 + $0x8] sm:$0xf] %v246_v2 }
  0x1f   : > { %249 = vst [vmem:[%s220_s5 + $0xc] sm:$0xf] %v248_v3 }
  0x20 PF: > { %s282_s6 = sand.u32 1, %s940_s17   ;;  %s715_s7 = sshll.u32 %s948_s19, 6 }
  0x21   : > { %s661_s8 = sshll.u32 %s282_s6, 6  ;;  %s292_s11 = scalar_lea.hbm %s1129_s1, %s715_s7 }
  0x22   : > { %s293_s12 = sshll.u32 %s292_s11, 4  ;;  %s286_s13 = scalar_lea.vmem [#allocation4], %s661_s8  ;;  %s294_s12 = int_to_ptr.hbm [resolvable:$true] %s293_s12 }
  0x23   : > { %s295_s14 = sshll.u32 %s286_s13, 4  ;;  %s283_s15 = scalar_lea.sflag [#allocation5], %s282_s6  ;;  %s296_s14 = int_to_ptr.vmem [resolvable:$true] %s295_s14 }
  0x24   : > { %s956_s21 = smov 64   ;;  %s957_s23 = smov 4  }
  0x25   : > { %738 = dma.hbm_to_vmem [thread:$0]  (%p1020_p3), %s294_s12, 1024, %s296_s14, %s283_s15, %s956_s21, %s956_s21, %s957_s23  }
  0x26 PF: > { %307 = sbr.rel (%p1042_p10) target bundleno = 242 (0xf2), region = 73  ;;  %s310_s25 = sand.u32 (!%p1042_p10), 1, %s936_s16  }
  0x27   : > { %s665_s30 = sshll.u32 (!%p1042_p10), %s310_s25, 4  ;;  %s666_s5 = sshll.u32 (!%p1042_p10), %s310_s25, 6 }
  0x28   : > { %s1074_s7 = scalar_lea.vmem (!%p1042_p10), [#allocation3], %s665_s30  ;;  %s317_s8 = scalar_lea.sflag (!%p1042_p10), [#allocation5], %s310_s25 }
  0x29   : > { %s1076_s9 = scalar_lea.vmem (!%p1042_p10), [#allocation4], %s666_s5 }
  0x2b   : > { %923 = dma.done.wait (%p1034_p8), %s317_s8, 1024  }
  0x2c   : > { %925 = vsyncadd (%p1034_p8), %s317_s8, 4294966272 }
  0x2d   : > { %927 = dma.done.wait (%p1027_p5), [#allocation7], 32  }
  0x2e   : > { %929 = vsyncadd (%p1027_p5), [#allocation7], 4294967264  ;;  %p669_p0 = scmp.ne.s32.totalorder %s944_s18, 0 }
  0x30   : > { %377 = sbr.rel (%p669_p0) target bundleno = 58 (0x3a), region = 93 }
  0x35   : > { %v958_v4 = vmov 0.0  }
  0x36   : > { %378 = vst [vmem:[#allocation2 + $0x10] sm:$0xff] %v958_v4 }
  0x37   : > { %379 = vst [vmem:[#allocation2] sm:$0xff] %v958_v4 }
  0x38   : > { %380 = vst [vmem:[#allocation2 + $0x18] sm:$0xff] %v958_v4 }
  0x39   : > { %381 = vst [vmem:[#allocation2 + $0x8] sm:$0xff] %v958_v4 }
  0x3a PF: > { %v725_v5 = vld [vmem:[%s1076_s9 + $0x38] sm:$0xff]  ;;  %v724_v6 = vld [vmem:[%s1076_s9 + $0x30] sm:$0xff]  ;;  %v723_v7 = vld [vmem:[%s1076_s9 + $0x28] sm:$0xff]  ;;  %p710_p1 = scmp.ne.s32.totalorder %s944_s18, 4 }
  0x3b   : > { %466 = vmatpush.bf16.msra.mxu0 %v725_v5  ;;  %726 = vmatpush.bf16.msra.mxu1 %v725_v5  ;;  %v722_v8 = vld [vmem:[%s1076_s9 + $0x20] sm:$0xff]  ;;  %v721_v9 = vld [vmem:[%s1076_s9 + $0x18] sm:$0xff]  ;;  %v720_v10 = vld [vmem:[%s1076_s9 + $0x10] sm:$0xff] }
  0x3c   : > { %v719_v11 = vld [vmem:[%s1076_s9 + $0x8] sm:$0xff]  ;;  %v718_v12 = vld [vmem:[%s1076_s9] sm:$0xff] }
  0x3d   : > { %v716_v13 = vld [vmem:[%s1074_s7] sm:$0xff]  ;;  %v717_v14 = vld [vmem:[%s1074_s7 + $0x8] sm:$0xff] }
  0x3e   : > { %v382_v15 = vld [vmem:[#allocation2 + $0x10] sm:$0xff]  ;;  %v383_v21 = vld [vmem:[#allocation2] sm:$0xff] }
  0x3f   : > { %467 = vmatpush.bf16.msra.mxu0 %v724_v6  ;;  %727 = vmatpush.bf16.msra.mxu1 %v724_v6  ;;  %v384_v16 = vld [vmem:[#allocation2 + $0x18] sm:$0xff] }
  0x40   : > { %v385_v22 = vld [vmem:[#allocation2 + $0x8] sm:$0xff] }
  0x43   : > { %468 = vmatpush.bf16.msra.mxu0 %v723_v7  ;;  %728 = vmatpush.bf16.msra.mxu1 %v723_v7 }
  0x47   : > { %469 = vmatpush.bf16.msra.mxu0 %v722_v8  ;;  %729 = vmatpush.bf16.msra.mxu1 %v722_v8 }
  0x4b   : > { %470 = vmatpush.bf16.msra.mxu0 %v721_v9  ;;  %730 = vmatpush.bf16.msra.mxu1 %v721_v9 }
  0x4f   : > { %471 = vmatpush.bf16.msra.mxu0 %v720_v10  ;;  %731 = vmatpush.bf16.msra.mxu1 %v720_v10 }
  0x53   : > { %472 = vmatpush.bf16.msra.mxu0 %v719_v11  ;;  %732 = vmatpush.bf16.msra.mxu1 %v719_v11 }
  0x57   : > { %473 = vmatpush.bf16.msra.mxu0 %v718_v12  ;;  %733 = vmatpush.bf16.msra.mxu1 %v718_v12 }
  0x5a   : > { %474 = vmatmul.bf16.vlgmr.msra.gmra.mxu0 %v716_v13  ;;  %479 = vmatmul.bf16.vlgmr.msra.gmra.mxu1 %v717_v14 }
  0xd7   : > { %v475_v17 = vpop.f32.mrf.mxu0  ;;  %v480_v18 = vpop.f32.mrf.mxu1 }
  0xd8   : > { %v485_v19 = vadd.f32 %v475_v17, %v382_v15  ;;  %v487_v20 = vadd.f32 %v480_v18, %v384_v16 }
  0xda   : > { %489 = vst [vmem:[#allocation2 + $0x10] sm:$0xff] %v485_v19 }
  0xdb   : > { %491 = vst [vmem:[#allocation2 + $0x18] sm:$0xff] %v487_v20 }
  0xdf   : > { %v477_v23 = vpop.f32.mrf.mxu0  ;;  %v482_v24 = vpop.f32.mrf.mxu1  ;;  %496 = sbr.rel (%p710_p1) target bundleno = 242 (0xf2), region = 97 }
  0xe0   : > { %v486_v25 = vadd.f32 %v477_v23, %v383_v21  ;;  %v488_v26 = vadd.f32 %v482_v24, %v385_v22 }
  0xe2   : > { %490 = vst [vmem:[#allocation2] sm:$0xff] %v486_v25 }
  0xe3   : > { %492 = vst [vmem:[#allocation2 + $0x8] sm:$0xff] %v488_v26 }
  0xe4   : > { %v497_v27 = vld [vmem:[#allocation2 + $0x10] sm:$0xff]  ;;  %v808_v28 = vld [vmem:[#allocation6] ss:$0 sm:$0xff]  ;;  %v809_v29 = vld [vmem:[#allocation8] ss:$0 sm:$0xff] }
  0xe5   : > { %v505_v31 = vmul.f32 %v808_v28, %v497_v27  ;;  %v499_v33 = vld [vmem:[#allocation2 + $0x18] sm:$0xff] }
  0xe6   : > { %v507_v35 = vmul.f32 %v808_v28, %v499_v33 }
  0xe7   : > { %v513_v37 = vadd.f32 %v809_v29, %v505_v31 }
  0xe8   : > { %v515_v39 = vadd.f32 %v809_v29, %v507_v35 }
  0xe9   : > { %v498_v30 = vld [vmem:[#allocation2] sm:$0xff]  ;;  %v517_v41 = vmax.f32 %v513_v37, 0.0 }
  0xea   : > { %v506_v32 = vmul.f32 %v808_v28, %v498_v30  ;;  %v500_v34 = vld [vmem:[#allocation2 + $0x8] sm:$0xff]  ;;  %v519_v43 = vmax.f32 %v515_v39, 0.0 }
  0xeb   : > { %v508_v36 = vmul.f32 %v808_v28, %v500_v34  ;;  %521 = vst [vmem:[%s1132_s4] sm:$0xff] %v517_v41 }
  0xec   : > { %v514_v38 = vadd.f32 %v809_v29, %v506_v32  ;;  %523 = vst [vmem:[%s1132_s4 + $0x10] sm:$0xff] %v519_v43 }
  0xed   : > { %v516_v40 = vadd.f32 %v809_v29, %v508_v36 }
  0xee   : > { %v518_v42 = vmax.f32 %v514_v38, 0.0 }
  0xef   : > { %v520_v44 = vmax.f32 %v516_v40, 0.0 }
  0xf0   : > { %522 = vst [vmem:[%s1132_s4 + $0x8] sm:$0xff] %v518_v42 }
  0xf1   : > { %524 = vst [vmem:[%s1132_s4 + $0x18] sm:$0xff] %v520_v44 }
  0xf2 PF: > { %s18_s20 = sadd.s32 1, %s952_s20   ;;  %s1137_s15 = smov %s936_s16 }
  0xf3   : > { %p15_p2 = scmp.ge.s32.totalorder %s18_s20, 7   ;;  %s1138_s16 = smov %s940_s17 }
  0xf4   : > { %s1139_s17 = smov %s1040_s28  ;;  %s1140_s18 = smov %s948_s19 }
  0xf5   : > { %s1141_s19 = smov %s1143_s22  ;;  %17 = sbr.rel (!%p15_p2) target bundleno = 5 (0x5), region = 143 }
  0xfa   :  { %553 = vsyncpa [#allocation5], 1 }
  0xfb   :  { %555 = vsyncpa [#allocation5 + $0x1], 1 }
  0xfc   :  { %556 = vsyncpa [#allocation7], 1 }

// kernel: resnet_forward.18
= control target key start
LH: loop header
LB: loop body
LE: loop exit
PB: predicated region body
PF: predicated region fallthrough
CT: control target
= control target key end

     0   :  { %10 = vsyncpa [#allocation5], 0  ;;  %s1232_s0 = inlined_call_operand.vmem [shape: bf16[32,640], index: 0, kind: input, shape index: {}]   ;;  %s1233_s1 = inlined_call_operand.hbm [shape: bf16[640,128], index: 1, kind: input, shape index: {}]   ;;  %s1234_s2 = inlined_call_operand.hbm [shape: f32[1,128], index: 2, kind: input, shape index: {}]   ;;  %s1235_s3 = inlined_call_operand.hbm [shape: f32[1,128], index: 3, kind: input, shape index: {}]   ;;  %s1236_s4 = inlined_call_operand.vmem [shape: f32[32,128], index: 4, kind: input, shape index: {}]   ;;  %s1237_s5 = inlined_call_operand.vmem [shape: f32[32,128], index: 5, kind: output, shape index: {}]  }
   0x1   :  { %12 = vsyncpa [#allocation5 + $0x1], 0 }
   0x2   :  { %13 = vsyncpa [#allocation7], 0  ;;  %s1076_s18 = smov 0   ;;  %s1078_s19 = smov 0  }
   0x3   :  { %s1080_s20 = smov 0   ;;  %s1082_s21 = smov 0  }
   0x4   :  { %s1084_s22 = smov 0   ;;  %s1086_s23 = smov 0  }
   0x5 LB: > { %s740_s24 = sadd.s32 4294967295, %s1039_s23   ;;  %s31_s25 = sadd.s32 1, %s1035_s22  ;;  %s1039_s23 = sphi %s1086_s23, %s19_s23   ;;  %s1035_s22 = sphi %s1084_s22, %s1246_s22   ;;  %s1031_s21 = sphi %s1082_s21, %s1245_s21   ;;  %s1027_s20 = sphi %s1080_s20, %s1244_s20   ;;  %s1023_s19 = sphi %s1078_s19, %s1243_s19   ;;  %s1019_s18 = sphi %s1076_s18, %s1242_s18  }
   0x6   : > { %p32_p0 = scmp.ge.s32.totalorder %s31_s25, 5  ;;  %s47_s26 = sadd.s32 1, %s1027_s20 }
   0x7   : > { %p54_p1 = scmp.ne.s32.totalorder %s1027_s20, %s1023_s19  ;;  %p55_p2 = scmp.eq.s32.totalorder %s1039_s23, 0 }
   0x8   : > { %s1248_s25 = smov (%p32_p0, %s31_s25), 0  ;;  %p88_p4 = scmp.ne.s32.totalorder %s1023_s19, %s1019_s18 }
   0x9   : > { %p1112_p3 = por %p55_p2, %p54_p1  ;;  %s43_s28 = ssub.s32 %s1035_s22, %s1248_s25 }
   0xa   : > { %p1119_p5 = scmp.eq.s32.totalorder %s740_s24, 0  ;;  %p45_p6 = scmp.eq.s32.totalorder %s43_s28, 0 }
   0xb   : > { %p741_p7 = scmp.ge.s32.totalorder %s1039_s23, 1  ;;  %p207_p9 = scmp.lt.s32.totalorder %s1039_s23, 6 }
   0xc   : > { %p1126_p8 = por %p1119_p5, %p88_p4  ;;  %s220_s10 = sshll.u32 %s1234_s2, 4  ;;  %s221_s10 = int_to_ptr.hbm [resolvable:$true] %s220_s10 }
   0xd   : > { %s1132_s6 = scalar_select %p45_p6, %s1027_s20, %s47_s26  }
   0xe   : > { %p1134_p10 = pnand %p741_p7, %p207_p9  ;;  %s1041_s11 = smov [#allocation6]  }
   0xf   : > { %s222_s12 = sshll.u32 %s1041_s11, 4  ;;  %s233_s15 = sshll.u32 %s1235_s3, 4  ;;  %s223_s12 = int_to_ptr.vmem [resolvable:$true] %s222_s12  ;;  %s234_s15 = int_to_ptr.hbm [resolvable:$true] %s233_s15 }
  0x10   : > { %p831_p11 = pneg %p1134_p10  ;;  %s1042_s16 = smov [#allocation8]  }
  0x11   : > { %s235_s17 = sshll.u32 %s1042_s16, 4  ;;  %p745_p13 = scmp.ge.s32.totalorder %s1039_s23, 5  ;;  %s236_s17 = int_to_ptr.vmem [resolvable:$true] %s235_s17 }
  0x12   : > { %p832_p12 = pnand %p831_p11, %p1119_p5 }
  0x13   : > { %254 = sbr.rel (%p745_p13) target bundleno = 38 (0x26), region = 28 }
  0x14   : > { %834 = dma.hbm_to_vmem [thread:$0]  (!%p832_p12), %s221_s10, 16, %s223_s12, [#allocation7]  }
  0x15   : > { %837 = dma.hbm_to_vmem [thread:$0]  (!%p832_p12), %s234_s15, 16, %s236_s17, [#allocation7]  }
  0x18   : > { %257 = sbr.rel (!%p1112_p3) target bundleno = 32 (0x20), region = 32  ;;  %s259_s18 = sand.u32 (%p1112_p3), 1, %s1027_s20  }
  0x19   : > { %s747_s24 = sshll.u32 (%p1112_p3), %s1035_s22, 2  ;;  %s746_s26 = sshll.u32 (%p1112_p3), %s259_s18, 4 }
  0x1a   : > { %s266_s9 = scalar_lea.vmem (%p1112_p3), %s1232_s0, %s747_s24  ;;  %s261_s10 = scalar_lea.vmem (%p1112_p3), [#allocation3], %s746_s26 }
  0x1b   : > { %v283_v0 = vld [vmem:[%s266_s9] sm:$0xf] (%p1112_p3)  ;;  %v285_v1 = vld [vmem:[%s266_s9 + $0x14] sm:$0xf] (%p1112_p3)  ;;  %v287_v2 = vld [vmem:[%s266_s9 + $0x28] sm:$0xf] (%p1112_p3) }
  0x1c   : > { %284 = vst [vmem:[%s261_s10] sm:$0xf] (%p1112_p3), %v283_v0  ;;  %v289_v3 = vld [vmem:[%s266_s9 + $0x3c] sm:$0xf] (%p1112_p3) }
  0x1d   : > { %286 = vst [vmem:[%s261_s10 + $0x4] sm:$0xf] %v285_v1 }
  0x1e   : > { %288 = vst [vmem:[%s261_s10 + $0x8] sm:$0xf] %v287_v2 }
  0x1f   : > { %290 = vst [vmem:[%s261_s10 + $0xc] sm:$0xf] %v289_v3 }
  0x20 PF: > { %s323_s11 = sand.u32 1, %s1027_s20   ;;  %s802_s12 = sshll.u32 %s1035_s22, 6 }
  0x21   : > { %s748_s13 = sshll.u32 %s323_s11, 6  ;;  %s333_s16 = scalar_lea.hbm %s1233_s1, %s802_s12 }
  0x22   : > { %s334_s17 = sshll.u32 %s333_s16, 4  ;;  %s327_s18 = scalar_lea.vmem [#allocation4], %s748_s13  ;;  %s335_s17 = int_to_ptr.hbm [resolvable:$true] %s334_s17 }
  0x23   : > { %s336_s24 = sshll.u32 %s327_s18, 4  ;;  %s324_s26 = scalar_lea.sflag [#allocation5], %s323_s11  ;;  %s337_s24 = int_to_ptr.vmem [resolvable:$true] %s336_s24 }
  0x24   : > { %s1043_s28 = smov 64   ;;  %s1044_s8 = smov 4  }
  0x25   : > { %825 = dma.hbm_to_vmem [thread:$0]  (%p1112_p3), %s335_s17, 1024, %s337_s24, %s324_s26, %s1043_s28, %s1043_s28, %s1044_s8  }
  0x26 PF: > { %348 = sbr.rel (%p1134_p10) target bundleno = 244 (0xf4), region = 77  ;;  %s351_s9 = sand.u32 (!%p1134_p10), 1, %s1023_s19  }
  0x27   : > { %s752_s10 = sshll.u32 (!%p1134_p10), %s351_s9, 4  ;;  %s753_s14 = sshll.u32 (!%p1134_p10), %s351_s9, 6 }
  0x28   : > { %s1166_s12 = scalar_lea.vmem (!%p1134_p10), [#allocation3], %s752_s10  ;;  %s358_s13 = scalar_lea.sflag (!%p1134_p10), [#allocation5], %s351_s9 }
  0x29   : > { %s1168_s15 = scalar_lea.vmem (!%p1134_p10), [#allocation4], %s753_s14 }
  0x2b   : > { %1010 = dma.done.wait (%p1126_p8), %s358_s13, 1024  }
  0x2c   : > { %1012 = vsyncadd (%p1126_p8), %s358_s13, 4294966272 }
  0x2d   : > { %1014 = dma.done.wait (%p1119_p5), [#allocation7], 32  }
  0x2e   : > { %1016 = vsyncadd (%p1119_p5), [#allocation7], 4294967264  ;;  %p756_p0 = scmp.ne.s32.totalorder %s1031_s21, 0 }
  0x30   : > { %437 = sbr.rel (%p756_p0) target bundleno = 58 (0x3a), region = 97 }
  0x35   : > { %v1045_v4 = vmov 0.0  }
  0x36   : > { %438 = vst [vmem:[#allocation2 + $0x10] sm:$0xff] %v1045_v4 }
  0x37   : > { %439 = vst [vmem:[#allocation2] sm:$0xff] %v1045_v4 }
  0x38   : > { %440 = vst [vmem:[#allocation2 + $0x18] sm:$0xff] %v1045_v4 }
  0x39   : > { %441 = vst [vmem:[#allocation2 + $0x8] sm:$0xff] %v1045_v4 }
  0x3a PF: > { %v812_v5 = vld [vmem:[%s1168_s15 + $0x38] sm:$0xff]  ;;  %v811_v6 = vld [vmem:[%s1168_s15 + $0x30] sm:$0xff]  ;;  %v810_v7 = vld [vmem:[%s1168_s15 + $0x28] sm:$0xff]  ;;  %p797_p1 = scmp.ne.s32.totalorder %s1031_s21, 4 }
  0x3b   : > { %526 = vmatpush.bf16.msra.mxu0 %v812_v5  ;;  %813 = vmatpush.bf16.msra.mxu1 %v812_v5  ;;  %v809_v8 = vld [vmem:[%s1168_s15 + $0x20] sm:$0xff]  ;;  %v808_v9 = vld [vmem:[%s1168_s15 + $0x18] sm:$0xff]  ;;  %v807_v10 = vld [vmem:[%s1168_s15 + $0x10] sm:$0xff] }
  0x3c   : > { %v806_v11 = vld [vmem:[%s1168_s15 + $0x8] sm:$0xff]  ;;  %v805_v12 = vld [vmem:[%s1168_s15] sm:$0xff] }
  0x3d   : > { %v803_v13 = vld [vmem:[%s1166_s12] sm:$0xff]  ;;  %v804_v14 = vld [vmem:[%s1166_s12 + $0x8] sm:$0xff] }
  0x3e   : > { %v442_v15 = vld [vmem:[#allocation2 + $0x10] sm:$0xff]  ;;  %v443_v21 = vld [vmem:[#allocation2] sm:$0xff] }
  0x3f   : > { %527 = vmatpush.bf16.msra.mxu0 %v811_v6  ;;  %814 = vmatpush.bf16.msra.mxu1 %v811_v6  ;;  %v444_v16 = vld [vmem:[#allocation2 + $0x18] sm:$0xff] }
  0x40   : > { %v445_v22 = vld [vmem:[#allocation2 + $0x8] sm:$0xff] }
  0x43   : > { %528 = vmatpush.bf16.msra.mxu0 %v810_v7  ;;  %815 = vmatpush.bf16.msra.mxu1 %v810_v7 }
  0x47   : > { %529 = vmatpush.bf16.msra.mxu0 %v809_v8  ;;  %816 = vmatpush.bf16.msra.mxu1 %v809_v8 }
  0x4b   : > { %530 = vmatpush.bf16.msra.mxu0 %v808_v9  ;;  %817 = vmatpush.bf16.msra.mxu1 %v808_v9 }
  0x4f   : > { %531 = vmatpush.bf16.msra.mxu0 %v807_v10  ;;  %818 = vmatpush.bf16.msra.mxu1 %v807_v10 }
  0x53   : > { %532 = vmatpush.bf16.msra.mxu0 %v806_v11  ;;  %819 = vmatpush.bf16.msra.mxu1 %v806_v11 }
  0x57   : > { %533 = vmatpush.bf16.msra.mxu0 %v805_v12  ;;  %820 = vmatpush.bf16.msra.mxu1 %v805_v12 }
  0x5a   : > { %534 = vmatmul.bf16.vlgmr.msra.gmra.mxu0 %v803_v13  ;;  %539 = vmatmul.bf16.vlgmr.msra.gmra.mxu1 %v804_v14 }
  0xd7   : > { %v535_v17 = vpop.f32.mrf.mxu0  ;;  %v540_v18 = vpop.f32.mrf.mxu1 }
  0xd8   : > { %v545_v19 = vadd.f32 %v535_v17, %v442_v15  ;;  %v547_v20 = vadd.f32 %v540_v18, %v444_v16 }
  0xda   : > { %549 = vst [vmem:[#allocation2 + $0x10] sm:$0xff] %v545_v19 }
  0xdb   : > { %551 = vst [vmem:[#allocation2 + $0x18] sm:$0xff] %v547_v20 }
  0xdf   : > { %v537_v23 = vpop.f32.mrf.mxu0  ;;  %v542_v24 = vpop.f32.mrf.mxu1  ;;  %556 = sbr.rel (%p797_p1) target bundleno = 244 (0xf4), region = 101 }
  0xe0   : > { %v546_v25 = vadd.f32 %v537_v23, %v443_v21  ;;  %v548_v26 = vadd.f32 %v542_v24, %v445_v22 }
  0xe2   : > { %550 = vst [vmem:[#allocation2] sm:$0xff] %v546_v25 }
  0xe3   : > { %552 = vst [vmem:[#allocation2 + $0x8] sm:$0xff] %v548_v26 }
  0xe4   : > { %v557_v27 = vld [vmem:[#allocation2 + $0x10] sm:$0xff]  ;;  %v895_v28 = vld [vmem:[#allocation6] ss:$0 sm:$0xff]  ;;  %v896_v29 = vld [vmem:[#allocation8] ss:$0 sm:$0xff] }
  0xe5   : > { %v565_v30 = vmul.f32 %v895_v28, %v557_v27  ;;  %v559_v32 = vld [vmem:[#allocation2 + $0x18] sm:$0xff]  ;;  %v577_v33 = vld [vmem:[%s1236_s4] sm:$0xff]  ;;  %v578_v38 = vld [vmem:[%s1236_s4 + $0x8] sm:$0xff] }
  0xe6   : > { %v567_v35 = vmul.f32 %v895_v28, %v559_v32  ;;  %v579_v39 = vld [vmem:[%s1236_s4 + $0x10] sm:$0xff]  ;;  %v580_v43 = vld [vmem:[%s1236_s4 + $0x18] sm:$0xff] }
  0xe7   : > { %v573_v37 = vadd.f32 %v896_v29, %v565_v30 }
  0xe8   : > { %v575_v42 = vadd.f32 %v896_v29, %v567_v35 }
  0xe9   : > { %v558_v31 = vld [vmem:[#allocation2] sm:$0xff]  ;;  %v581_v44 = vadd.f32 %v577_v33, %v573_v37 }
  0xea   : > { %v566_v34 = vmul.f32 %v895_v28, %v558_v31  ;;  %v560_v36 = vld [vmem:[#allocation2 + $0x8] sm:$0xff]  ;;  %v583_v47 = vadd.f32 %v579_v39, %v575_v42 }
  0xeb   : > { %v568_v40 = vmul.f32 %v895_v28, %v560_v36  ;;  %v585_v48 = vmax.f32 %v581_v44, 0.0 }
  0xec   : > { %v574_v41 = vadd.f32 %v896_v29, %v566_v34  ;;  %v587_v51 = vmax.f32 %v583_v47, 0.0 }
  0xed   : > { %v576_v45 = vadd.f32 %v896_v29, %v568_v40  ;;  %589 = vst [vmem:[%s1237_s5] sm:$0xff] %v585_v48 }
  0xee   : > { %v582_v46 = vadd.f32 %v578_v38, %v574_v41  ;;  %591 = vst [vmem:[%s1237_s5 + $0x10] sm:$0xff] %v587_v51 }
  0xef   : > { %v584_v49 = vadd.f32 %v580_v43, %v576_v45 }
  0xf0   : > { %v586_v50 = vmax.f32 %v582_v46, 0.0 }
  0xf1   : > { %v588_v52 = vmax.f32 %v584_v49, 0.0 }
  0xf2   : > { %590 = vst [vmem:[%s1237_s5 + $0x8] sm:$0xff] %v586_v50 }
  0xf3   : > { %592 = vst [vmem:[%s1237_s5 + $0x18] sm:$0xff] %v588_v52 }
  0xf4 PF: > { %s19_s23 = sadd.s32 1, %s1039_s23   ;;  %s1242_s18 = smov %s1023_s19 }
  0xf5   : > { %p16_p2 = scmp.ge.s32.totalorder %s19_s23, 7   ;;  %s1243_s19 = smov %s1027_s20 }
  0xf6   : > { %s1244_s20 = smov %s1132_s6  ;;  %s1245_s21 = smov %s1035_s22 }
  0xf7   : > { %s1246_s22 = smov %s1248_s25  ;;  %18 = sbr.rel (!%p16_p2) target bundleno = 5 (0x5), region = 150 }
  0xfc   :  { %621 = vsyncpa [#allocation5], 1 }
  0xfd   :  { %623 = vsyncpa [#allocation5 + $0x1], 1 }
  0xfe   :  { %624 = vsyncpa [#allocation7], 1 }

// kernel: resnet_forward.20
= control target key start
LH: loop header
LB: loop body
LE: loop exit
PB: predicated region body
PF: predicated region fallthrough
CT: control target
= control target key end

     0   :  { %9 = vsyncpa [#allocation4], 0  ;;  %s991_s0 = inlined_call_operand.vmem [shape: bf16[8,640], index: 0, kind: input, shape index: {}]   ;;  %s992_s1 = inlined_call_operand.hbm [shape: bf16[640,128], index: 1, kind: input, shape index: {}]   ;;  %s993_s2 = inlined_call_operand.hbm [shape: f32[1,128], index: 2, kind: input, shape index: {}]   ;;  %s994_s3 = inlined_call_operand.hbm [shape: f32[1,128], index: 3, kind: input, shape index: {}]   ;;  %s995_s4 = inlined_call_operand.vmem [shape: f32[8,128], index: 4, kind: output, shape index: {}]  }
   0x1   :  { %11 = vsyncpa [#allocation4 + $0x1], 0 }
   0x2   :  { %12 = vsyncpa [#allocation6], 0  ;;  %s864_s15 = smov 0   ;;  %s866_s16 = smov 0  }
   0x3   :  { %s868_s17 = smov 0   ;;  %s870_s18 = smov 0  }
   0x4   :  { %s872_s19 = smov 0   ;;  %s874_s20 = smov 0  }
   0x5 LB: > { %s548_s21 = sadd.s32 4294967295, %s832_s20   ;;  %s74_s22 = sadd.s32 1, %s820_s17  ;;  %s832_s20 = sphi %s874_s20, %s18_s20   ;;  %s828_s19 = sphi %s872_s19, %s1005_s19   ;;  %s824_s18 = sphi %s870_s18, %s1004_s18   ;;  %s820_s17 = sphi %s868_s17, %s1003_s17   ;;  %s816_s16 = sphi %s866_s16, %s1002_s16   ;;  %s812_s15 = sphi %s864_s15, %s1001_s15  }
   0x6   : > { %p81_p0 = scmp.ne.s32.totalorder %s820_s17, %s816_s16  ;;  %p82_p1 = scmp.eq.s32.totalorder %s832_s20, 0 }
   0x7   : > { %p87_p2 = scmp.ne.s32.totalorder %s816_s16, %s812_s15  ;;  %p898_p3 = scmp.eq.s32.totalorder %s548_s21, 0 }
   0x8   : > { %p902_p4 = por %p82_p1, %p81_p0  ;;  %p549_p5 = scmp.ge.s32.totalorder %s832_s20, 1 }
   0x9   : > { %p909_p6 = por %p898_p3, %p87_p2  ;;  %p178_p7 = scmp.lt.s32.totalorder %s832_s20, 6 }
   0xa   : > { %s191_s28 = sshll.u32 %s993_s2, 4  ;;  %s834_s30 = smov [#allocation5]   ;;  %s192_s28 = int_to_ptr.hbm [resolvable:$true] %s191_s28 }
   0xb   : > { %p917_p8 = pnand %p549_p5, %p178_p7  ;;  %s193_s5 = sshll.u32 %s834_s30, 4  ;;  %s194_s5 = int_to_ptr.vmem [resolvable:$true] %s193_s5 }
   0xc   : > { %p630_p10 = scmp.lt.s32.totalorder %s832_s20, 5  ;;  %s204_s8 = sshll.u32 %s994_s3, 4  ;;  %s205_s8 = int_to_ptr.hbm [resolvable:$true] %s204_s8 }
   0xd   : > { %p617_p9 = pneg %p917_p8  ;;  %s835_s10 = smov [#allocation7]  }
   0xe   : > { %p931_p12 = pnand %p630_p10, %p902_p4  ;;  %s206_s11 = sshll.u32 %s835_s10, 4  ;;  %s207_s11 = int_to_ptr.vmem [resolvable:$true] %s206_s11 }
   0xf   : > { %p618_p11 = pnand %p617_p9, %p898_p3  ;;  %s228_s12 = sand.u32 1, %s820_s17  }
  0x10   : > { %s30_s13 = sadd.s32 1, %s828_s19  ;;  %s553_s14 = sshll.u32 %s228_s12, 6 }
  0x11   : > { %620 = dma.hbm_to_vmem [thread:$0]  (!%p618_p11), %s192_s28, 16, %s194_s5, [#allocation6]  }
  0x12   : > { %623 = dma.hbm_to_vmem [thread:$0]  (!%p618_p11), %s205_s8, 16, %s207_s11, [#allocation6]  }
  0x13   : > { %p31_p13 = scmp.ge.s32.totalorder %s30_s13, 5  ;;  %s598_s15 = sshll.u32 %s828_s19, 6 }
  0x14   : > { %s238_s26 = scalar_lea.hbm %s992_s1, %s598_s15  ;;  %s232_s27 = scalar_lea.vmem [#allocation3], %s553_s14 }
  0x15   : > { %s1007_s13 = smov (%p31_p13, %s30_s13), 0  ;;  %s241_s28 = sshll.u32 %s232_s27, 4  ;;  %s242_s28 = int_to_ptr.vmem [resolvable:$true] %s241_s28 }
  0x16   : > { %s69_s30 = ssub.s32 %s828_s19, %s1007_s13  ;;  %s239_s5 = sshll.u32 %s238_s26, 4  ;;  %s240_s5 = int_to_ptr.hbm [resolvable:$true] %s239_s5 }
  0x17   : > { %p72_p0 = scmp.eq.s32.totalorder %s69_s30, 0  ;;  %s229_s7 = scalar_lea.sflag [#allocation4], %s228_s12 }
  0x18   : > { %s836_s8 = smov 64   ;;  %s837_s10 = smov 4  }
  0x19   : > { %s948_s6 = scalar_select %p72_p0, %s820_s17, %s74_s22  }
  0x1a   : > { %627 = dma.hbm_to_vmem [thread:$0]  (!%p931_p12), %s240_s5, 1024, %s242_s28, %s229_s7, %s836_s8, %s836_s8, %s837_s10  }
  0x1b   : > { %253 = sbr.rel (%p917_p8) target bundleno = 220 (0xdc), region = 36  ;;  %s255_s11 = sand.u32 (!%p917_p8), 1, %s816_s16  }
  0x1c   : > { %s557_s14 = sshll.u32 (!%p917_p8), %s255_s11, 6  ;;  %s256_s15 = scalar_lea.sflag (!%p917_p8), [#allocation4], %s255_s11 }
  0x1d   : > { %s259_s21 = scalar_lea.vmem (!%p917_p8), [#allocation3], %s557_s14 }
  0x20   : > { %803 = dma.done.wait (%p909_p6), %s256_s15, 1024  }
  0x21   : > { %805 = vsyncadd (%p909_p6), %s256_s15, 4294966272 }
  0x22   : > { %807 = dma.done.wait (%p898_p3), [#allocation6], 32  }
  0x23   : > { %809 = vsyncadd (%p898_p3), [#allocation6], 4294967264  ;;  %p307_p1 = scmp.lt.s32.totalorder %s824_s18, 4  ;;  %p561_p2 = scmp.ne.s32.totalorder %s824_s18, 0 }
  0x25   : > { %s308_s22 = scalar_select %p307_p1, %s824_s18, 4 }
  0x26   : > { %324 = sbr.rel (%p561_p2) target bundleno = 45 (0x2d), region = 52 }
  0x27   : > { %s560_s29 = sshll.u32 %s308_s22, 2 }
  0x28   : > { %s312_s24 = scalar_lea.vmem %s991_s0, %s560_s29 }
  0x2b   : > { %v838_v0 = vmov 0.0  }
  0x2c   : > { %325 = vst [vmem:[#allocation2] sm:$0xff] %v838_v0 }
  0x2d PF: > { %v606_v1 = vld [vmem:[%s259_s21 + $0x38] sm:$0xff]  ;;  %v605_v2 = vld [vmem:[%s259_s21 + $0x30] sm:$0xff]  ;;  %v604_v3 = vld [vmem:[%s259_s21 + $0x28] sm:$0xff]  ;;  %p594_p3 = scmp.ne.s32.totalorder %s824_s18, 4 }
  0x2e   : > { %392 = vmatpush.bf16.msra.mxu0 %v606_v1  ;;  %v603_v4 = vld [vmem:[%s259_s21 + $0x20] sm:$0xff]  ;;  %v602_v5 = vld [vmem:[%s259_s21 + $0x18] sm:$0xff]  ;;  %v601_v6 = vld [vmem:[%s259_s21 + $0x10] sm:$0xff] }
  0x2f   : > { %v600_v7 = vld [vmem:[%s259_s21 + $0x8] sm:$0xff]  ;;  %v599_v8 = vld [vmem:[%s259_s21] sm:$0xff]  ;;  %v327_v9 = vld [vmem:[%s312_s24] sm:$0xf] }
  0x32   : > { %393 = vmatpush.bf16.msra.mxu0 %v605_v2 }
  0x33   : > { %v326_v10 = vld [vmem:[#allocation2] sm:$0xff] }
  0x36   : > { %394 = vmatpush.bf16.msra.mxu0 %v604_v3 }
  0x3a   : > { %395 = vmatpush.bf16.msra.mxu0 %v603_v4 }
  0x3e   : > { %396 = vmatpush.bf16.msra.mxu0 %v602_v5 }
  0x42   : > { %397 = vmatpush.bf16.msra.mxu0 %v601_v6 }
  0x46   : > { %398 = vmatpush.bf16.msra.mxu0 %v600_v7 }
  0x4a   : > { %399 = vmatpush.bf16.msra.mxu0 %v599_v8 }
  0x4d   : > { %400 = vmatmul.bf16.vlgmr.msra.gmra.mxu0 %v327_v9 }
  0xca   : > { %v401_v11 = vpop.f32.mrf.mxu0 }
  0xcb   : > { %v405_v12 = vadd.f32 %v401_v11, %v326_v10 }
  0xcd   : > { %406 = vst [vmem:[#allocation2] sm:$0xff] %v405_v12 }
  0xce   : > { %410 = sbr.rel (%p594_p3) target bundleno = 220 (0xdc), region = 56 }
  0xd2   : > { %v403_v13 = vpop.f32.mrf.mxu0 }
  0xd3   : > { %v686_v15 = vld [vmem:[#allocation5] ss:$0 sm:$0xff]  ;;  %v687_v16 = vld [vmem:[#allocation7] ss:$0 sm:$0xff] }
  0xd4   : > { %v411_v14 = vld [vmem:[#allocation2] sm:$0xff] }
  0xd5   : > { %v416_v17 = vmul.f32 %v686_v15, %v411_v14 }
  0xd7   : > { %v421_v18 = vadd.f32 %v687_v16, %v416_v17 }
  0xd9   : > { %v422_v19 = vmax.f32 %v421_v18, 0.0 }
  0xdb   : > { %423 = vst [vmem:[%s995_s4] sm:$0xff] %v422_v19 }
  0xdc PF: > { %s18_s20 = sadd.s32 1, %s832_s20   ;;  %s1001_s15 = smov %s816_s16 }
  0xdd   : > { %p15_p4 = scmp.ge.s32.totalorder %s18_s20, 7   ;;  %s1002_s16 = smov %s820_s17 }
  0xde   : > { %s1003_s17 = smov %s948_s6  ;;  %s1004_s18 = smov %s828_s19 }
  0xdf   : > { %s1005_s19 = smov %s1007_s13  ;;  %17 = sbr.rel (!%p15_p4) target bundleno = 5 (0x5), region = 97 }
  0xe4   :  { %449 = vsyncpa [#allocation4], 1 }
  0xe5   :  { %451 = vsyncpa [#allocation4 + $0x1], 1 }
  0xe6   :  { %452 = vsyncpa [#allocation6], 1 }

// kernel: resnet_forward.19
= control target key start
LH: loop header
LB: loop body
LE: loop exit
PB: predicated region body
PF: predicated region fallthrough
CT: control target
= control target key end

     0   :  { %9 = vsyncpa [#allocation4], 0  ;;  %s335_s0 = inlined_call_operand.vmem [shape: bf16[8,128], index: 0, kind: input, shape index: {}]   ;;  %s336_s1 = inlined_call_operand.hbm [shape: bf16[128,128], index: 1, kind: input, shape index: {}]   ;;  %s337_s2 = inlined_call_operand.hbm [shape: f32[1,128], index: 2, kind: input, shape index: {}]   ;;  %s338_s3 = inlined_call_operand.hbm [shape: f32[1,128], index: 3, kind: input, shape index: {}]   ;;  %s339_s4 = inlined_call_operand.vmem [shape: f32[8,128], index: 4, kind: output, shape index: {}]  }
   0x1   :  { %10 = vsyncpa [#allocation6], 0  ;;  %s31_s17 = sshll.u32 %s337_s2, 4  ;;  %s290_s18 = smov [#allocation5]   ;;  %s32_s17 = int_to_ptr.hbm [resolvable:$true] %s31_s17 }
   0x2   :  { %s33_s19 = sshll.u32 %s290_s18, 4  ;;  %s17_s22 = sshll.u32 %s336_s1, 4  ;;  %s34_s19 = int_to_ptr.vmem [resolvable:$true] %s33_s19  ;;  %s18_s22 = int_to_ptr.hbm [resolvable:$true] %s17_s22 }
   0x3   :  { %36 = dma.hbm_to_vmem [thread:$0]  %s32_s17, 16, %s34_s19, [#allocation6]  }
   0x4   :  { %s291_s23 = smov [#allocation3]   ;;  %s292_s25 = smov 64  }
   0x5   :  { %s19_s24 = sshll.u32 %s291_s23, 4  ;;  %s293_s26 = smov 4   ;;  %s20_s24 = int_to_ptr.vmem [resolvable:$true] %s19_s24 }
   0x6   :  { %25 = dma.hbm_to_vmem [thread:$0]  %s18_s22, 1024, %s20_s24, [#allocation4], %s292_s25, %s292_s25, %s293_s26  }
   0x7   :  { %s42_s2 = sshll.u32 %s338_s3, 4  ;;  %s294_s29 = smov [#allocation7]   ;;  %s43_s2 = int_to_ptr.hbm [resolvable:$true] %s42_s2 }
   0x8   :  { %s44_s30 = sshll.u32 %s294_s29, 4  ;;  %s45_s30 = int_to_ptr.vmem [resolvable:$true] %s44_s30 }
   0x9   :  { %47 = dma.hbm_to_vmem [thread:$0]  %s43_s2, 16, %s45_s30, [#allocation6]  }
   0xa   :  { %286 = dma.done.wait [#allocation4], 1024  }
   0xb   :  { %287 = vsyncadd [#allocation4], 4294966272 }
   0xc   :  { %288 = dma.done.wait [#allocation6], 32  }
   0xd   :  { %289 = vsyncadd [#allocation6], 4294967264  ;;  %v206_v0 = vld [vmem:[#allocation3 + $0x38] sm:$0xff]  ;;  %v205_v1 = vld [vmem:[#allocation3 + $0x30] sm:$0xff] }
   0xe   :  { %131 = vmatpush.bf16.msra.mxu0 %v206_v0  ;;  %v204_v2 = vld [vmem:[#allocation3 + $0x28] sm:$0xff]  ;;  %v203_v3 = vld [vmem:[#allocation3 + $0x20] sm:$0xff]  ;;  %v202_v4 = vld [vmem:[#allocation3 + $0x18] sm:$0xff] }
   0xf   :  { %v201_v5 = vld [vmem:[#allocation3 + $0x10] sm:$0xff]  ;;  %v200_v6 = vld [vmem:[#allocation3 + $0x8] sm:$0xff]  ;;  %v199_v7 = vld [vmem:[#allocation3] sm:$0xff] }
  0x10   :  { %v66_v8 = vld [vmem:[%s335_s0] sm:$0xf] }
  0x11   :  { %v212_v9 = vld [vmem:[#allocation5] ss:$0 sm:$0xff]  ;;  %v213_v10 = vld [vmem:[#allocation7] ss:$0 sm:$0xff] }
  0x12   :  { %132 = vmatpush.bf16.msra.mxu0 %v205_v1 }
  0x16   :  { %133 = vmatpush.bf16.msra.mxu0 %v204_v2 }
  0x1a   :  { %134 = vmatpush.bf16.msra.mxu0 %v203_v3 }
  0x1e   :  { %135 = vmatpush.bf16.msra.mxu0 %v202_v4 }
  0x22   :  { %136 = vmatpush.bf16.msra.mxu0 %v201_v5 }
  0x26   :  { %137 = vmatpush.bf16.msra.mxu0 %v200_v6 }
  0x2a   :  { %138 = vmatpush.bf16.msra.mxu0 %v199_v7 }
  0x2d   :  { %139 = vmatmul.bf16.vlgmr.msra.gmra.mxu0 %v66_v8 }
  0xaa   :  { %v140_v11 = vpop.f32.mrf.mxu0 }
  0xab   :  { %v154_v12 = vmul.f32 %v212_v9, %v140_v11 }
  0xad   :  { %v159_v13 = vadd.f32 %v213_v10, %v154_v12 }
  0xaf   :  { %160 = vst [vmem:[%s339_s4] sm:$0xff] %v159_v13 }
  0xb2   :  { %v142_v14 = vpop.f32.mrf.mxu0 }
  0xb3   :  { %165 = vsyncpa [#allocation4], 1 }
  0xb4   :  { %166 = vsyncpa [#allocation6], 1 }

// kernel: resnet_forward.21
= control target key start
LH: loop header
LB: loop body
LE: loop exit
PB: predicated region body
PF: predicated region fallthrough
CT: control target
= control target key end

     0   :  { %10 = vsyncpa [#allocation4], 0  ;;  %s1075_s0 = inlined_call_operand.vmem [shape: bf16[8,1152], index: 0, kind: input, shape index: {}]   ;;  %s1076_s1 = inlined_call_operand.hbm [shape: bf16[1152,128], index: 1, kind: input, shape index: {}]   ;;  %s1077_s2 = inlined_call_operand.hbm [shape: f32[1,128], index: 2, kind: input, shape index: {}]   ;;  %s1078_s3 = inlined_call_operand.hbm [shape: f32[1,128], index: 3, kind: input, shape index: {}]   ;;  %s1079_s4 = inlined_call_operand.vmem [shape: f32[8,128], index: 4, kind: input, shape index: {}]   ;;  %s1080_s5 = inlined_call_operand.vmem [shape: f32[8,128], index: 5, kind: output, shape index: {}]  }
   0x1   :  { %12 = vsyncpa [#allocation4 + $0x1], 0 }
   0x2   :  { %13 = vsyncpa [#allocation6], 0  ;;  %s945_s18 = smov 0   ;;  %s947_s19 = smov 0  }
   0x3   :  { %s949_s20 = smov 0   ;;  %s951_s21 = smov 0  }
   0x4   :  { %s953_s22 = smov 0   ;;  %s955_s23 = smov 0  }
   0x5 LB: > { %s623_s24 = sadd.s32 4294967295, %s908_s23   ;;  %s75_s25 = sadd.s32 1, %s896_s20  ;;  %s908_s23 = sphi %s955_s23, %s19_s23   ;;  %s904_s22 = sphi %s953_s22, %s1090_s22   ;;  %s900_s21 = sphi %s951_s21, %s1089_s21   ;;  %s896_s20 = sphi %s949_s20, %s1088_s20   ;;  %s892_s19 = sphi %s947_s19, %s1087_s19   ;;  %s888_s18 = sphi %s945_s18, %s1086_s18  }
   0x6   : > { %p82_p0 = scmp.ne.s32.totalorder %s896_s20, %s892_s19  ;;  %p83_p1 = scmp.eq.s32.totalorder %s908_s23, 0 }
   0x7   : > { %p88_p2 = scmp.ne.s32.totalorder %s892_s19, %s888_s18  ;;  %p979_p3 = scmp.eq.s32.totalorder %s623_s24, 0 }
   0x8   : > { %p983_p4 = por %p83_p1, %p82_p0  ;;  %p624_p5 = scmp.ge.s32.totalorder %s908_s23, 1 }
   0x9   : > { %p990_p6 = por %p979_p3, %p88_p2  ;;  %p207_p7 = scmp.lt.s32.totalorder %s908_s23, 10 }
   0xa   : > { %s220_s6 = sshll.u32 %s1077_s2, 4  ;;  %s910_s8 = smov [#allocation5]   ;;  %s221_s6 = int_to_ptr.hbm [resolvable:$true] %s220_s6 }
   0xb   : > { %p998_p8 = pnand %p624_p5, %p207_p7  ;;  %s222_s9 = sshll.u32 %s910_s8, 4  ;;  %s223_s9 = int_to_ptr.vmem [resolvable:$true] %s222_s9 }
   0xc   : > { %p706_p10 = scmp.lt.s32.totalorder %s908_s23, 9  ;;  %s233_s12 = sshll.u32 %s1078_s3, 4  ;;  %s234_s12 = int_to_ptr.hbm [resolvable:$true] %s233_s12 }
   0xd   : > { %p693_p9 = pneg %p998_p8  ;;  %s911_s14 = smov [#allocation7]  }
   0xe   : > { %p1012_p12 = pnand %p706_p10, %p983_p4  ;;  %s235_s15 = sshll.u32 %s911_s14, 4  ;;  %s236_s15 = int_to_ptr.vmem [resolvable:$true] %s235_s15 }
   0xf   : > { %p694_p11 = pnand %p693_p9, %p979_p3  ;;  %s267_s16 = sand.u32 1, %s896_s20  }
  0x10   : > { %s31_s17 = sadd.s32 1, %s904_s22  ;;  %s629_s18 = sshll.u32 %s267_s16, 6 }
  0x11   : > { %696 = dma.hbm_to_vmem [thread:$0]  (!%p694_p11), %s221_s6, 16, %s223_s9, [#allocation6]  }
  0x12   : > { %699 = dma.hbm_to_vmem [thread:$0]  (!%p694_p11), %s234_s12, 16, %s236_s15, [#allocation6]  }
  0x13   : > { %p32_p13 = scmp.ge.s32.totalorder %s31_s17, 9  ;;  %s674_s24 = sshll.u32 %s904_s22, 6 }
  0x14   : > { %s277_s30 = scalar_lea.hbm %s1076_s1, %s674_s24  ;;  %s271_s6 = scalar_lea.vmem [#allocation3], %s629_s18 }
  0x15   : > { %s1092_s17 = smov (%p32_p13, %s31_s17), 0  ;;  %s280_s8 = sshll.u32 %s271_s6, 4  ;;  %s281_s8 = int_to_ptr.vmem [resolvable:$true] %s280_s8 }
  0x16   : > { %s70_s9 = ssub.s32 %s904_s22, %s1092_s17  ;;  %s278_s10 = sshll.u32 %s277_s30, 4  ;;  %s279_s10 = int_to_ptr.hbm [resolvable:$true] %s278_s10 }
  0x17   : > { %p73_p0 = scmp.eq.s32.totalorder %s70_s9, 0  ;;  %s268_s12 = scalar_lea.sflag [#allocation4], %s267_s16 }
  0x18   : > { %s912_s14 = smov 64   ;;  %s913_s15 = smov 4  }
  0x19   : > { %s1029_s11 = scalar_select %p73_p0, %s896_s20, %s75_s25  }
  0x1a   : > { %703 = dma.hbm_to_vmem [thread:$0]  (!%p1012_p12), %s279_s10, 1024, %s281_s8, %s268_s12, %s912_s14, %s912_s14, %s913_s15  }
  0x1b   : > { %292 = sbr.rel (%p998_p8) target bundleno = 222 (0xde), region = 40  ;;  %s294_s18 = sand.u32 (!%p998_p8), 1, %s892_s19  }
  0x1c   : > { %s633_s24 = sshll.u32 (!%p998_p8), %s294_s18, 6  ;;  %s295_s27 = scalar_lea.sflag (!%p998_p8), [#allocation4], %s294_s18 }
  0x1d   : > { %s298_s29 = scalar_lea.vmem (!%p998_p8), [#allocation3], %s633_s24 }
  0x20   : > { %879 = dma.done.wait (%p990_p6), %s295_s27, 1024  }
  0x21   : > { %881 = vsyncadd (%p990_p6), %s295_s27, 4294966272 }
  0x22   : > { %883 = dma.done.wait (%p979_p3), [#allocation6], 32  }
  0x23   : > { %885 = vsyncadd (%p979_p3), [#allocation6], 4294967264  ;;  %p355_p1 = scmp.lt.s32.totalorder %s900_s21, 8  ;;  %p637_p2 = scmp.ne.s32.totalorder %s900_s21, 0 }
  0x25   : > { %s356_s25 = scalar_select %p355_p1, %s900_s21, 8 }
  0x26   : > { %379 = sbr.rel (%p637_p2) target bundleno = 45 (0x2d), region = 56 }
  0x27   : > { %s636_s7 = sshll.u32 %s356_s25, 2 }
  0x28   : > { %s360_s30 = scalar_lea.vmem %s1075_s0, %s636_s7 }
  0x2b   : > { %v914_v0 = vmov 0.0  }
  0x2c   : > { %380 = vst [vmem:[#allocation2] sm:$0xff] %v914_v0 }
  0x2d PF: > { %v682_v1 = vld [vmem:[%s298_s29 + $0x38] sm:$0xff]  ;;  %v681_v2 = vld [vmem:[%s298_s29 + $0x30] sm:$0xff]  ;;  %v680_v3 = vld [vmem:[%s298_s29 + $0x28] sm:$0xff]  ;;  %p670_p3 = scmp.ne.s32.totalorder %s900_s21, 8 }
  0x2e   : > { %447 = vmatpush.bf16.msra.mxu0 %v682_v1  ;;  %v679_v4 = vld [vmem:[%s298_s29 + $0x20] sm:$0xff]  ;;  %v678_v5 = vld [vmem:[%s298_s29 + $0x18] sm:$0xff]  ;;  %v677_v6 = vld [vmem:[%s298_s29 + $0x10] sm:$0xff] }
  0x2f   : > { %v676_v7 = vld [vmem:[%s298_s29 + $0x8] sm:$0xff]  ;;  %v675_v8 = vld [vmem:[%s298_s29] sm:$0xff]  ;;  %v382_v9 = vld [vmem:[%s360_s30] sm:$0xf] }
  0x32   : > { %448 = vmatpush.bf16.msra.mxu0 %v681_v2 }
  0x33   : > { %v381_v10 = vld [vmem:[#allocation2] sm:$0xff] }
  0x36   : > { %449 = vmatpush.bf16.msra.mxu0 %v680_v3 }
  0x3a   : > { %450 = vmatpush.bf16.msra.mxu0 %v679_v4 }
  0x3e   : > { %451 = vmatpush.bf16.msra.mxu0 %v678_v5 }
  0x42   : > { %452 = vmatpush.bf16.msra.mxu0 %v677_v6 }
  0x46   : > { %453 = vmatpush.bf16.msra.mxu0 %v676_v7 }
  0x4a   : > { %454 = vmatpush.bf16.msra.mxu0 %v675_v8 }
  0x4d   : > { %455 = vmatmul.bf16.vlgmr.msra.gmra.mxu0 %v382_v9 }
  0xca   : > { %v456_v11 = vpop.f32.mrf.mxu0 }
  0xcb   : > { %v460_v12 = vadd.f32 %v456_v11, %v381_v10 }
  0xcd   : > { %461 = vst [vmem:[#allocation2] sm:$0xff] %v460_v12 }
  0xce   : > { %465 = sbr.rel (%p670_p3) target bundleno = 222 (0xde), region = 60 }
  0xd2   : > { %v458_v13 = vpop.f32.mrf.mxu0 }
  0xd3   : > { %v762_v15 = vld [vmem:[#allocation5] ss:$0 sm:$0xff]  ;;  %v763_v16 = vld [vmem:[#allocation7] ss:$0 sm:$0xff]  ;;  %v477_v18 = vld [vmem:[%s1079_s4] sm:$0xff] }
  0xd4   : > { %v466_v14 = vld [vmem:[#allocation2] sm:$0xff] }
  0xd5   : > { %v471_v17 = vmul.f32 %v762_v15, %v466_v14 }
  0xd7   : > { %v476_v19 = vadd.f32 %v763_v16, %v471_v17 }
  0xd9   : > { %v478_v20 = vadd.f32 %v477_v18, %v476_v19 }
  0xdb   : > { %v479_v21 = vmax.f32 %v478_v20, 0.0 }
  0xdd   : > { %480 = vst [vmem:[%s1080_s5] sm:$0xff] %v479_v21 }
  0xde PF: > { %s19_s23 = sadd.s32 1, %s908_s23   ;;  %s1086_s18 = smov %s892_s19 }
  0xdf   : > { %p16_p4 = scmp.ge.s32.totalorder %s19_s23, 11   ;;  %s1087_s19 = smov %s896_s20 }
  0xe0   : > { %s1088_s20 = smov %s1029_s11  ;;  %s1089_s21 = smov %s904_s22 }
  0xe1   : > { %s1090_s22 = smov %s1092_s17  ;;  %18 = sbr.rel (!%p16_p4) target bundleno = 5 (0x5), region = 104 }
  0xe6   :  { %506 = vsyncpa [#allocation4], 1 }
  0xe7   :  { %508 = vsyncpa [#allocation4 + $0x1], 1 }
  0xe8   :  { %509 = vsyncpa [#allocation6], 1 }

// kernel: resnet_forward.23
= control target key start
LH: loop header
LB: loop body
LE: loop exit
PB: predicated region body
PF: predicated region fallthrough
CT: control target
= control target key end

     0   :  { %9 = vsyncpa [#allocation4], 0  ;;  %s995_s0 = inlined_call_operand.vmem [shape: bf16[8,1152], index: 0, kind: input, shape index: {}]   ;;  %s996_s1 = inlined_call_operand.vmem [shape: bf16[1152,256], index: 1, kind: input, shape index: {}]   ;;  %s997_s2 = inlined_call_operand.hbm [shape: f32[1,256], index: 2, kind: input, shape index: {}]   ;;  %s998_s3 = inlined_call_operand.hbm [shape: f32[1,256], index: 3, kind: input, shape index: {}]   ;;  %s999_s4 = inlined_call_operand.vmem [shape: f32[8,256], index: 4, kind: output, shape index: {}]  }
   0x1   :  { %10 = vsyncpa [#allocation6], 0  ;;  %s883_s15 = smov 0   ;;  %s885_s16 = smov 0  }
   0x2   :  { %s887_s17 = smov 0  }
   0x3 LB: > { %s618_s18 = sadd.s32 4294967295, %s853_s17   ;;  %s28_s19 = sadd.s32 1, %s849_s16  ;;  %s853_s17 = sphi %s887_s17, %s16_s17   ;;  %s849_s16 = sphi %s885_s16, %s1003_s16   ;;  %s845_s15 = sphi %s883_s15, %s1002_s15  }
   0x4   : > { %p29_p0 = scmp.ge.s32.totalorder %s28_s19, 9  ;;  %p619_p1 = scmp.ge.s32.totalorder %s853_s17, 1 }
   0x5   : > { %p176_p2 = scmp.lt.s32.totalorder %s853_s17, 10  ;;  %p908_p4 = scmp.eq.s32.totalorder %s618_s18, 0 }
   0x6   : > { %s1005_s19 = smov (%p29_p0, %s28_s19), 0  ;;  %s190_s24 = sshll.u32 %s997_s2, 4  ;;  %s191_s24 = int_to_ptr.hbm [resolvable:$true] %s190_s24 }
   0x7   : > { %p904_p3 = pnand %p619_p1, %p176_p2  ;;  %s855_s25 = smov [#allocation3]  }
   0x8   : > { %s192_s26 = sshll.u32 %s855_s25, 4  ;;  %s204_s29 = sshll.u32 %s998_s3, 4  ;;  %s193_s26 = int_to_ptr.vmem [resolvable:$true] %s192_s26  ;;  %s205_s29 = int_to_ptr.hbm [resolvable:$true] %s204_s29 }
   0x9   : > { %p725_p5 = pneg %p904_p3  ;;  %s856_s30 = smov [#allocation5]  }
   0xa   : > { %s206_s5 = sshll.u32 %s856_s30, 4  ;;  %245 = sbr.rel (%p904_p3) target bundleno = 209 (0xd1), region = 36  ;;  %s207_s5 = int_to_ptr.vmem [resolvable:$true] %s206_s5 }
   0xb   : > { %p726_p6 = pnand %p908_p4, %p725_p5 }
   0xd   : > { %728 = dma.hbm_to_vmem [thread:$0]  (!%p726_p6), %s191_s24, 32, %s193_s26, [#allocation4]  }
   0xe   : > { %731 = dma.hbm_to_vmem [thread:$0]  (!%p726_p6), %s205_s29, 32, %s207_s5, [#allocation6]  }
   0xf   : > { %836 = dma.done.wait (%p908_p4), [#allocation4], 32  }
  0x10   : > { %838 = vsyncadd (%p908_p4), [#allocation4], 4294967264 }
  0x11   : > { %840 = dma.done.wait (%p908_p4), [#allocation6], 32  }
  0x12   : > { %842 = vsyncadd (%p908_p4), [#allocation6], 4294967264  ;;  %p296_p7 = scmp.lt.s32.totalorder %s845_s15, 8  ;;  %s627_s6 = sshll.u32 %s845_s15, 4 }
  0x13   : > { %p304_p8 = scmp.lt.s32.totalorder %s627_s6, 143  ;;  %p630_p9 = scmp.ne.s32.totalorder %s845_s15, 0 }
  0x14   : > { %s297_s7 = scalar_select %p296_p7, %s845_s15, 8 }
  0x15   : > { %s1007_s6 = smov (!%p304_p8, %s627_s6), 143  ;;  %329 = sbr.rel (%p630_p9) target bundleno = 29 (0x1d), region = 48 }
  0x16   : > { %s626_s8 = sshll.u32 %s297_s7, 2  ;;  %s700_s12 = sshll.u32 %s1007_s6, 3 }
  0x17   : > { %s938_s11 = scalar_lea.vmem %s995_s0, %s626_s8  ;;  %s943_s18 = scalar_lea.vmem %s996_s1, %s700_s12 }
  0x1a   : > { %v857_v0 = vmov 0.0  }
  0x1b   : > { %330 = vst [vmem:[#allocation2] sm:$0xff] %v857_v0 }
  0x1c   : > { %331 = vst [vmem:[#allocation2 + $0x8] sm:$0xff] %v857_v0 }
  0x1d PF: > { %v689_v1 = vld [vmem:[%s943_s18 + $0x70] sm:$0xf]  ;;  %v716_v2 = vld [vmem:[%s943_s18 + $0x74] sm:$0xf0]  ;;  %v715_v3 = vld [vmem:[%s943_s18 + $0x74] sm:$0xf] }
  0x1e   : > { %v690_v4 = vor.u32 %v716_v2, %v689_v1  ;;  %v691_v5 = vld [vmem:[%s943_s18 + $0x78] sm:$0xf0]  ;;  %v681_v6 = vld [vmem:[%s943_s18 + $0x60] sm:$0xf]  ;;  %v714_v7 = vld [vmem:[%s943_s18 + $0x64] sm:$0xf0] }
  0x1f   : > { %v694_v8 = vor.u32 %v715_v3, %v691_v5  ;;  %v713_v9 = vld [vmem:[%s943_s18 + $0x64] sm:$0xf]  ;;  %v683_v10 = vld [vmem:[%s943_s18 + $0x68] sm:$0xf0]  ;;  %v682_v11 = vor.u32 %v714_v7, %v681_v6  ;;  %v673_v13 = vld [vmem:[%s943_s18 + $0x50] sm:$0xf] }
  0x20   : > { %431 = vmatpush.bf16.msra.mxu0 %v690_v4  ;;  %v686_v12 = vor.u32 %v713_v9, %v683_v10  ;;  %v712_v14 = vld [vmem:[%s943_s18 + $0x54] sm:$0xf0]  ;;  %v711_v15 = vld [vmem:[%s943_s18 + $0x54] sm:$0xf]  ;;  %v675_v16 = vld [vmem:[%s943_s18 + $0x58] sm:$0xf0] }
  0x21   : > { %444 = vmatpush.bf16.msra.mxu1 %v694_v8  ;;  %v674_v17 = vor.u32 %v712_v14, %v673_v13  ;;  %v678_v18 = vor.u32 %v711_v15, %v675_v16  ;;  %v665_v19 = vld [vmem:[%s943_s18 + $0x40] sm:$0xf]  ;;  %v710_v20 = vld [vmem:[%s943_s18 + $0x44] sm:$0xf0]  ;;  %v709_v21 = vld [vmem:[%s943_s18 + $0x44] sm:$0xf] }
  0x22   : > { %v667_v22 = vld [vmem:[%s943_s18 + $0x48] sm:$0xf0]  ;;  %v666_v23 = vor.u32 %v710_v20, %v665_v19  ;;  %v657_v25 = vld [vmem:[%s943_s18 + $0x30] sm:$0xf]  ;;  %v708_v26 = vld [vmem:[%s943_s18 + $0x34] sm:$0xf0] }
  0x23   : > { %v670_v24 = vor.u32 %v709_v21, %v667_v22  ;;  %v707_v27 = vld [vmem:[%s943_s18 + $0x34] sm:$0xf]  ;;  %v659_v28 = vld [vmem:[%s943_s18 + $0x38] sm:$0xf0]  ;;  %v658_v29 = vor.u32 %v708_v26, %v657_v25  ;;  %v649_v31 = vld [vmem:[%s943_s18 + $0x20] sm:$0xf] }
  0x24   : > { %432 = vmatpush.bf16.msra.mxu0 %v682_v11  ;;  %v662_v30 = vor.u32 %v707_v27, %v659_v28  ;;  %v706_v32 = vld [vmem:[%s943_s18 + $0x24] sm:$0xf0]  ;;  %v705_v33 = vld [vmem:[%s943_s18 + $0x24] sm:$0xf]  ;;  %v651_v34 = vld [vmem:[%s943_s18 + $0x28] sm:$0xf0] }
  0x25   : > { %445 = vmatpush.bf16.msra.mxu1 %v686_v12  ;;  %v650_v35 = vor.u32 %v706_v32, %v649_v31  ;;  %v654_v36 = vor.u32 %v705_v33, %v651_v34  ;;  %v641_v37 = vld [vmem:[%s943_s18 + $0x10] sm:$0xf]  ;;  %v704_v38 = vld [vmem:[%s943_s18 + $0x14] sm:$0xf0]  ;;  %v703_v39 = vld [vmem:[%s943_s18 + $0x14] sm:$0xf] }
  0x26   : > { %v643_v40 = vld [vmem:[%s943_s18 + $0x18] sm:$0xf0]  ;;  %v642_v41 = vor.u32 %v704_v38, %v641_v37  ;;  %v633_v43 = vld [vmem:[%s943_s18] sm:$0xf]  ;;  %v702_v44 = vld [vmem:[%s943_s18 + $0x4] sm:$0xf0] }
  0x27   : > { %v646_v42 = vor.u32 %v703_v39, %v643_v40  ;;  %v701_v45 = vld [vmem:[%s943_s18 + $0x4] sm:$0xf]  ;;  %v635_v46 = vld [vmem:[%s943_s18 + $0x8] sm:$0xf0]  ;;  %v634_v47 = vor.u32 %v702_v44, %v633_v43  ;;  %v334_v49 = vld [vmem:[%s938_s11] sm:$0xf] }
  0x28   : > { %433 = vmatpush.bf16.msra.mxu0 %v674_v17  ;;  %v638_v48 = vor.u32 %v701_v45, %v635_v46  ;;  %v332_v50 = vld [vmem:[#allocation2] sm:$0xff]  ;;  %v333_v51 = vld [vmem:[#allocation2 + $0x8] sm:$0xff]  ;;  %p695_p10 = scmp.ne.s32.totalorder %s845_s15, 8 }
  0x29   : > { %446 = vmatpush.bf16.msra.mxu1 %v678_v18 }
  0x2c   : > { %434 = vmatpush.bf16.msra.mxu0 %v666_v23 }
  0x2d   : > { %447 = vmatpush.bf16.msra.mxu1 %v670_v24 }
  0x30   : > { %435 = vmatpush.bf16.msra.mxu0 %v658_v29 }
  0x31   : > { %448 = vmatpush.bf16.msra.mxu1 %v662_v30 }
  0x34   : > { %436 = vmatpush.bf16.msra.mxu0 %v650_v35 }
  0x35   : > { %449 = vmatpush.bf16.msra.mxu1 %v654_v36 }
  0x38   : > { %437 = vmatpush.bf16.msra.mxu0 %v642_v41 }
  0x39   : > { %450 = vmatpush.bf16.msra.mxu1 %v646_v42 }
  0x3c   : > { %438 = vmatpush.bf16.msra.mxu0 %v634_v47 }
  0x3d   : > { %451 = vmatpush.bf16.msra.mxu1 %v638_v48 }
  0x3f   : > { %439 = vmatmul.bf16.vlgmr.msra.gmra.mxu0 %v334_v49 }
  0x40   : > { %452 = vmatmul.bf16.vlgmr.msra.gmra.mxu1 %v334_v49 }
  0xbc   : > { %v440_v52 = vpop.f32.mrf.mxu0 }
  0xbd   : > { %v457_v53 = vadd.f32 %v440_v52, %v332_v50  ;;  %v453_v54 = vpop.f32.mrf.mxu1 }
  0xbe   : > { %v458_v55 = vadd.f32 %v453_v54, %v333_v51 }
  0xbf   : > { %459 = vst [vmem:[#allocation2] sm:$0xff] %v457_v53 }
  0xc0   : > { %460 = vst [vmem:[#allocation2 + $0x8] sm:$0xff] %v458_v55 }
  0xc1   : > { %464 = sbr.rel (%p695_p10) target bundleno = 209 (0xd1), region = 52 }
  0xc4   : > { %v442_v56 = vpop.f32.mrf.mxu0 }
  0xc5   : > { %v455_v57 = vpop.f32.mrf.mxu1 }
  0xc6   : > { %v465_v58 = vld [vmem:[#allocation2] sm:$0xff]  ;;  %v467_v59 = vld [vmem:[#allocation3] sm:$0x3]  ;;  %v475_v60 = vld [vmem:[#allocation5] sm:$0x3] }
  0xc7   : > { %v469_v61 = vperm.slane %v467_v59, 0  ;;  %v477_v62 = vperm.slane %v475_v60, 0  ;;  %v466_v63 = vld [vmem:[#allocation2 + $0x8] sm:$0xff]  ;;  %v470_v0 = vperm.slane %v467_v59, 1  ;;  %v478_v1 = vperm.slane %v475_v60, 1 }
  0xc9   : > { %v473_v2 = vmul.f32 %v469_v61, %v465_v58  ;;  %v474_v3 = vmul.f32 %v470_v0, %v466_v63 }
  0xcb   : > { %v481_v4 = vadd.f32 %v477_v62, %v473_v2  ;;  %v482_v5 = vadd.f32 %v478_v1, %v474_v3 }
  0xcd   : > { %v483_v6 = vmax.f32 %v481_v4, 0.0  ;;  %v484_v7 = vmax.f32 %v482_v5, 0.0 }
  0xcf   : > { %485 = vst [vmem:[%s999_s4] sm:$0xff] %v483_v6 }
  0xd0   : > { %486 = vst [vmem:[%s999_s4 + $0x8] sm:$0xff] %v484_v7 }
  0xd1 PF: > { %s16_s17 = sadd.s32 1, %s853_s17   ;;  %s1002_s15 = smov %s849_s16 }
  0xd2   : > { %p13_p11 = scmp.ge.s32.totalorder %s16_s17, 11   ;;  %s1003_s16 = smov %s1005_s19 }
  0xd4   :  { %15 = sbr.rel (!%p13_p11) target bundleno = 3 (0x3), region = 88 }
  0xd9   :  { %517 = vsyncpa [#allocation4], 1 }
  0xda   :  { %519 = vsyncpa [#allocation4 + $0x1], 1 }
  0xdb   :  { %520 = vsyncpa [#allocation6], 1 }

// kernel: resnet_forward.22
= control target key start
LH: loop header
LB: loop body
LE: loop exit
PB: predicated region body
PF: predicated region fallthrough
CT: control target
= control target key end

     0   :  { %9 = vsyncpa [#allocation4], 0  ;;  %s433_s0 = inlined_call_operand.vmem [shape: bf16[8,128], index: 0, kind: input, shape index: {}]   ;;  %s434_s1 = inlined_call_operand.hbm [shape: bf16[128,256], index: 1, kind: input, shape index: {}]   ;;  %s435_s2 = inlined_call_operand.hbm [shape: f32[1,256], index: 2, kind: input, shape index: {}]   ;;  %s436_s3 = inlined_call_operand.hbm [shape: f32[1,256], index: 3, kind: input, shape index: {}]   ;;  %s437_s4 = inlined_call_operand.vmem [shape: f32[8,256], index: 4, kind: output, shape index: {}]  }
   0x1   :  { %10 = vsyncpa [#allocation6], 0  ;;  %s31_s17 = sshll.u32 %s435_s2, 4  ;;  %s385_s18 = smov [#allocation5]   ;;  %s32_s17 = int_to_ptr.hbm [resolvable:$true] %s31_s17 }
   0x2   :  { %s33_s19 = sshll.u32 %s385_s18, 4  ;;  %s17_s22 = sshll.u32 %s434_s1, 4  ;;  %s34_s19 = int_to_ptr.vmem [resolvable:$true] %s33_s19  ;;  %s18_s22 = int_to_ptr.hbm [resolvable:$true] %s17_s22 }
   0x3   :  { %36 = dma.hbm_to_vmem [thread:$0]  %s32_s17, 32, %s34_s19, [#allocation6]  }
   0x4   :  { %s386_s23 = smov [#allocation3]   ;;  %s387_s25 = smov 128  }
   0x5   :  { %s19_s24 = sshll.u32 %s386_s23, 4  ;;  %s388_s26 = smov 8   ;;  %s20_s24 = int_to_ptr.vmem [resolvable:$true] %s19_s24 }
   0x6   :  { %25 = dma.hbm_to_vmem [thread:$0]  %s18_s22, 2048, %s20_s24, [#allocation4], %s387_s25, %s387_s25, %s388_s26  }
   0x7   :  { %s42_s2 = sshll.u32 %s436_s3, 4  ;;  %s389_s29 = smov [#allocation7]   ;;  %s43_s2 = int_to_ptr.hbm [resolvable:$true] %s42_s2 }
   0x8   :  { %s44_s30 = sshll.u32 %s389_s29, 4  ;;  %s45_s30 = int_to_ptr.vmem [resolvable:$true] %s44_s30 }
   0x9   :  { %47 = dma.hbm_to_vmem [thread:$0]  %s43_s2, 32, %s45_s30, [#allocation6]  }
   0xa   :  { %381 = dma.done.wait [#allocation4], 2048  }
   0xb   :  { %382 = vsyncadd [#allocation4], 4294965248 }
   0xc   :  { %383 = dma.done.wait [#allocation6], 64  }
   0xd   :  { %384 = vsyncadd [#allocation6], 4294967232  ;;  %v282_v0 = vld [vmem:[#allocation3 + $0x70] sm:$0xf]  ;;  %v303_v1 = vld [vmem:[#allocation3 + $0x74] sm:$0xf0] }
   0xe   :  { %v302_v2 = vld [vmem:[#allocation3 + $0x74] sm:$0xf]  ;;  %v283_v3 = vor.u32 %v303_v1, %v282_v0  ;;  %v284_v4 = vld [vmem:[#allocation3 + $0x78] sm:$0xf0]  ;;  %v274_v5 = vld [vmem:[#allocation3 + $0x60] sm:$0xf] }
   0xf   :  { %v301_v6 = vld [vmem:[#allocation3 + $0x64] sm:$0xf0]  ;;  %v287_v7 = vor.u32 %v302_v2, %v284_v4  ;;  %v300_v8 = vld [vmem:[#allocation3 + $0x64] sm:$0xf]  ;;  %v276_v9 = vld [vmem:[#allocation3 + $0x68] sm:$0xf0] }
  0x10   :  { %165 = vmatpush.bf16.msra.mxu0 %v283_v3  ;;  %v275_v10 = vor.u32 %v301_v6, %v274_v5  ;;  %v279_v11 = vor.u32 %v300_v8, %v276_v9  ;;  %v266_v12 = vld [vmem:[#allocation3 + $0x50] sm:$0xf]  ;;  %v299_v13 = vld [vmem:[#allocation3 + $0x54] sm:$0xf0]  ;;  %v298_v14 = vld [vmem:[#allocation3 + $0x54] sm:$0xf] }
  0x11   :  { %178 = vmatpush.bf16.msra.mxu1 %v287_v7  ;;  %v268_v15 = vld [vmem:[#allocation3 + $0x58] sm:$0xf0]  ;;  %v267_v16 = vor.u32 %v299_v13, %v266_v12  ;;  %v258_v18 = vld [vmem:[#allocation3 + $0x40] sm:$0xf]  ;;  %v297_v19 = vld [vmem:[#allocation3 + $0x44] sm:$0xf0] }
  0x12   :  { %v271_v17 = vor.u32 %v298_v14, %v268_v15  ;;  %v296_v20 = vld [vmem:[#allocation3 + $0x44] sm:$0xf]  ;;  %v260_v21 = vld [vmem:[#allocation3 + $0x48] sm:$0xf0]  ;;  %v259_v22 = vor.u32 %v297_v19, %v258_v18  ;;  %v250_v24 = vld [vmem:[#allocation3 + $0x30] sm:$0xf] }
  0x13   :  { %v263_v23 = vor.u32 %v296_v20, %v260_v21  ;;  %v295_v25 = vld [vmem:[#allocation3 + $0x34] sm:$0xf0]  ;;  %v294_v26 = vld [vmem:[#allocation3 + $0x34] sm:$0xf]  ;;  %v252_v27 = vld [vmem:[#allocation3 + $0x38] sm:$0xf0] }
  0x14   :  { %166 = vmatpush.bf16.msra.mxu0 %v275_v10  ;;  %v251_v28 = vor.u32 %v295_v25, %v250_v24  ;;  %v255_v29 = vor.u32 %v294_v26, %v252_v27  ;;  %v242_v30 = vld [vmem:[#allocation3 + $0x20] sm:$0xf]  ;;  %v293_v31 = vld [vmem:[#allocation3 + $0x24] sm:$0xf0]  ;;  %v292_v32 = vld [vmem:[#allocation3 + $0x24] sm:$0xf] }
  0x15   :  { %179 = vmatpush.bf16.msra.mxu1 %v279_v11  ;;  %v244_v33 = vld [vmem:[#allocation3 + $0x28] sm:$0xf0]  ;;  %v243_v34 = vor.u32 %v293_v31, %v242_v30  ;;  %v234_v36 = vld [vmem:[#allocation3 + $0x10] sm:$0xf]  ;;  %v291_v37 = vld [vmem:[#allocation3 + $0x14] sm:$0xf0] }
  0x16   :  { %v247_v35 = vor.u32 %v292_v32, %v244_v33  ;;  %v290_v38 = vld [vmem:[#allocation3 + $0x14] sm:$0xf]  ;;  %v236_v39 = vld [vmem:[#allocation3 + $0x18] sm:$0xf0]  ;;  %v235_v40 = vor.u32 %v291_v37, %v234_v36  ;;  %v226_v42 = vld [vmem:[#allocation3] sm:$0xf] }
  0x17   :  { %v239_v41 = vor.u32 %v290_v38, %v236_v39  ;;  %v289_v43 = vld [vmem:[#allocation3 + $0x4] sm:$0xf0]  ;;  %v288_v44 = vld [vmem:[#allocation3 + $0x4] sm:$0xf]  ;;  %v228_v45 = vld [vmem:[#allocation3 + $0x8] sm:$0xf0] }
  0x18   :  { %167 = vmatpush.bf16.msra.mxu0 %v267_v16  ;;  %v227_v46 = vor.u32 %v289_v43, %v226_v42  ;;  %v231_v47 = vor.u32 %v288_v44, %v228_v45  ;;  %v68_v48 = vld [vmem:[%s433_s0] sm:$0xf] }
  0x19   :  { %180 = vmatpush.bf16.msra.mxu1 %v271_v17  ;;  %v200_v49 = vld [vmem:[#allocation5] sm:$0x3]  ;;  %v208_v50 = vld [vmem:[#allocation7] sm:$0x3] }
  0x1a   :  { %v202_v51 = vperm.slane %v200_v49, 0  ;;  %v203_v52 = vperm.slane %v200_v49, 1  ;;  %v210_v53 = vperm.slane %v208_v50, 0  ;;  %v211_v55 = vperm.slane %v208_v50, 1 }
  0x1c   :  { %168 = vmatpush.bf16.msra.mxu0 %v259_v22 }
  0x1d   :  { %181 = vmatpush.bf16.msra.mxu1 %v263_v23 }
  0x20   :  { %169 = vmatpush.bf16.msra.mxu0 %v251_v28 }
  0x21   :  { %182 = vmatpush.bf16.msra.mxu1 %v255_v29 }
  0x24   :  { %170 = vmatpush.bf16.msra.mxu0 %v243_v34 }
  0x25   :  { %183 = vmatpush.bf16.msra.mxu1 %v247_v35 }
  0x28   :  { %171 = vmatpush.bf16.msra.mxu0 %v235_v40 }
  0x29   :  { %184 = vmatpush.bf16.msra.mxu1 %v239_v41 }
  0x2c   :  { %172 = vmatpush.bf16.msra.mxu0 %v227_v46 }
  0x2d   :  { %185 = vmatpush.bf16.msra.mxu1 %v231_v47 }
  0x2f   :  { %173 = vmatmul.bf16.vlgmr.msra.gmra.mxu0 %v68_v48 }
  0x30   :  { %186 = vmatmul.bf16.vlgmr.msra.gmra.mxu1 %v68_v48 }
  0xac   :  { %v174_v54 = vpop.f32.mrf.mxu0 }
  0xad   :  { %v206_v56 = vmul.f32 %v202_v51, %v174_v54  ;;  %v187_v57 = vpop.f32.mrf.mxu1 }
  0xae   :  { %v207_v58 = vmul.f32 %v203_v52, %v187_v57 }
  0xaf   :  { %v214_v59 = vadd.f32 %v210_v53, %v206_v56 }
  0xb0   :  { %v215_v60 = vadd.f32 %v211_v55, %v207_v58 }
  0xb1   :  { %216 = vst [vmem:[%s437_s4] sm:$0xff] %v214_v59 }
  0xb2   :  { %217 = vst [vmem:[%s437_s4 + $0x8] sm:$0xff] %v215_v60 }
  0xb4   :  { %v176_v61 = vpop.f32.mrf.mxu0 }
  0xb5   :  { %v189_v62 = vpop.f32.mrf.mxu1 }
  0xb6   :  { %222 = vsyncpa [#allocation4], 1 }
  0xb7   :  { %223 = vsyncpa [#allocation6], 1 }

// kernel: resnet_forward.24
= control target key start
LH: loop header
LB: loop body
LE: loop exit
PB: predicated region body
PF: predicated region fallthrough
CT: control target
= control target key end

     0   :  { %10 = vsyncpa [#allocation4], 0  ;;  %s1341_s0 = inlined_call_operand.vmem [shape: bf16[8,2304], index: 0, kind: input, shape index: {}]   ;;  %s1342_s1 = inlined_call_operand.vmem [shape: bf16[2304,256], index: 1, kind: input, shape index: {}]   ;;  %s1343_s2 = inlined_call_operand.hbm [shape: f32[1,256], index: 2, kind: input, shape index: {}]   ;;  %s1344_s3 = inlined_call_operand.hbm [shape: f32[1,256], index: 3, kind: input, shape index: {}]   ;;  %s1345_s4 = inlined_call_operand.vmem [shape: f32[8,256], index: 4, kind: input, shape index: {}]   ;;  %s1346_s5 = inlined_call_operand.vmem [shape: f32[8,256], index: 5, kind: output, shape index: {}]  }
   0x1   :  { %11 = vsyncpa [#allocation6], 0  ;;  %s1192_s18 = smov 0   ;;  %s1194_s19 = smov 0  }
   0x2   :  { %s1196_s20 = smov 0  }
   0x3 LB: > { %s840_s21 = sadd.s32 4294967295, %s1157_s20   ;;  %s29_s22 = sadd.s32 1, %s1153_s19  ;;  %s1157_s20 = sphi %s1196_s20, %s17_s20   ;;  %s1153_s19 = sphi %s1194_s19, %s1350_s19   ;;  %s1149_s18 = sphi %s1192_s18, %s1349_s18  }
   0x4   : > { %p30_p0 = scmp.ge.s32.totalorder %s29_s22, 9  ;;  %p841_p1 = scmp.ge.s32.totalorder %s1157_s20, 1 }
   0x5   : > { %p205_p2 = scmp.lt.s32.totalorder %s1157_s20, 10  ;;  %p1217_p4 = scmp.eq.s32.totalorder %s840_s21, 0 }
   0x6   : > { %s1352_s22 = smov (%p30_p0, %s29_s22), 0  ;;  %s219_s27 = sshll.u32 %s1343_s2, 4  ;;  %s220_s27 = int_to_ptr.hbm [resolvable:$true] %s219_s27 }
   0x7   : > { %p1213_p3 = pnand %p841_p1, %p205_p2  ;;  %s1159_s28 = smov [#allocation3]  }
   0x8   : > { %s221_s29 = sshll.u32 %s1159_s28, 4  ;;  %s233_s7 = sshll.u32 %s1344_s3, 4  ;;  %s222_s29 = int_to_ptr.vmem [resolvable:$true] %s221_s29  ;;  %s234_s7 = int_to_ptr.hbm [resolvable:$true] %s233_s7 }
   0x9   : > { %p1029_p5 = pneg %p1213_p3  ;;  %s1160_s8 = smov [#allocation5]  }
   0xa   : > { %s235_s9 = sshll.u32 %s1160_s8, 4  ;;  %289 = sbr.rel (%p1213_p3) target bundleno = 221 (0xdd), region = 40  ;;  %s236_s9 = int_to_ptr.vmem [resolvable:$true] %s235_s9 }
   0xb   : > { %p1030_p6 = pnand %p1217_p4, %p1029_p5 }
   0xd   : > { %1032 = dma.hbm_to_vmem [thread:$0]  (!%p1030_p6), %s220_s27, 32, %s222_s29, [#allocation4]  }
   0xe   : > { %1035 = dma.hbm_to_vmem [thread:$0]  (!%p1030_p6), %s234_s7, 32, %s236_s9, [#allocation6]  }
   0xf   : > { %1140 = dma.done.wait (%p1217_p4), [#allocation4], 32  }
  0x10   : > { %1142 = vsyncadd (%p1217_p4), [#allocation4], 4294967264 }
  0x11   : > { %1144 = dma.done.wait (%p1217_p4), [#allocation6], 32  }
  0x12   : > { %1146 = vsyncadd (%p1217_p4), [#allocation6], 4294967264  ;;  %s849_s10 = sshll.u32 %s1149_s18, 1  ;;  %s851_s11 = sshll.u32 %s1149_s18, 5 }
  0x13   : > { %p353_p7 = scmp.lt.s32.totalorder %s849_s10, 17  ;;  %p362_p8 = scmp.lt.s32.totalorder %s851_s11, 287 }
  0x14   : > { %p854_p9 = scmp.ne.s32.totalorder %s1149_s18, 0 }
  0x15   : > { %s1354_s10 = smov (!%p353_p7, %s849_s10), 17  ;;  %s1356_s11 = smov (!%p362_p8, %s851_s11), 287 }
  0x16   : > { %s850_s12 = sshll.u32 %s1354_s10, 2  ;;  %s988_s16 = sshll.u32 %s1356_s11, 3 }
  0x17   : > { %s1246_s15 = scalar_lea.vmem %s1341_s0, %s850_s12  ;;  %s1251_s23 = scalar_lea.vmem %s1342_s1, %s988_s16 }
  0x18   : > { %397 = sbr.rel (%p854_p9) target bundleno = 32 (0x20), region = 52 }
  0x1d   : > { %v1161_v0 = vmov 0.0  }
  0x1e   : > { %398 = vst [vmem:[#allocation2] sm:$0xff] %v1161_v0 }
  0x1f   : > { %399 = vst [vmem:[#allocation2 + $0x8] sm:$0xff] %v1161_v0 }
  0x20 PF: > { %v913_v1 = vld [vmem:[%s1251_s23 + $0x70] sm:$0xf]  ;;  %v1004_v2 = vld [vmem:[%s1251_s23 + $0x74] sm:$0xf0]  ;;  %v1003_v6 = vld [vmem:[%s1251_s23 + $0x74] sm:$0xf] }
  0x21   : > { %v977_v3 = vld [vmem:[%s1251_s23 + $0xf0] sm:$0xf]  ;;  %v914_v4 = vor.u32 %v1004_v2, %v913_v1  ;;  %v1020_v5 = vld [vmem:[%s1251_s23 + $0xf4] sm:$0xf0]  ;;  %v915_v7 = vld [vmem:[%s1251_s23 + $0x78] sm:$0xf0] }
  0x22   : > { %v978_v8 = vor.u32 %v1020_v5, %v977_v3  ;;  %v918_v9 = vor.u32 %v1003_v6, %v915_v7  ;;  %v1019_v10 = vld [vmem:[%s1251_s23 + $0xf4] sm:$0xf]  ;;  %v979_v11 = vld [vmem:[%s1251_s23 + $0xf8] sm:$0xf0]  ;;  %v905_v12 = vld [vmem:[%s1251_s23 + $0x60] sm:$0xf] }
  0x23   : > { %602 = vmatpush.bf16.msra.mxu0 %v914_v4  ;;  %v982_v13 = vor.u32 %v1019_v10, %v979_v11  ;;  %v1002_v14 = vld [vmem:[%s1251_s23 + $0x64] sm:$0xf0]  ;;  %v969_v15 = vld [vmem:[%s1251_s23 + $0xe0] sm:$0xf]  ;;  %v1001_v19 = vld [vmem:[%s1251_s23 + $0x64] sm:$0xf] }
  0x24   : > { %v1018_v16 = vld [vmem:[%s1251_s23 + $0xe4] sm:$0xf0]  ;;  %615 = vmatpush.bf16.msra.mxu1 %v978_v8  ;;  %628 = vmatpush.bf16.msra.mxu2 %v918_v9  ;;  %v906_v17 = vor.u32 %v1002_v14, %v905_v12  ;;  %v907_v20 = vld [vmem:[%s1251_s23 + $0x68] sm:$0xf0]  ;;  %v1017_v21 = vld [vmem:[%s1251_s23 + $0xe4] sm:$0xf] }
  0x25   : > { %v970_v18 = vor.u32 %v1018_v16, %v969_v15  ;;  %641 = vmatpush.bf16.msra.mxu3 %v982_v13  ;;  %v910_v22 = vor.u32 %v1001_v19, %v907_v20  ;;  %v971_v23 = vld [vmem:[%s1251_s23 + $0xe8] sm:$0xf0]  ;;  %v897_v24 = vld [vmem:[%s1251_s23 + $0x50] sm:$0xf]  ;;  %v1000_v25 = vld [vmem:[%s1251_s23 + $0x54] sm:$0xf0] }
  0x26   : > { %v974_v26 = vor.u32 %v1017_v21, %v971_v23  ;;  %v961_v27 = vld [vmem:[%s1251_s23 + $0xd0] sm:$0xf]  ;;  %v1016_v28 = vld [vmem:[%s1251_s23 + $0xd4] sm:$0xf0]  ;;  %v999_v29 = vld [vmem:[%s1251_s23 + $0x54] sm:$0xf]  ;;  %v898_v30 = vor.u32 %v1000_v25, %v897_v24 }
  0x27   : > { %603 = vmatpush.bf16.msra.mxu0 %v906_v17  ;;  %v899_v31 = vld [vmem:[%s1251_s23 + $0x58] sm:$0xf0]  ;;  %v1015_v32 = vld [vmem:[%s1251_s23 + $0xd4] sm:$0xf]  ;;  %v962_v34 = vor.u32 %v1016_v28, %v961_v27  ;;  %v889_v36 = vld [vmem:[%s1251_s23 + $0x40] sm:$0xf] }
  0x28   : > { %v963_v33 = vld [vmem:[%s1251_s23 + $0xd8] sm:$0xf0]  ;;  %616 = vmatpush.bf16.msra.mxu1 %v970_v18  ;;  %629 = vmatpush.bf16.msra.mxu2 %v910_v22  ;;  %v902_v35 = vor.u32 %v999_v29, %v899_v31  ;;  %v998_v37 = vld [vmem:[%s1251_s23 + $0x44] sm:$0xf0]  ;;  %v953_v38 = vld [vmem:[%s1251_s23 + $0xc0] sm:$0xf] }
  0x29   : > { %642 = vmatpush.bf16.msra.mxu3 %v974_v26  ;;  %v966_v39 = vor.u32 %v1015_v32, %v963_v33  ;;  %v1014_v40 = vld [vmem:[%s1251_s23 + $0xc4] sm:$0xf0]  ;;  %v997_v41 = vld [vmem:[%s1251_s23 + $0x44] sm:$0xf]  ;;  %v891_v42 = vld [vmem:[%s1251_s23 + $0x48] sm:$0xf0]  ;;  %v890_v45 = vor.u32 %v998_v37, %v889_v36 }
  0x2a   : > { %v1013_v43 = vld [vmem:[%s1251_s23 + $0xc4] sm:$0xf]  ;;  %v955_v44 = vld [vmem:[%s1251_s23 + $0xc8] sm:$0xf0]  ;;  %v954_v46 = vor.u32 %v1014_v40, %v953_v38  ;;  %v894_v47 = vor.u32 %v997_v41, %v891_v42  ;;  %v881_v48 = vld [vmem:[%s1251_s23 + $0x30] sm:$0xf] }
  0x2b   : > { %604 = vmatpush.bf16.msra.mxu0 %v898_v30  ;;  %v996_v49 = vld [vmem:[%s1251_s23 + $0x34] sm:$0xf0]  ;;  %v945_v50 = vld [vmem:[%s1251_s23 + $0xb0] sm:$0xf]  ;;  %v958_v51 = vor.u32 %v1013_v43, %v955_v44  ;;  %v995_v53 = vld [vmem:[%s1251_s23 + $0x34] sm:$0xf] }
  0x2c   : > { %617 = vmatpush.bf16.msra.mxu1 %v962_v34  ;;  %630 = vmatpush.bf16.msra.mxu2 %v902_v35  ;;  %v1012_v52 = vld [vmem:[%s1251_s23 + $0xb4] sm:$0xf0]  ;;  %v883_v54 = vld [vmem:[%s1251_s23 + $0x38] sm:$0xf0]  ;;  %v1011_v55 = vld [vmem:[%s1251_s23 + $0xb4] sm:$0xf]  ;;  %v882_v57 = vor.u32 %v996_v49, %v881_v48 }
  0x2d   : > { %643 = vmatpush.bf16.msra.mxu3 %v966_v39  ;;  %v947_v56 = vld [vmem:[%s1251_s23 + $0xb8] sm:$0xf0]  ;;  %v946_v58 = vor.u32 %v1012_v52, %v945_v50  ;;  %v886_v59 = vor.u32 %v995_v53, %v883_v54  ;;  %v873_v60 = vld [vmem:[%s1251_s23 + $0x20] sm:$0xf]  ;;  %v994_v61 = vld [vmem:[%s1251_s23 + $0x24] sm:$0xf0] }
  0x2e   : > { %v937_v62 = vld [vmem:[%s1251_s23 + $0xa0] sm:$0xf]  ;;  %v950_v63 = vor.u32 %v1011_v55, %v947_v56  ;;  %v1010_v0 = vld [vmem:[%s1251_s23 + $0xa4] sm:$0xf0]  ;;  %v993_v1 = vld [vmem:[%s1251_s23 + $0x24] sm:$0xf]  ;;  %v874_v5 = vor.u32 %v994_v61, %v873_v60 }
  0x2f   : > { %605 = vmatpush.bf16.msra.mxu0 %v890_v45  ;;  %v875_v2 = vld [vmem:[%s1251_s23 + $0x28] sm:$0xf0]  ;;  %v1009_v3 = vld [vmem:[%s1251_s23 + $0xa4] sm:$0xf]  ;;  %v938_v6 = vor.u32 %v1010_v0, %v937_v62  ;;  %v865_v8 = vld [vmem:[%s1251_s23 + $0x10] sm:$0xf] }
  0x30   : > { %618 = vmatpush.bf16.msra.mxu1 %v954_v46  ;;  %631 = vmatpush.bf16.msra.mxu2 %v894_v47  ;;  %v939_v4 = vld [vmem:[%s1251_s23 + $0xa8] sm:$0xf0]  ;;  %v878_v7 = vor.u32 %v993_v1, %v875_v2  ;;  %v992_v9 = vld [vmem:[%s1251_s23 + $0x14] sm:$0xf0]  ;;  %v929_v10 = vld [vmem:[%s1251_s23 + $0x90] sm:$0xf] }
  0x31   : > { %644 = vmatpush.bf16.msra.mxu3 %v958_v51  ;;  %v942_v11 = vor.u32 %v1009_v3, %v939_v4  ;;  %v1008_v12 = vld [vmem:[%s1251_s23 + $0x94] sm:$0xf0]  ;;  %v991_v13 = vld [vmem:[%s1251_s23 + $0x14] sm:$0xf]  ;;  %v867_v14 = vld [vmem:[%s1251_s23 + $0x18] sm:$0xf0]  ;;  %v866_v17 = vor.u32 %v992_v9, %v865_v8 }
  0x32   : > { %v1007_v15 = vld [vmem:[%s1251_s23 + $0x94] sm:$0xf]  ;;  %v931_v16 = vld [vmem:[%s1251_s23 + $0x98] sm:$0xf0]  ;;  %v402_v18 = vld [vmem:[%s1246_s15] sm:$0xff]  ;;  %v930_v19 = vor.u32 %v1008_v12, %v929_v10  ;;  %v870_v20 = vor.u32 %v991_v13, %v867_v14  ;;  %p983_p10 = scmp.ne.s32.totalorder %s1149_s18, 8 }
  0x33   : > { %606 = vmatpush.bf16.msra.mxu0 %v882_v57  ;;  %v857_v21 = vld [vmem:[%s1251_s23] sm:$0xf]  ;;  %v990_v22 = vld [vmem:[%s1251_s23 + $0x4] sm:$0xf0]  ;;  %v934_v24 = vor.u32 %v1007_v15, %v931_v16  ;;  %v989_v26 = vld [vmem:[%s1251_s23 + $0x4] sm:$0xf]  ;;  %v436_v30 = vunpack.c.l.b16 %v402_v18  ;;  %v437_v32 = vunpack.c.h.b16 %v402_v18 }
  0x34   : > { %619 = vmatpush.bf16.msra.mxu1 %v946_v58  ;;  %632 = vmatpush.bf16.msra.mxu2 %v886_v59  ;;  %v921_v23 = vld [vmem:[%s1251_s23 + $0x80] sm:$0xf]  ;;  %v1006_v25 = vld [vmem:[%s1251_s23 + $0x84] sm:$0xf0]  ;;  %v859_v27 = vld [vmem:[%s1251_s23 + $0x8] sm:$0xf0]  ;;  %v858_v31 = vor.u32 %v990_v22, %v857_v21 }
  0x35   : > { %645 = vmatpush.bf16.msra.mxu3 %v950_v63  ;;  %v1005_v28 = vld [vmem:[%s1251_s23 + $0x84] sm:$0xf]  ;;  %v923_v29 = vld [vmem:[%s1251_s23 + $0x88] sm:$0xf0]  ;;  %v922_v33 = vor.u32 %v1006_v25, %v921_v23  ;;  %v862_v34 = vor.u32 %v989_v26, %v859_v27  ;;  %v438_v36 = vpack.c.b16 %v436_v30, %v436_v30  ;;  %v439_v37 = vpack.c.b16 %v437_v32, %v437_v32 }
  0x36   : > { %v926_v35 = vor.u32 %v1005_v28, %v923_v29  ;;  %v400_v39 = vld [vmem:[#allocation2] sm:$0xff]  ;;  %v401_v44 = vld [vmem:[#allocation2 + $0x8] sm:$0xff] }
  0x37   : > { %607 = vmatpush.bf16.msra.mxu0 %v874_v5 }
  0x38   : > { %620 = vmatpush.bf16.msra.mxu1 %v938_v6  ;;  %633 = vmatpush.bf16.msra.mxu2 %v878_v7 }
  0x39   : > { %646 = vmatpush.bf16.msra.mxu3 %v942_v11 }
  0x3b   : > { %608 = vmatpush.bf16.msra.mxu0 %v866_v17 }
  0x3c   : > { %621 = vmatpush.bf16.msra.mxu1 %v930_v19  ;;  %634 = vmatpush.bf16.msra.mxu2 %v870_v20 }
  0x3d   : > { %647 = vmatpush.bf16.msra.mxu3 %v934_v24 }
  0x3f   : > { %609 = vmatpush.bf16.msra.mxu0 %v858_v31 }
  0x40   : > { %622 = vmatpush.bf16.msra.mxu1 %v922_v33  ;;  %635 = vmatpush.bf16.msra.mxu2 %v862_v34 }
  0x41   : > { %648 = vmatpush.bf16.msra.mxu3 %v926_v35 }
  0x42   : > { %610 = vmatmul.bf16.vlgmr.msra.gmra.mxu0 %v438_v36 }
  0x43   : > { %623 = vmatmul.bf16.vlgmr.msra.gmra.mxu1 %v439_v37  ;;  %636 = vmatmul.bf16.vlgmr.msra.gmra.mxu2 %v438_v36 }
  0x44   : > { %649 = vmatmul.bf16.vlgmr.msra.gmra.mxu3 %v439_v37 }
  0xbf   : > { %v611_v38 = vpop.f32.mrf.mxu0 }
  0xc0   : > { %v624_v40 = vpop.f32.mrf.mxu1 }
  0xc1   : > { %v625_v41 = vadd.f32 %v624_v40, %v611_v38 }
  0xc3   : > { %v654_v42 = vadd.f32 %v625_v41, %v400_v39 }
  0xc5   : > { %656 = vst [vmem:[#allocation2] sm:$0xff] %v654_v42 }
  0xc6   : > { %v637_v43 = vpop.f32.mrf.mxu2 }
  0xc7   : > { %v650_v45 = vpop.f32.mrf.mxu3  ;;  %v613_v46 = vpop.f32.mrf.mxu0 }
  0xc8   : > { %v651_v47 = vadd.f32 %v650_v45, %v637_v43  ;;  %v626_v48 = vpop.f32.mrf.mxu1 }
  0xca   : > { %v655_v49 = vadd.f32 %v651_v47, %v401_v44 }
  0xcb   : > { %661 = sbr.rel (%p983_p10) target bundleno = 221 (0xdd), region = 56 }
  0xcc   : > { %657 = vst [vmem:[#allocation2 + $0x8] sm:$0xff] %v655_v49 }
  0xce   : > { %v639_v50 = vpop.f32.mrf.mxu2 }
  0xcf   : > { %v652_v51 = vpop.f32.mrf.mxu3 }
  0xd0   : > { %v662_v52 = vld [vmem:[#allocation2] sm:$0xff]  ;;  %v664_v53 = vld [vmem:[#allocation3] sm:$0x3]  ;;  %v672_v54 = vld [vmem:[#allocation5] sm:$0x3] }
  0xd1   : > { %v666_v55 = vperm.slane %v664_v53, 0  ;;  %v674_v56 = vperm.slane %v672_v54, 0  ;;  %v667_v58 = vperm.slane %v664_v53, 1  ;;  %v675_v59 = vperm.slane %v672_v54, 1  ;;  %v680_v62 = vld [vmem:[%s1345_s4] sm:$0xff]  ;;  %v681_v63 = vld [vmem:[%s1345_s4 + $0x8] sm:$0xff] }
  0xd3   : > { %v663_v57 = vld [vmem:[#allocation2 + $0x8] sm:$0xff]  ;;  %v670_v60 = vmul.f32 %v666_v55, %v662_v52 }
  0xd4   : > { %v671_v61 = vmul.f32 %v667_v58, %v663_v57 }
  0xd5   : > { %v678_v0 = vadd.f32 %v674_v56, %v670_v60 }
  0xd6   : > { %v679_v1 = vadd.f32 %v675_v59, %v671_v61 }
  0xd7   : > { %v682_v2 = vadd.f32 %v680_v62, %v678_v0 }
  0xd8   : > { %v683_v3 = vadd.f32 %v681_v63, %v679_v1 }
  0xd9   : > { %v684_v4 = vmax.f32 %v682_v2, 0.0 }
  0xda   : > { %v685_v5 = vmax.f32 %v683_v3, 0.0 }
  0xdb   : > { %686 = vst [vmem:[%s1346_s5] sm:$0xff] %v684_v4 }
  0xdc   : > { %687 = vst [vmem:[%s1346_s5 + $0x8] sm:$0xff] %v685_v5 }
  0xdd PF: > { %s17_s20 = sadd.s32 1, %s1157_s20   ;;  %s1349_s18 = smov %s1153_s19 }
  0xde   : > { %p14_p11 = scmp.ge.s32.totalorder %s17_s20, 11   ;;  %s1350_s19 = smov %s1352_s22 }
  0xe0   :  { %16 = sbr.rel (!%p14_p11) target bundleno = 3 (0x3), region = 95 }
  0xe5   :  { %718 = vsyncpa [#allocation4], 1 }
  0xe6   :  { %720 = vsyncpa [#allocation4 + $0x1], 1 }
  0xe7   :  { %721 = vsyncpa [#allocation6], 1 }

// kernel: resnet_forward.26
= control target key start
LH: loop header
LB: loop body
LE: loop exit
PB: predicated region body
PF: predicated region fallthrough
CT: control target
= control target key end

     0   :  { %s1212_s15 = smov 0   ;;  %s1214_s16 = smov 0   ;;  %s1468_s0 = inlined_call_operand.vmem [shape: bf16[8,2304], index: 0, kind: input, shape index: {}]   ;;  %s1469_s1 = inlined_call_operand.vmem [shape: bf16[2304,512], index: 1, kind: input, shape index: {}]   ;;  %s1470_s2 = inlined_call_operand.vmem [shape: f32[1,512], index: 2, kind: input, shape index: {}]   ;;  %s1471_s3 = inlined_call_operand.vmem [shape: f32[1,512], index: 3, kind: input, shape index: {}]   ;;  %s1472_s4 = inlined_call_operand.vmem [shape: f32[8,512], index: 4, kind: output, shape index: {}]  }
   0x1   :  { %s1216_s17 = smov 0   ;;  %s1218_s18 = smov 0  }
   0x2   :  { %s1220_s19 = smov 0   ;;  %s1222_s20 = smov 0  }
   0x3   :  { %s1224_s21 = smov 0  }
   0x4 LB: > { %s26_s22 = sadd.s32 1, %s1176_s19  ;;  %s29_s23 = sadd.s32 1, %s1180_s20  ;;  %s1184_s21 = sphi %s1224_s21, %s14_s21   ;;  %s1180_s20 = sphi %s1222_s20, %s1478_s20   ;;  %s1176_s19 = sphi %s1220_s19, %s1477_s19   ;;  %s1172_s18 = sphi %s1218_s18, %s1476_s18   ;;  %s1168_s17 = sphi %s1216_s17, %s1475_s17   ;;  %s1164_s16 = sphi %s1214_s16, %s1474_s16   ;;  %s1160_s15 = sphi %s1212_s15, %s1473_s15  }
   0x5   : > { %p27_p0 = scmp.ge.s32.totalorder %s26_s22, 9  ;;  %p77_p1 = scmp.ne.s32.totalorder %s1164_s16, %s1160_s15 }
   0x6   : > { %p78_p2 = scmp.eq.s32.totalorder %s1184_s21, 0  ;;  %s70_s27 = sadd.s32 1, %s1164_s16 }
   0x7   : > { %s1480_s22 = smov (%p27_p0, %s26_s22), 0  ;;  %s1482_s23 = smov (!%p27_p0, %s29_s23), %s1180_s20 }
   0x8   : > { %p79_p3 = por %p78_p2, %p77_p1  ;;  %p31_p4 = scmp.ge.s32.totalorder %s1482_s23, 2 }
   0x9   : > { %s65_s24 = ssub.s32 %s1176_s19, %s1480_s22  ;;  %p894_p6 = scmp.ge.s32.totalorder %s1184_s21, 18 }
   0xa   : > { %s1484_s23 = smov (%p31_p4, %s1482_s23), 0 }
   0xb   : > { %s66_s25 = ssub.s32 %s1180_s20, %s1484_s23  ;;  %183 = sbr.rel (%p894_p6) target bundleno = 55 (0x37), region = 16 }
   0xc   : > { %s67_s26 = sor.u32 %s66_s25, %s65_s24 }
   0xd   : > { %p68_p5 = scmp.eq.s32.totalorder %s67_s26, 0 }
   0xf   : > { %s1263_s28 = scalar_select %p68_p5, %s1164_s16, %s70_s27  }
  0x10   : > { %199 = sbr.rel (!%p79_p3) target bundleno = 55 (0x37), region = 24  ;;  %s201_s29 = sand.u32 (%p79_p3), 1, %s1164_s16  }
  0x11   : > { %s897_s30 = sshll.u32 (%p79_p3), %s1180_s20, 1  ;;  %s895_s5 = sshll.u32 (%p79_p3), %s201_s29, 8 }
  0x12   : > { %s1040_s6 = sshll.u32 (%p79_p3), %s1176_s19, 7  ;;  %s1277_s12 = scalar_lea.vmem (%p79_p3), [#allocation3], %s895_s5 }
  0x13   : > { %s207_s7 = sadd.s32 (%p79_p3), %s1040_s6, %s897_s30 }
  0x14   : > { %s899_s8 = sshll.u32 (%p79_p3), %s207_s7, 2 }
  0x15   : > { %s1272_s11 = scalar_lea.vmem %s1469_s1, %s899_s8 }
  0x16   : > { %v300_v0 = vld [vmem:[%s1272_s11] sm:$0xff]  ;;  %v302_v1 = vld [vmem:[%s1272_s11 + $0x10] sm:$0xff] }
  0x17   : > { %v304_v2 = vld [vmem:[%s1272_s11 + $0x20] sm:$0xff]  ;;  %301 = vst [vmem:[%s1277_s12] sm:$0xff] %v300_v0  ;;  %v306_v3 = vld [vmem:[%s1272_s11 + $0x30] sm:$0xff] }
  0x18   : > { %303 = vst [vmem:[%s1277_s12 + $0x8] sm:$0xff] %v302_v1  ;;  %v308_v4 = vld [vmem:[%s1272_s11 + $0x40] sm:$0xff]  ;;  %v310_v5 = vld [vmem:[%s1272_s11 + $0x50] sm:$0xff] }
  0x19   : > { %305 = vst [vmem:[%s1277_s12 + $0x10] sm:$0xff] %v304_v2  ;;  %v312_v6 = vld [vmem:[%s1272_s11 + $0x60] sm:$0xff]  ;;  %v314_v7 = vld [vmem:[%s1272_s11 + $0x70] sm:$0xff] }
  0x1a   : > { %307 = vst [vmem:[%s1277_s12 + $0x18] sm:$0xff] %v306_v3  ;;  %v316_v8 = vld [vmem:[%s1272_s11 + $0x80] sm:$0xff]  ;;  %v318_v9 = vld [vmem:[%s1272_s11 + $0x90] sm:$0xff] }
  0x1b   : > { %309 = vst [vmem:[%s1277_s12 + $0x20] sm:$0xff] %v308_v4  ;;  %v320_v10 = vld [vmem:[%s1272_s11 + $0xa0] sm:$0xff]  ;;  %v322_v11 = vld [vmem:[%s1272_s11 + $0xb0] sm:$0xff] }
  0x1c   : > { %311 = vst [vmem:[%s1277_s12 + $0x28] sm:$0xff] %v310_v5  ;;  %v324_v12 = vld [vmem:[%s1272_s11 + $0xc0] sm:$0xff]  ;;  %v326_v13 = vld [vmem:[%s1272_s11 + $0xd0] sm:$0xff] }
  0x1d   : > { %313 = vst [vmem:[%s1277_s12 + $0x30] sm:$0xff] %v312_v6  ;;  %v328_v14 = vld [vmem:[%s1272_s11 + $0xe0] sm:$0xff]  ;;  %v330_v15 = vld [vmem:[%s1272_s11 + $0xf0] sm:$0xff] }
  0x1e   : > { %315 = vst [vmem:[%s1277_s12 + $0x38] sm:$0xff] %v314_v7  ;;  %v332_v16 = vld [vmem:[%s1272_s11 + $0x100] sm:$0xff]  ;;  %v334_v17 = vld [vmem:[%s1272_s11 + $0x110] sm:$0xff] }
  0x1f   : > { %317 = vst [vmem:[%s1277_s12 + $0x40] sm:$0xff] %v316_v8  ;;  %v336_v18 = vld [vmem:[%s1272_s11 + $0x120] sm:$0xff]  ;;  %v338_v19 = vld [vmem:[%s1272_s11 + $0x130] sm:$0xff] }
  0x20   : > { %319 = vst [vmem:[%s1277_s12 + $0x48] sm:$0xff] %v318_v9  ;;  %v340_v20 = vld [vmem:[%s1272_s11 + $0x140] sm:$0xff]  ;;  %v342_v21 = vld [vmem:[%s1272_s11 + $0x150] sm:$0xff] }
  0x21   : > { %321 = vst [vmem:[%s1277_s12 + $0x50] sm:$0xff] %v320_v10  ;;  %v344_v22 = vld [vmem:[%s1272_s11 + $0x160] sm:$0xff]  ;;  %v346_v23 = vld [vmem:[%s1272_s11 + $0x170] sm:$0xff] }
  0x22   : > { %323 = vst [vmem:[%s1277_s12 + $0x58] sm:$0xff] %v322_v11  ;;  %v348_v24 = vld [vmem:[%s1272_s11 + $0x180] sm:$0xff]  ;;  %v350_v25 = vld [vmem:[%s1272_s11 + $0x190] sm:$0xff] }
  0x23   : > { %325 = vst [vmem:[%s1277_s12 + $0x60] sm:$0xff] %v324_v12  ;;  %v352_v26 = vld [vmem:[%s1272_s11 + $0x1a0] sm:$0xff]  ;;  %v354_v27 = vld [vmem:[%s1272_s11 + $0x1b0] sm:$0xff] }
  0x24   : > { %327 = vst [vmem:[%s1277_s12 + $0x68] sm:$0xff] %v326_v13  ;;  %v356_v28 = vld [vmem:[%s1272_s11 + $0x1c0] sm:$0xff]  ;;  %v358_v29 = vld [vmem:[%s1272_s11 + $0x1d0] sm:$0xff] }
  0x25   : > { %329 = vst [vmem:[%s1277_s12 + $0x70] sm:$0xff] %v328_v14  ;;  %v360_v30 = vld [vmem:[%s1272_s11 + $0x1e0] sm:$0xff]  ;;  %v362_v31 = vld [vmem:[%s1272_s11 + $0x1f0] sm:$0xff] }
  0x26   : > { %331 = vst [vmem:[%s1277_s12 + $0x78] sm:$0xff] %v330_v15 }
  0x27   : > { %333 = vst [vmem:[%s1277_s12 + $0x80] sm:$0xff] %v332_v16 }
  0x28   : > { %335 = vst [vmem:[%s1277_s12 + $0x88] sm:$0xff] %v334_v17 }
  0x29   : > { %337 = vst [vmem:[%s1277_s12 + $0x90] sm:$0xff] %v336_v18 }
  0x2a   : > { %339 = vst [vmem:[%s1277_s12 + $0x98] sm:$0xff] %v338_v19 }
  0x2b   : > { %341 = vst [vmem:[%s1277_s12 + $0xa0] sm:$0xff] %v340_v20 }
  0x2c   : > { %343 = vst [vmem:[%s1277_s12 + $0xa8] sm:$0xff] %v342_v21 }
  0x2d   : > { %345 = vst [vmem:[%s1277_s12 + $0xb0] sm:$0xff] %v344_v22 }
  0x2e   : > { %347 = vst [vmem:[%s1277_s12 + $0xb8] sm:$0xff] %v346_v23 }
  0x2f   : > { %349 = vst [vmem:[%s1277_s12 + $0xc0] sm:$0xff] %v348_v24 }
  0x30   : > { %351 = vst [vmem:[%s1277_s12 + $0xc8] sm:$0xff] %v350_v25 }
  0x31   : > { %353 = vst [vmem:[%s1277_s12 + $0xd0] sm:$0xff] %v352_v26 }
  0x32   : > { %355 = vst [vmem:[%s1277_s12 + $0xd8] sm:$0xff] %v354_v27 }
  0x33   : > { %357 = vst [vmem:[%s1277_s12 + $0xe0] sm:$0xff] %v356_v28 }
  0x34   : > { %359 = vst [vmem:[%s1277_s12 + $0xe8] sm:$0xff] %v358_v29 }
  0x35   : > { %361 = vst [vmem:[%s1277_s12 + $0xf0] sm:$0xff] %v360_v30 }
  0x36   : > { %363 = vst [vmem:[%s1277_s12 + $0xf8] sm:$0xff] %v362_v31 }
  0x37 PF: > { %p900_p7 = scmp.ge.s32.totalorder %s1184_s21, 1  ;;  %p384_p8 = scmp.lt.s32.totalorder %s1184_s21, 19 }
  0x39   : > { %p385_p9 = pnand %p900_p7, %p384_p8 }
  0x3a   : > { %s391_s13 = sand.u32 (!%p385_p9), 1, %s1160_s15   ;;  %s902_s14 = sshll.u32 (!%p385_p9), %s1168_s17, 1 }
  0x3b   : > { %388 = sbr.rel (%p385_p9) target bundleno = 263 (0x107), region = 70  ;;  %s901_s24 = sshll.u32 (!%p385_p9), %s391_s13, 8 }
  0x3c   : > { %p440_p10 = scmp.lt.s32.totalorder (!%p385_p9), %s902_s14, 17  ;;  %s904_s25 = sshll.u32 (!%p385_p9), %s1172_s18, 1 }
  0x3d   : > { %p450_p11 = scmp.lt.s32.totalorder (!%p385_p9), %s904_s25, 3  ;;  %s1366_s13 = scalar_lea.vmem (!%p385_p9), [#allocation3], %s901_s24 }
  0x3e   : > { %p908_p12 = scmp.ne.s32.totalorder (!%p385_p9), %s1168_s17, 0 }
  0x40   : > { %s1486_s14 = smov (!%p440_p10, %s902_s14), 17  ;;  %s1488_s25 = smov (!%p450_p11, %s904_s25), 3 }
  0x41   : > { %s903_s26 = sshll.u32 %s1486_s14, 2  ;;  %s452_s15 = scalar_lea.vmem %s1470_s2, %s1488_s25 }
  0x42   : > { %s1348_s30 = scalar_lea.vmem %s1468_s0, %s903_s26  ;;  %s457_s18 = scalar_lea.vmem %s1471_s3, %s1488_s25 }
  0x43   : > { %s907_s9 = sshll.u32 %s1488_s25, 3  ;;  %472 = sbr.rel (%p908_p12) target bundleno = 75 (0x4b), region = 78 }
  0x44   : > { %s1364_s12 = scalar_lea.vmem %s1472_s4, %s907_s9 }
  0x48   : > { %v1186_v32 = vmov 0.0  }
  0x49   : > { %473 = vst [vmem:[#allocation2] sm:$0xff] %v1186_v32 }
  0x4a   : > { %474 = vst [vmem:[#allocation2 + $0x8] sm:$0xff] %v1186_v32 }
  0x4b PF: > { %v967_v33 = vld [vmem:[%s1366_s13 + $0x70] sm:$0xf]  ;;  %v1056_v34 = vld [vmem:[%s1366_s13 + $0x74] sm:$0xf0]  ;;  %v1055_v38 = vld [vmem:[%s1366_s13 + $0x74] sm:$0xf] }
  0x4c   : > { %v1031_v35 = vld [vmem:[%s1366_s13 + $0xf0] sm:$0xf]  ;;  %v968_v36 = vor.u32 %v1056_v34, %v967_v33  ;;  %v1072_v37 = vld [vmem:[%s1366_s13 + $0xf4] sm:$0xf0]  ;;  %v969_v39 = vld [vmem:[%s1366_s13 + $0x78] sm:$0xf0] }
  0x4d   : > { %v1032_v40 = vor.u32 %v1072_v37, %v1031_v35  ;;  %v972_v41 = vor.u32 %v1055_v38, %v969_v39  ;;  %v1071_v42 = vld [vmem:[%s1366_s13 + $0xf4] sm:$0xf]  ;;  %v1033_v43 = vld [vmem:[%s1366_s13 + $0xf8] sm:$0xf0]  ;;  %v959_v44 = vld [vmem:[%s1366_s13 + $0x60] sm:$0xf] }
  0x4e   : > { %677 = vmatpush.bf16.msra.mxu0 %v968_v36  ;;  %v1036_v45 = vor.u32 %v1071_v42, %v1033_v43  ;;  %v1054_v46 = vld [vmem:[%s1366_s13 + $0x64] sm:$0xf0]  ;;  %v1023_v47 = vld [vmem:[%s1366_s13 + $0xe0] sm:$0xf]  ;;  %v1053_v51 = vld [vmem:[%s1366_s13 + $0x64] sm:$0xf] }
  0x4f   : > { %v1070_v48 = vld [vmem:[%s1366_s13 + $0xe4] sm:$0xf0]  ;;  %690 = vmatpush.bf16.msra.mxu1 %v1032_v40  ;;  %703 = vmatpush.bf16.msra.mxu2 %v972_v41  ;;  %v960_v49 = vor.u32 %v1054_v46, %v959_v44  ;;  %v961_v52 = vld [vmem:[%s1366_s13 + $0x68] sm:$0xf0]  ;;  %v1069_v53 = vld [vmem:[%s1366_s13 + $0xe4] sm:$0xf] }
  0x50   : > { %v1024_v50 = vor.u32 %v1070_v48, %v1023_v47  ;;  %716 = vmatpush.bf16.msra.mxu3 %v1036_v45  ;;  %v964_v54 = vor.u32 %v1053_v51, %v961_v52  ;;  %v1025_v55 = vld [vmem:[%s1366_s13 + $0xe8] sm:$0xf0]  ;;  %v951_v56 = vld [vmem:[%s1366_s13 + $0x50] sm:$0xf]  ;;  %v1052_v57 = vld [vmem:[%s1366_s13 + $0x54] sm:$0xf0] }
  0x51   : > { %v1028_v58 = vor.u32 %v1069_v53, %v1025_v55  ;;  %v1015_v59 = vld [vmem:[%s1366_s13 + $0xd0] sm:$0xf]  ;;  %v1068_v60 = vld [vmem:[%s1366_s13 + $0xd4] sm:$0xf0]  ;;  %v1051_v61 = vld [vmem:[%s1366_s13 + $0x54] sm:$0xf]  ;;  %v952_v62 = vor.u32 %v1052_v57, %v951_v56 }
  0x52   : > { %678 = vmatpush.bf16.msra.mxu0 %v960_v49  ;;  %v953_v63 = vld [vmem:[%s1366_s13 + $0x58] sm:$0xf0]  ;;  %v1067_v0 = vld [vmem:[%s1366_s13 + $0xd4] sm:$0xf]  ;;  %v1016_v2 = vor.u32 %v1068_v60, %v1015_v59  ;;  %v943_v4 = vld [vmem:[%s1366_s13 + $0x40] sm:$0xf] }
  0x53   : > { %v1017_v1 = vld [vmem:[%s1366_s13 + $0xd8] sm:$0xf0]  ;;  %691 = vmatpush.bf16.msra.mxu1 %v1024_v50  ;;  %704 = vmatpush.bf16.msra.mxu2 %v964_v54  ;;  %v956_v3 = vor.u32 %v1051_v61, %v953_v63  ;;  %v1050_v5 = vld [vmem:[%s1366_s13 + $0x44] sm:$0xf0]  ;;  %v1007_v6 = vld [vmem:[%s1366_s13 + $0xc0] sm:$0xf] }
  0x54   : > { %717 = vmatpush.bf16.msra.mxu3 %v1028_v58  ;;  %v1020_v7 = vor.u32 %v1067_v0, %v1017_v1  ;;  %v1066_v8 = vld [vmem:[%s1366_s13 + $0xc4] sm:$0xf0]  ;;  %v1049_v9 = vld [vmem:[%s1366_s13 + $0x44] sm:$0xf]  ;;  %v945_v10 = vld [vmem:[%s1366_s13 + $0x48] sm:$0xf0]  ;;  %v944_v13 = vor.u32 %v1050_v5, %v943_v4 }
  0x55   : > { %v1065_v11 = vld [vmem:[%s1366_s13 + $0xc4] sm:$0xf]  ;;  %v1009_v12 = vld [vmem:[%s1366_s13 + $0xc8] sm:$0xf0]  ;;  %v1008_v14 = vor.u32 %v1066_v8, %v1007_v6  ;;  %v948_v15 = vor.u32 %v1049_v9, %v945_v10  ;;  %v935_v16 = vld [vmem:[%s1366_s13 + $0x30] sm:$0xf] }
  0x56   : > { %679 = vmatpush.bf16.msra.mxu0 %v952_v62  ;;  %v1048_v17 = vld [vmem:[%s1366_s13 + $0x34] sm:$0xf0]  ;;  %v999_v18 = vld [vmem:[%s1366_s13 + $0xb0] sm:$0xf]  ;;  %v1012_v19 = vor.u32 %v1065_v11, %v1009_v12  ;;  %v1047_v21 = vld [vmem:[%s1366_s13 + $0x34] sm:$0xf] }
  0x57   : > { %692 = vmatpush.bf16.msra.mxu1 %v1016_v2  ;;  %705 = vmatpush.bf16.msra.mxu2 %v956_v3  ;;  %v1064_v20 = vld [vmem:[%s1366_s13 + $0xb4] sm:$0xf0]  ;;  %v937_v22 = vld [vmem:[%s1366_s13 + $0x38] sm:$0xf0]  ;;  %v1063_v23 = vld [vmem:[%s1366_s13 + $0xb4] sm:$0xf]  ;;  %v936_v25 = vor.u32 %v1048_v17, %v935_v16 }
  0x58   : > { %718 = vmatpush.bf16.msra.mxu3 %v1020_v7  ;;  %v1001_v24 = vld [vmem:[%s1366_s13 + $0xb8] sm:$0xf0]  ;;  %v1000_v26 = vor.u32 %v1064_v20, %v999_v18  ;;  %v940_v27 = vor.u32 %v1047_v21, %v937_v22  ;;  %v927_v28 = vld [vmem:[%s1366_s13 + $0x20] sm:$0xf]  ;;  %v1046_v29 = vld [vmem:[%s1366_s13 + $0x24] sm:$0xf0] }
  0x59   : > { %v991_v30 = vld [vmem:[%s1366_s13 + $0xa0] sm:$0xf]  ;;  %v1004_v31 = vor.u32 %v1063_v23, %v1001_v24  ;;  %v1062_v32 = vld [vmem:[%s1366_s13 + $0xa4] sm:$0xf0]  ;;  %v1045_v33 = vld [vmem:[%s1366_s13 + $0x24] sm:$0xf]  ;;  %v928_v37 = vor.u32 %v1046_v29, %v927_v28 }
  0x5a   : > { %680 = vmatpush.bf16.msra.mxu0 %v944_v13  ;;  %v929_v34 = vld [vmem:[%s1366_s13 + $0x28] sm:$0xf0]  ;;  %v1061_v35 = vld [vmem:[%s1366_s13 + $0xa4] sm:$0xf]  ;;  %v992_v38 = vor.u32 %v1062_v32, %v991_v30  ;;  %v919_v40 = vld [vmem:[%s1366_s13 + $0x10] sm:$0xf] }
  0x5b   : > { %693 = vmatpush.bf16.msra.mxu1 %v1008_v14  ;;  %706 = vmatpush.bf16.msra.mxu2 %v948_v15  ;;  %v993_v36 = vld [vmem:[%s1366_s13 + $0xa8] sm:$0xf0]  ;;  %v932_v39 = vor.u32 %v1045_v33, %v929_v34  ;;  %v1044_v41 = vld [vmem:[%s1366_s13 + $0x14] sm:$0xf0]  ;;  %v983_v42 = vld [vmem:[%s1366_s13 + $0x90] sm:$0xf] }
  0x5c   : > { %719 = vmatpush.bf16.msra.mxu3 %v1012_v19  ;;  %v996_v43 = vor.u32 %v1061_v35, %v993_v36  ;;  %v1060_v44 = vld [vmem:[%s1366_s13 + $0x94] sm:$0xf0]  ;;  %v1043_v45 = vld [vmem:[%s1366_s13 + $0x14] sm:$0xf]  ;;  %v921_v46 = vld [vmem:[%s1366_s13 + $0x18] sm:$0xf0]  ;;  %v920_v49 = vor.u32 %v1044_v41, %v919_v40 }
  0x5d   : > { %v1059_v47 = vld [vmem:[%s1366_s13 + $0x94] sm:$0xf]  ;;  %v985_v48 = vld [vmem:[%s1366_s13 + $0x98] sm:$0xf0]  ;;  %v984_v51 = vor.u32 %v1060_v44, %v983_v42  ;;  %v924_v52 = vor.u32 %v1043_v45, %v921_v46  ;;  %v911_v53 = vld [vmem:[%s1366_s13] sm:$0xf] }
  0x5e   : > { %681 = vmatpush.bf16.msra.mxu0 %v936_v25  ;;  %v477_v50 = vld [vmem:[%s1348_s30] sm:$0xff]  ;;  %v1042_v54 = vld [vmem:[%s1366_s13 + $0x4] sm:$0xf0]  ;;  %v975_v55 = vld [vmem:[%s1366_s13 + $0x80] sm:$0xf]  ;;  %v988_v56 = vor.u32 %v1059_v47, %v985_v48  ;;  %p1037_p13 = scmp.ne.s32.totalorder %s1168_s17, 8 }
  0x5f   : > { %694 = vmatpush.bf16.msra.mxu1 %v1000_v26  ;;  %707 = vmatpush.bf16.msra.mxu2 %v940_v27  ;;  %v1058_v57 = vld [vmem:[%s1366_s13 + $0x84] sm:$0xf0]  ;;  %v1041_v58 = vld [vmem:[%s1366_s13 + $0x4] sm:$0xf]  ;;  %v913_v59 = vld [vmem:[%s1366_s13 + $0x8] sm:$0xf0]  ;;  %v511_v62 = vunpack.c.l.b16 %v477_v50  ;;  %v912_v63 = vor.u32 %v1042_v54, %v911_v53  ;;  %v512_v0 = vunpack.c.h.b16 %v477_v50 }
  0x60   : > { %720 = vmatpush.bf16.msra.mxu3 %v1004_v31  ;;  %v1057_v60 = vld [vmem:[%s1366_s13 + $0x84] sm:$0xf]  ;;  %v977_v61 = vld [vmem:[%s1366_s13 + $0x88] sm:$0xf0]  ;;  %v976_v1 = vor.u32 %v1058_v57, %v975_v55  ;;  %v916_v2 = vor.u32 %v1041_v58, %v913_v59  ;;  %v475_v7 = vld [vmem:[#allocation2] sm:$0xff] }
  0x61   : > { %v980_v3 = vor.u32 %v1057_v60, %v977_v61  ;;  %v513_v4 = vpack.c.b16 %v511_v62, %v511_v62  ;;  %v514_v5 = vpack.c.b16 %v512_v0, %v512_v0  ;;  %v476_v12 = vld [vmem:[#allocation2 + $0x8] sm:$0xff] }
  0x62   : > { %682 = vmatpush.bf16.msra.mxu0 %v928_v37 }
  0x63   : > { %695 = vmatpush.bf16.msra.mxu1 %v992_v38  ;;  %708 = vmatpush.bf16.msra.mxu2 %v932_v39 }
  0x64   : > { %721 = vmatpush.bf16.msra.mxu3 %v996_v43 }
  0x66   : > { %683 = vmatpush.bf16.msra.mxu0 %v920_v49 }
  0x67   : > { %696 = vmatpush.bf16.msra.mxu1 %v984_v51  ;;  %709 = vmatpush.bf16.msra.mxu2 %v924_v52 }
  0x68   : > { %722 = vmatpush.bf16.msra.mxu3 %v988_v56 }
  0x6a   : > { %684 = vmatpush.bf16.msra.mxu0 %v912_v63 }
  0x6b   : > { %697 = vmatpush.bf16.msra.mxu1 %v976_v1  ;;  %710 = vmatpush.bf16.msra.mxu2 %v916_v2 }
  0x6c   : > { %723 = vmatpush.bf16.msra.mxu3 %v980_v3 }
  0x6d   : > { %685 = vmatmul.bf16.vlgmr.msra.gmra.mxu0 %v513_v4 }
  0x6e   : > { %698 = vmatmul.bf16.vlgmr.msra.gmra.mxu1 %v514_v5  ;;  %711 = vmatmul.bf16.vlgmr.msra.gmra.mxu2 %v513_v4 }
  0x6f   : > { %724 = vmatmul.bf16.vlgmr.msra.gmra.mxu3 %v514_v5 }
  0xea   : > { %v686_v6 = vpop.f32.mrf.mxu0 }
  0xeb   : > { %v699_v8 = vpop.f32.mrf.mxu1 }
  0xec   : > { %v700_v9 = vadd.f32 %v699_v8, %v686_v6 }
  0xee   : > { %v729_v10 = vadd.f32 %v700_v9, %v475_v7 }
  0xf0   : > { %731 = vst [vmem:[#allocation2] sm:$0xff] %v729_v10 }
  0xf1   : > { %v712_v11 = vpop.f32.mrf.mxu2 }
  0xf2   : > { %v725_v13 = vpop.f32.mrf.mxu3  ;;  %v688_v14 = vpop.f32.mrf.mxu0 }
  0xf3   : > { %v726_v15 = vadd.f32 %v725_v13, %v712_v11  ;;  %v701_v16 = vpop.f32.mrf.mxu1 }
  0xf5   : > { %v730_v17 = vadd.f32 %v726_v15, %v476_v12 }
  0xf6   : > { %736 = sbr.rel (%p1037_p13) target bundleno = 263 (0x107), region = 82 }
  0xf7   : > { %732 = vst [vmem:[#allocation2 + $0x8] sm:$0xff] %v730_v17 }
  0xf9   : > { %v714_v18 = vpop.f32.mrf.mxu2 }
  0xfa   : > { %v727_v19 = vpop.f32.mrf.mxu3 }
  0xfb   : > { %v737_v20 = vld [vmem:[#allocation2] sm:$0xff] }
  0xfc   : > { %v739_v21 = vld [vmem:[%s452_s15] sm:$0x3] }
  0xfd   : > { %v747_v22 = vld [vmem:[%s457_s18] sm:$0x3]  ;;  %v741_v23 = vperm.slane %v739_v21, 0  ;;  %v742_v26 = vperm.slane %v739_v21, 1 }
  0xfe   : > { %v749_v24 = vperm.slane %v747_v22, 0  ;;  %v738_v25 = vld [vmem:[#allocation2 + $0x8] sm:$0xff]  ;;  %v750_v27 = vperm.slane %v747_v22, 1 }
  0xff   : > { %v745_v28 = vmul.f32 %v741_v23, %v737_v20  ;;  %v746_v29 = vmul.f32 %v742_v26, %v738_v25 }
 0x101   : > { %v753_v30 = vadd.f32 %v749_v24, %v745_v28  ;;  %v754_v31 = vadd.f32 %v750_v27, %v746_v29 }
 0x103   : > { %v755_v32 = vmax.f32 %v753_v30, 0.0  ;;  %v756_v33 = vmax.f32 %v754_v31, 0.0 }
 0x105   : > { %757 = vst [vmem:[%s1364_s12] sm:$0xff] %v755_v32 }
 0x106   : > { %758 = vst [vmem:[%s1364_s12 + $0x8] sm:$0xff] %v756_v33 }
 0x107 PF: > { %s14_s21 = sadd.s32 1, %s1184_s21   ;;  %s1473_s15 = smov %s1164_s16 }
 0x108   : > { %p11_p0 = scmp.ge.s32.totalorder %s14_s21, 20   ;;  %s1474_s16 = smov %s1263_s28 }
 0x109   : > { %s1475_s17 = smov %s1176_s19  ;;  %s1476_s18 = smov %s1180_s20 }
 0x10a   : > { %s1477_s19 = smov %s1480_s22  ;;  %s1478_s20 = smov %s1484_s23 }
 0x10b   :  { %13 = sbr.rel (!%p11_p0) target bundleno = 4 (0x4), region = 126 }

// kernel: resnet_forward.28
= control target key start
LH: loop header
LB: loop body
LE: loop exit
PB: predicated region body
PF: predicated region fallthrough
CT: control target
= control target key end

     0   :  { %s30_s0 = inlined_call_operand.vmem [shape: f32[1,2,512], index: 0, kind: input, shape index: {}]   ;;  %s31_s1 = inlined_call_operand.vmem [shape: f32[2,512], index: 1, kind: output, shape index: {}]  }
   0x1   :  { %v8_v0 = vld [vmem:[%s30_s0] sm:$0xff] }
   0x2   :  { %9 = vst [vmem:[%s31_s1] sm:$0xff] %v8_v0 }

// kernel: resnet_forward.25
= control target key start
LH: loop header
LB: loop body
LE: loop exit
PB: predicated region body
PF: predicated region fallthrough
CT: control target
= control target key end

     0   :  { %9 = vsyncpa [#allocation4], 0  ;;  %s1262_s0 = inlined_call_operand.vmem [shape: bf16[8,256], index: 0, kind: input, shape index: {}]   ;;  %s1263_s1 = inlined_call_operand.hbm [shape: bf16[256,512], index: 1, kind: input, shape index: {}]   ;;  %s1264_s2 = inlined_call_operand.vmem [shape: f32[1,512], index: 2, kind: input, shape index: {}]   ;;  %s1265_s3 = inlined_call_operand.vmem [shape: f32[1,512], index: 3, kind: input, shape index: {}]   ;;  %s1266_s4 = inlined_call_operand.vmem [shape: f32[8,512], index: 4, kind: output, shape index: {}]  }
   0x1   :  { %11 = vsyncpa [#allocation4 + $0x1], 0  ;;  %s1100_s15 = smov 0   ;;  %s1102_s16 = smov 0  }
   0x2   :  { %s1104_s17 = smov 0   ;;  %s1106_s18 = smov 0  }
   0x3   :  { %s1108_s19 = smov 0   ;;  %s1110_s20 = smov 0  }
   0x4 LB: > { %s755_s21 = sadd.s32 4294967295, %s1070_s20   ;;  %s32_s22 = sadd.s32 1, %s1066_s19  ;;  %s1070_s20 = sphi %s1110_s20, %s17_s20   ;;  %s1066_s19 = sphi %s1108_s19, %s1273_s19   ;;  %s1062_s18 = sphi %s1106_s18, %s1272_s18   ;;  %s1058_s17 = sphi %s1104_s17, %s1271_s17   ;;  %s1054_s16 = sphi %s1102_s16, %s1270_s16   ;;  %s1050_s15 = sphi %s1100_s15, %s1269_s15  }
   0x5   : > { %p34_p0 = scmp.ge.s32.totalorder %s32_s22, 2  ;;  %s73_s23 = sadd.s32 1, %s1058_s17 }
   0x6   : > { %p80_p1 = scmp.ne.s32.totalorder %s1058_s17, %s1054_s16  ;;  %p81_p2 = scmp.eq.s32.totalorder %s1070_s20, 0 }
   0x7   : > { %s1275_s22 = smov (%p34_p0, %s32_s22), 0  ;;  %p86_p4 = scmp.ne.s32.totalorder %s1054_s16, %s1050_s15 }
   0x8   : > { %p1136_p3 = por %p81_p2, %p80_p1  ;;  %s69_s25 = ssub.s32 %s1066_s19, %s1275_s22 }
   0x9   : > { %p87_p5 = scmp.eq.s32.totalorder %s755_s21, 0  ;;  %p71_p6 = scmp.eq.s32.totalorder %s69_s25, 0 }
   0xa   : > { %p938_p8 = scmp.lt.s32.totalorder %s1070_s20, 2  ;;  %s203_s28 = sand.u32 1, %s1058_s17  }
   0xb   : > { %p1143_p7 = por %p87_p5, %p86_p4  ;;  %s899_s29 = sshll.u32 %s1066_s19, 3 }
   0xc   : > { %s1149_s27 = scalar_select %p71_p6, %s1058_s17, %s73_s23  }
   0xd   : > { %s760_s30 = sshll.u32 %s203_s28, 8  ;;  %s215_s7 = scalar_lea.hbm %s1263_s1, %s899_s29 }
   0xe   : > { %s216_s8 = sshll.u32 %s215_s7, 4  ;;  %s207_s9 = scalar_lea.vmem [#allocation3], %s760_s30  ;;  %s217_s8 = int_to_ptr.hbm [resolvable:$true] %s216_s8 }
   0xf   : > { %s218_s10 = sshll.u32 %s207_s9, 4  ;;  %p935_p9 = pnand %p938_p8, %p1136_p3  ;;  %s219_s10 = int_to_ptr.vmem [resolvable:$true] %s218_s10 }
  0x10   : > { %p763_p10 = scmp.ge.s32.totalorder %s1070_s20, 1  ;;  %s204_s11 = scalar_lea.sflag [#allocation4], %s203_s28 }
  0x11   : > { %s1072_s12 = smov 256   ;;  %s1073_s13 = smov 128  }
  0x12   : > { %s1074_s14 = smov 8   ;;  %p242_p11 = scmp.lt.s32.totalorder %s1070_s20, 3 }
  0x13   : > { %937 = dma.hbm_to_vmem [thread:$0]  (!%p935_p9), %s217_s8, 4096, %s219_s10, %s204_s11, %s1072_s12, %s1073_s13, %s1074_s14  }
  0x14   : > { %p243_p12 = pnand %p763_p10, %p242_p11 }
  0x15   : > { %s248_s15 = sand.u32 (!%p243_p12), 1, %s1054_s16  }
  0x16   : > { %246 = sbr.rel (%p243_p12) target bundleno = 205 (0xcd), region = 36  ;;  %s764_s21 = sshll.u32 (!%p243_p12), %s248_s15, 8 }
  0x17   : > { %s249_s23 = scalar_lea.sflag (!%p243_p12), [#allocation4], %s248_s15  ;;  %s1161_s25 = scalar_lea.vmem (!%p243_p12), [#allocation3], %s764_s21 }
  0x1b   : > { %1045 = dma.done.wait (%p1143_p7), %s249_s23, 4096  }
  0x1c   : > { %1047 = vsyncadd (%p1143_p7), %s249_s23, 4294963200  ;;  %v827_v0 = vld [vmem:[%s1161_s25 + $0x70] sm:$0xf]  ;;  %v915_v1 = vld [vmem:[%s1161_s25 + $0x74] sm:$0xf0]  ;;  %s765_s28 = sshll.u32 %s1062_s18, 1 }
  0x1d   : > { %v891_v2 = vld [vmem:[%s1161_s25 + $0xf0] sm:$0xf]  ;;  %v828_v3 = vor.u32 %v915_v1, %v827_v0  ;;  %v931_v4 = vld [vmem:[%s1161_s25 + $0xf4] sm:$0xf0]  ;;  %v914_v5 = vld [vmem:[%s1161_s25 + $0x74] sm:$0xf] }
  0x1e   : > { %v829_v6 = vld [vmem:[%s1161_s25 + $0x78] sm:$0xf0]  ;;  %v892_v7 = vor.u32 %v931_v4, %v891_v2  ;;  %v930_v9 = vld [vmem:[%s1161_s25 + $0xf4] sm:$0xf]  ;;  %v819_v11 = vld [vmem:[%s1161_s25 + $0x60] sm:$0xf] }
  0x1f   : > { %v832_v8 = vor.u32 %v914_v5, %v829_v6  ;;  %v893_v10 = vld [vmem:[%s1161_s25 + $0xf8] sm:$0xf0]  ;;  %539 = vmatpush.bf16.msra.mxu0 %v828_v3  ;;  %v913_v13 = vld [vmem:[%s1161_s25 + $0x64] sm:$0xf0]  ;;  %v883_v14 = vld [vmem:[%s1161_s25 + $0xe0] sm:$0xf] }
  0x20   : > { %v896_v12 = vor.u32 %v930_v9, %v893_v10  ;;  %v929_v15 = vld [vmem:[%s1161_s25 + $0xe4] sm:$0xf0]  ;;  %552 = vmatpush.bf16.msra.mxu1 %v892_v7  ;;  %v820_v16 = vor.u32 %v913_v13, %v819_v11  ;;  %v912_v18 = vld [vmem:[%s1161_s25 + $0x64] sm:$0xf]  ;;  %v821_v19 = vld [vmem:[%s1161_s25 + $0x68] sm:$0xf0] }
  0x21   : > { %565 = vmatpush.bf16.msra.mxu2 %v832_v8  ;;  %v884_v17 = vor.u32 %v929_v15, %v883_v14  ;;  %v928_v20 = vld [vmem:[%s1161_s25 + $0xe4] sm:$0xf]  ;;  %v824_v21 = vor.u32 %v912_v18, %v821_v19  ;;  %v885_v22 = vld [vmem:[%s1161_s25 + $0xe8] sm:$0xf0]  ;;  %v811_v23 = vld [vmem:[%s1161_s25 + $0x50] sm:$0xf] }
  0x22   : > { %578 = vmatpush.bf16.msra.mxu3 %v896_v12  ;;  %v911_v24 = vld [vmem:[%s1161_s25 + $0x54] sm:$0xf0]  ;;  %v888_v25 = vor.u32 %v928_v20, %v885_v22  ;;  %v875_v26 = vld [vmem:[%s1161_s25 + $0xd0] sm:$0xf]  ;;  %v910_v28 = vld [vmem:[%s1161_s25 + $0x54] sm:$0xf] }
  0x23   : > { %v927_v27 = vld [vmem:[%s1161_s25 + $0xd4] sm:$0xf0]  ;;  %540 = vmatpush.bf16.msra.mxu0 %v820_v16  ;;  %v812_v29 = vor.u32 %v911_v24, %v811_v23  ;;  %v813_v30 = vld [vmem:[%s1161_s25 + $0x58] sm:$0xf0]  ;;  %v926_v31 = vld [vmem:[%s1161_s25 + $0xd4] sm:$0xf] }
  0x24   : > { %v877_v32 = vld [vmem:[%s1161_s25 + $0xd8] sm:$0xf0]  ;;  %553 = vmatpush.bf16.msra.mxu1 %v884_v17  ;;  %v876_v33 = vor.u32 %v927_v27, %v875_v26  ;;  %v816_v34 = vor.u32 %v910_v28, %v813_v30  ;;  %v803_v35 = vld [vmem:[%s1161_s25 + $0x40] sm:$0xf]  ;;  %v909_v36 = vld [vmem:[%s1161_s25 + $0x44] sm:$0xf0] }
  0x25   : > { %566 = vmatpush.bf16.msra.mxu2 %v824_v21  ;;  %v867_v37 = vld [vmem:[%s1161_s25 + $0xc0] sm:$0xf]  ;;  %v880_v38 = vor.u32 %v926_v31, %v877_v32  ;;  %v925_v39 = vld [vmem:[%s1161_s25 + $0xc4] sm:$0xf0]  ;;  %v908_v40 = vld [vmem:[%s1161_s25 + $0x44] sm:$0xf]  ;;  %v804_v44 = vor.u32 %v909_v36, %v803_v35 }
  0x26   : > { %579 = vmatpush.bf16.msra.mxu3 %v888_v25  ;;  %v805_v41 = vld [vmem:[%s1161_s25 + $0x48] sm:$0xf0]  ;;  %v924_v42 = vld [vmem:[%s1161_s25 + $0xc4] sm:$0xf]  ;;  %v868_v45 = vor.u32 %v925_v39, %v867_v37  ;;  %v795_v47 = vld [vmem:[%s1161_s25 + $0x30] sm:$0xf] }
  0x27   : > { %v869_v43 = vld [vmem:[%s1161_s25 + $0xc8] sm:$0xf0]  ;;  %541 = vmatpush.bf16.msra.mxu0 %v812_v29  ;;  %v808_v46 = vor.u32 %v908_v40, %v805_v41  ;;  %v907_v48 = vld [vmem:[%s1161_s25 + $0x34] sm:$0xf0]  ;;  %v859_v49 = vld [vmem:[%s1161_s25 + $0xb0] sm:$0xf] }
  0x28   : > { %554 = vmatpush.bf16.msra.mxu1 %v876_v33  ;;  %v872_v50 = vor.u32 %v924_v42, %v869_v43  ;;  %v923_v51 = vld [vmem:[%s1161_s25 + $0xb4] sm:$0xf0]  ;;  %v906_v52 = vld [vmem:[%s1161_s25 + $0x34] sm:$0xf]  ;;  %v797_v53 = vld [vmem:[%s1161_s25 + $0x38] sm:$0xf0]  ;;  %v796_v56 = vor.u32 %v907_v48, %v795_v47 }
  0x29   : > { %567 = vmatpush.bf16.msra.mxu2 %v816_v34  ;;  %v922_v54 = vld [vmem:[%s1161_s25 + $0xb4] sm:$0xf]  ;;  %v861_v55 = vld [vmem:[%s1161_s25 + $0xb8] sm:$0xf0]  ;;  %v860_v57 = vor.u32 %v923_v51, %v859_v49  ;;  %v800_v58 = vor.u32 %v906_v52, %v797_v53  ;;  %v787_v59 = vld [vmem:[%s1161_s25 + $0x20] sm:$0xf] }
  0x2a   : > { %580 = vmatpush.bf16.msra.mxu3 %v880_v38  ;;  %v905_v60 = vld [vmem:[%s1161_s25 + $0x24] sm:$0xf0]  ;;  %v851_v61 = vld [vmem:[%s1161_s25 + $0xa0] sm:$0xf]  ;;  %v864_v62 = vor.u32 %v922_v54, %v861_v55  ;;  %v904_v0 = vld [vmem:[%s1161_s25 + $0x24] sm:$0xf] }
  0x2b   : > { %542 = vmatpush.bf16.msra.mxu0 %v804_v44  ;;  %v921_v63 = vld [vmem:[%s1161_s25 + $0xa4] sm:$0xf0]  ;;  %v789_v1 = vld [vmem:[%s1161_s25 + $0x28] sm:$0xf0]  ;;  %v920_v2 = vld [vmem:[%s1161_s25 + $0xa4] sm:$0xf]  ;;  %v788_v4 = vor.u32 %v905_v60, %v787_v59 }
  0x2c   : > { %555 = vmatpush.bf16.msra.mxu1 %v868_v45  ;;  %v853_v3 = vld [vmem:[%s1161_s25 + $0xa8] sm:$0xf0]  ;;  %v852_v5 = vor.u32 %v921_v63, %v851_v61  ;;  %v792_v6 = vor.u32 %v904_v0, %v789_v1  ;;  %v779_v7 = vld [vmem:[%s1161_s25 + $0x10] sm:$0xf]  ;;  %v903_v8 = vld [vmem:[%s1161_s25 + $0x14] sm:$0xf0] }
  0x2d   : > { %568 = vmatpush.bf16.msra.mxu2 %v808_v46  ;;  %v843_v9 = vld [vmem:[%s1161_s25 + $0x90] sm:$0xf]  ;;  %v856_v10 = vor.u32 %v920_v2, %v853_v3  ;;  %v919_v11 = vld [vmem:[%s1161_s25 + $0x94] sm:$0xf0]  ;;  %v902_v12 = vld [vmem:[%s1161_s25 + $0x14] sm:$0xf]  ;;  %v780_v16 = vor.u32 %v903_v8, %v779_v7 }
  0x2e   : > { %581 = vmatpush.bf16.msra.mxu3 %v872_v50  ;;  %v781_v13 = vld [vmem:[%s1161_s25 + $0x18] sm:$0xf0]  ;;  %v918_v14 = vld [vmem:[%s1161_s25 + $0x94] sm:$0xf]  ;;  %v339_v17 = vld [vmem:[%s1262_s0] sm:$0xff]  ;;  %v844_v18 = vor.u32 %v919_v11, %v843_v9  ;;  %p312_p13 = scmp.lt.s32.totalorder %s765_s28, 3 }
  0x2f   : > { %543 = vmatpush.bf16.msra.mxu0 %v796_v56  ;;  %v845_v15 = vld [vmem:[%s1161_s25 + $0x98] sm:$0xf0]  ;;  %v784_v19 = vor.u32 %v902_v12, %v781_v13  ;;  %v771_v20 = vld [vmem:[%s1161_s25] sm:$0xf]  ;;  %v901_v21 = vld [vmem:[%s1161_s25 + $0x4] sm:$0xf0]  ;;  %v373_v29 = vunpack.c.l.b16 %v339_v17  ;;  %v374_v31 = vunpack.c.h.b16 %v339_v17 }
  0x30   : > { %556 = vmatpush.bf16.msra.mxu1 %v860_v57  ;;  %v835_v22 = vld [vmem:[%s1161_s25 + $0x80] sm:$0xf]  ;;  %v848_v23 = vor.u32 %v918_v14, %v845_v15  ;;  %v917_v24 = vld [vmem:[%s1161_s25 + $0x84] sm:$0xf0]  ;;  %v900_v25 = vld [vmem:[%s1161_s25 + $0x4] sm:$0xf]  ;;  %v772_v30 = vor.u32 %v901_v21, %v771_v20 }
  0x31   : > { %569 = vmatpush.bf16.msra.mxu2 %v800_v58  ;;  %v773_v26 = vld [vmem:[%s1161_s25 + $0x8] sm:$0xf0]  ;;  %v916_v27 = vld [vmem:[%s1161_s25 + $0x84] sm:$0xf]  ;;  %v836_v32 = vor.u32 %v917_v24, %v835_v22  ;;  %v375_v35 = vpack.c.b16 %v373_v29, %v373_v29  ;;  %v376_v36 = vpack.c.b16 %v374_v31, %v374_v31  ;;  %s1277_s28 = smov (!%p312_p13, %s765_s28), 3 }
  0x32   : > { %582 = vmatpush.bf16.msra.mxu3 %v864_v62  ;;  %v837_v28 = vld [vmem:[%s1161_s25 + $0x88] sm:$0xf0]  ;;  %v776_v33 = vor.u32 %v900_v25, %v773_v26  ;;  %s314_s5 = scalar_lea.vmem %s1264_s2, %s1277_s28  ;;  %s319_s8 = scalar_lea.vmem %s1265_s3, %s1277_s28 }
  0x33   : > { %544 = vmatpush.bf16.msra.mxu0 %v788_v4  ;;  %v840_v34 = vor.u32 %v916_v27, %v837_v28  ;;  %v600_v37 = vld [vmem:[%s314_s5] sm:$0x3]  ;;  %s768_s9 = sshll.u32 %s1277_s28, 3 }
  0x34   : > { %557 = vmatpush.bf16.msra.mxu1 %v852_v5  ;;  %v608_v38 = vld [vmem:[%s319_s8] sm:$0x3]  ;;  %v602_v40 = vperm.slane %v600_v37, 0  ;;  %s329_s11 = scalar_lea.vmem %s1266_s4, %s768_s9  ;;  %v603_v47 = vperm.slane %v600_v37, 1 }
  0x35   : > { %570 = vmatpush.bf16.msra.mxu2 %v792_v6  ;;  %v610_v43 = vperm.slane %v608_v38, 0  ;;  %v611_v51 = vperm.slane %v608_v38, 1 }
  0x36   : > { %583 = vmatpush.bf16.msra.mxu3 %v856_v10 }
  0x37   : > { %545 = vmatpush.bf16.msra.mxu0 %v780_v16 }
  0x38   : > { %558 = vmatpush.bf16.msra.mxu1 %v844_v18 }
  0x39   : > { %571 = vmatpush.bf16.msra.mxu2 %v784_v19 }
  0x3a   : > { %584 = vmatpush.bf16.msra.mxu3 %v848_v23 }
  0x3b   : > { %546 = vmatpush.bf16.msra.mxu0 %v772_v30 }
  0x3c   : > { %559 = vmatpush.bf16.msra.mxu1 %v836_v32 }
  0x3d   : > { %572 = vmatpush.bf16.msra.mxu2 %v776_v33 }
  0x3e   : > { %585 = vmatpush.bf16.msra.mxu3 %v840_v34  ;;  %547 = vmatmul.bf16.vlgmr.msra.gmra.mxu0 %v375_v35 }
  0x3f   : > { %560 = vmatmul.bf16.vlgmr.msra.gmra.mxu1 %v376_v36 }
  0x40   : > { %573 = vmatmul.bf16.vlgmr.msra.gmra.mxu2 %v375_v35 }
  0x41   : > { %586 = vmatmul.bf16.vlgmr.msra.gmra.mxu3 %v376_v36 }
  0xbb   : > { %v548_v39 = vpop.f32.mrf.mxu0 }
  0xbc   : > { %v561_v41 = vpop.f32.mrf.mxu1 }
  0xbd   : > { %v562_v42 = vadd.f32 %v561_v41, %v548_v39 }
  0xbf   : > { %v606_v44 = vmul.f32 %v602_v40, %v562_v42 }
  0xc1   : > { %v614_v45 = vadd.f32 %v610_v43, %v606_v44 }
  0xc3   : > { %v574_v46 = vpop.f32.mrf.mxu2  ;;  %616 = vst [vmem:[%s329_s11] sm:$0xff] %v614_v45  ;;  %v550_v49 = vpop.f32.mrf.mxu0 }
  0xc4   : > { %v587_v48 = vpop.f32.mrf.mxu3  ;;  %v563_v52 = vpop.f32.mrf.mxu1 }
  0xc5   : > { %v588_v50 = vadd.f32 %v587_v48, %v574_v46 }
  0xc7   : > { %v607_v53 = vmul.f32 %v603_v47, %v588_v50 }
  0xc9   : > { %v615_v54 = vadd.f32 %v611_v51, %v607_v53 }
  0xcb   : > { %617 = vst [vmem:[%s329_s11 + $0x8] sm:$0xff] %v615_v54  ;;  %v576_v55 = vpop.f32.mrf.mxu2 }
  0xcc   : > { %v589_v56 = vpop.f32.mrf.mxu3 }
  0xcd PF: > { %s17_s20 = sadd.s32 1, %s1070_s20   ;;  %s1269_s15 = smov %s1054_s16 }
  0xce   : > { %p14_p0 = scmp.ge.s32.totalorder %s17_s20, 4   ;;  %s1270_s16 = smov %s1058_s17 }
  0xcf   : > { %s1271_s17 = smov %s1149_s27  ;;  %s1272_s18 = smov %s1066_s19 }
  0xd0   : > { %s1273_s19 = smov %s1275_s22  ;;  %16 = sbr.rel (!%p14_p0) target bundleno = 4 (0x4), region = 93 }
  0xd5   :  { %648 = vsyncpa [#allocation4], 1 }
  0xd6   :  { %650 = vsyncpa [#allocation4 + $0x1], 1 }

// kernel: resnet_forward.27
= control target key start
LH: loop header
LB: loop body
LE: loop exit
PB: predicated region body
PF: predicated region fallthrough
CT: control target
= control target key end

     0   :  { %s1844_s18 = smov 0   ;;  %s1846_s19 = smov 0   ;;  %s2252_s0 = inlined_call_operand.vmem [shape: bf16[8,4608], index: 0, kind: input, shape index: {}]   ;;  %s2253_s1 = inlined_call_operand.vmem [shape: bf16[4608,512], index: 1, kind: input, shape index: {}]   ;;  %s2254_s2 = inlined_call_operand.vmem [shape: f32[1,512], index: 2, kind: input, shape index: {}]   ;;  %s2255_s3 = inlined_call_operand.vmem [shape: f32[1,512], index: 3, kind: input, shape index: {}]   ;;  %s2256_s4 = inlined_call_operand.vmem [shape: f32[8,512], index: 4, kind: input, shape index: {}]   ;;  %s2257_s5 = inlined_call_operand.vmem [shape: f32[8,512], index: 5, kind: output, shape index: {}]  }
   0x1   :  { %s1848_s20 = smov 0   ;;  %s1850_s21 = smov 0  }
   0x2   :  { %s1852_s22 = smov 0   ;;  %s1854_s23 = smov 0  }
   0x3   :  { %s1856_s24 = smov 0  }
   0x4 LB: > { %s27_s25 = sadd.s32 1, %s1803_s22  ;;  %s30_s26 = sadd.s32 1, %s1807_s23  ;;  %s1811_s24 = sphi %s1856_s24, %s15_s24   ;;  %s1807_s23 = sphi %s1854_s23, %s2263_s23   ;;  %s1803_s22 = sphi %s1852_s22, %s2262_s22   ;;  %s1799_s21 = sphi %s1850_s21, %s2261_s21   ;;  %s1795_s20 = sphi %s1848_s20, %s2260_s20   ;;  %s1791_s19 = sphi %s1846_s19, %s2259_s19   ;;  %s1787_s18 = sphi %s1844_s18, %s2258_s18  }
   0x5   : > { %p28_p0 = scmp.ge.s32.totalorder %s27_s25, 9  ;;  %p78_p1 = scmp.ne.s32.totalorder %s1791_s19, %s1787_s18 }
   0x6   : > { %p79_p2 = scmp.eq.s32.totalorder %s1811_s24, 0  ;;  %s71_s30 = sadd.s32 1, %s1791_s19 }
   0x7   : > { %s2265_s25 = smov (%p28_p0, %s27_s25), 0  ;;  %s2267_s26 = smov (!%p28_p0, %s30_s26), %s1807_s23 }
   0x8   : > { %p80_p3 = por %p79_p2, %p78_p1  ;;  %p32_p4 = scmp.ge.s32.totalorder %s2267_s26, 2 }
   0x9   : > { %s66_s27 = ssub.s32 %s1803_s22, %s2265_s25  ;;  %p1359_p6 = scmp.ge.s32.totalorder %s1811_s24, 18 }
   0xa   : > { %s2269_s26 = smov (%p32_p4, %s2267_s26), 0 }
   0xb   : > { %s67_s28 = ssub.s32 %s1807_s23, %s2269_s26  ;;  %212 = sbr.rel (%p1359_p6) target bundleno = 87 (0x57), region = 16 }
   0xc   : > { %s68_s29 = sor.u32 %s67_s28, %s66_s27 }
   0xd   : > { %p69_p5 = scmp.eq.s32.totalorder %s68_s29, 0 }
   0xf   : > { %s1895_s6 = scalar_select %p69_p5, %s1791_s19, %s71_s30  }
  0x10   : > { %228 = sbr.rel (!%p80_p3) target bundleno = 87 (0x57), region = 24  ;;  %s230_s7 = sand.u32 (%p80_p3), 1, %s1791_s19  }
  0x11   : > { %s1362_s8 = sshll.u32 (%p80_p3), %s1807_s23, 1  ;;  %s1360_s9 = sshll.u32 (%p80_p3), %s230_s7, 9 }
  0x12   : > { %s1635_s10 = sshll.u32 (%p80_p3), %s1803_s22, 8  ;;  %s1909_s16 = scalar_lea.vmem (%p80_p3), [#allocation3], %s1360_s9 }
  0x13   : > { %s236_s11 = sadd.s32 (%p80_p3), %s1635_s10, %s1362_s8 }
  0x14   : > { %s1364_s12 = sshll.u32 (%p80_p3), %s236_s11, 2 }
  0x15   : > { %s1904_s15 = scalar_lea.vmem %s2253_s1, %s1364_s12 }
  0x16   : > { %v393_v0 = vld [vmem:[%s1904_s15] sm:$0xff]  ;;  %v395_v1 = vld [vmem:[%s1904_s15 + $0x10] sm:$0xff] }
  0x17   : > { %v397_v2 = vld [vmem:[%s1904_s15 + $0x20] sm:$0xff]  ;;  %394 = vst [vmem:[%s1909_s16] sm:$0xff] %v393_v0  ;;  %v399_v3 = vld [vmem:[%s1904_s15 + $0x30] sm:$0xff] }
  0x18   : > { %396 = vst [vmem:[%s1909_s16 + $0x8] sm:$0xff] %v395_v1  ;;  %v401_v4 = vld [vmem:[%s1904_s15 + $0x40] sm:$0xff]  ;;  %v403_v5 = vld [vmem:[%s1904_s15 + $0x50] sm:$0xff] }
  0x19   : > { %398 = vst [vmem:[%s1909_s16 + $0x10] sm:$0xff] %v397_v2  ;;  %v405_v6 = vld [vmem:[%s1904_s15 + $0x60] sm:$0xff]  ;;  %v407_v7 = vld [vmem:[%s1904_s15 + $0x70] sm:$0xff] }
  0x1a   : > { %400 = vst [vmem:[%s1909_s16 + $0x18] sm:$0xff] %v399_v3  ;;  %v409_v8 = vld [vmem:[%s1904_s15 + $0x80] sm:$0xff]  ;;  %v411_v9 = vld [vmem:[%s1904_s15 + $0x90] sm:$0xff] }
  0x1b   : > { %402 = vst [vmem:[%s1909_s16 + $0x20] sm:$0xff] %v401_v4  ;;  %v413_v10 = vld [vmem:[%s1904_s15 + $0xa0] sm:$0xff]  ;;  %v415_v11 = vld [vmem:[%s1904_s15 + $0xb0] sm:$0xff] }
  0x1c   : > { %404 = vst [vmem:[%s1909_s16 + $0x28] sm:$0xff] %v403_v5  ;;  %v417_v12 = vld [vmem:[%s1904_s15 + $0xc0] sm:$0xff]  ;;  %v419_v13 = vld [vmem:[%s1904_s15 + $0xd0] sm:$0xff] }
  0x1d   : > { %406 = vst [vmem:[%s1909_s16 + $0x30] sm:$0xff] %v405_v6  ;;  %v421_v14 = vld [vmem:[%s1904_s15 + $0xe0] sm:$0xff]  ;;  %v423_v15 = vld [vmem:[%s1904_s15 + $0xf0] sm:$0xff] }
  0x1e   : > { %408 = vst [vmem:[%s1909_s16 + $0x38] sm:$0xff] %v407_v7  ;;  %v425_v16 = vld [vmem:[%s1904_s15 + $0x100] sm:$0xff]  ;;  %v427_v17 = vld [vmem:[%s1904_s15 + $0x110] sm:$0xff] }
  0x1f   : > { %410 = vst [vmem:[%s1909_s16 + $0x40] sm:$0xff] %v409_v8  ;;  %v429_v18 = vld [vmem:[%s1904_s15 + $0x120] sm:$0xff]  ;;  %v431_v19 = vld [vmem:[%s1904_s15 + $0x130] sm:$0xff] }
  0x20   : > { %412 = vst [vmem:[%s1909_s16 + $0x48] sm:$0xff] %v411_v9  ;;  %v433_v20 = vld [vmem:[%s1904_s15 + $0x140] sm:$0xff]  ;;  %v435_v21 = vld [vmem:[%s1904_s15 + $0x150] sm:$0xff] }
  0x21   : > { %414 = vst [vmem:[%s1909_s16 + $0x50] sm:$0xff] %v413_v10  ;;  %v437_v22 = vld [vmem:[%s1904_s15 + $0x160] sm:$0xff]  ;;  %v439_v23 = vld [vmem:[%s1904_s15 + $0x170] sm:$0xff] }
  0x22   : > { %416 = vst [vmem:[%s1909_s16 + $0x58] sm:$0xff] %v415_v11  ;;  %v441_v24 = vld [vmem:[%s1904_s15 + $0x180] sm:$0xff]  ;;  %v443_v25 = vld [vmem:[%s1904_s15 + $0x190] sm:$0xff] }
  0x23   : > { %418 = vst [vmem:[%s1909_s16 + $0x60] sm:$0xff] %v417_v12  ;;  %v445_v26 = vld [vmem:[%s1904_s15 + $0x1a0] sm:$0xff]  ;;  %v447_v27 = vld [vmem:[%s1904_s15 + $0x1b0] sm:$0xff] }
  0x24   : > { %420 = vst [vmem:[%s1909_s16 + $0x68] sm:$0xff] %v419_v13  ;;  %v449_v28 = vld [vmem:[%s1904_s15 + $0x1c0] sm:$0xff]  ;;  %v451_v29 = vld [vmem:[%s1904_s15 + $0x1d0] sm:$0xff] }
  0x25   : > { %422 = vst [vmem:[%s1909_s16 + $0x70] sm:$0xff] %v421_v14  ;;  %v453_v30 = vld [vmem:[%s1904_s15 + $0x1e0] sm:$0xff]  ;;  %v455_v31 = vld [vmem:[%s1904_s15 + $0x1f0] sm:$0xff] }
  0x26   : > { %424 = vst [vmem:[%s1909_s16 + $0x78] sm:$0xff] %v423_v15  ;;  %v457_v32 = vld [vmem:[%s1904_s15 + $0x200] sm:$0xff]  ;;  %v459_v33 = vld [vmem:[%s1904_s15 + $0x210] sm:$0xff] }
  0x27   : > { %426 = vst [vmem:[%s1909_s16 + $0x80] sm:$0xff] %v425_v16  ;;  %v461_v34 = vld [vmem:[%s1904_s15 + $0x220] sm:$0xff]  ;;  %v463_v35 = vld [vmem:[%s1904_s15 + $0x230] sm:$0xff] }
  0x28   : > { %428 = vst [vmem:[%s1909_s16 + $0x88] sm:$0xff] %v427_v17  ;;  %v465_v36 = vld [vmem:[%s1904_s15 + $0x240] sm:$0xff]  ;;  %v467_v37 = vld [vmem:[%s1904_s15 + $0x250] sm:$0xff] }
  0x29   : > { %430 = vst [vmem:[%s1909_s16 + $0x90] sm:$0xff] %v429_v18  ;;  %v469_v38 = vld [vmem:[%s1904_s15 + $0x260] sm:$0xff]  ;;  %v471_v39 = vld [vmem:[%s1904_s15 + $0x270] sm:$0xff] }
  0x2a   : > { %432 = vst [vmem:[%s1909_s16 + $0x98] sm:$0xff] %v431_v19  ;;  %v473_v40 = vld [vmem:[%s1904_s15 + $0x280] sm:$0xff]  ;;  %v475_v41 = vld [vmem:[%s1904_s15 + $0x290] sm:$0xff] }
  0x2b   : > { %434 = vst [vmem:[%s1909_s16 + $0xa0] sm:$0xff] %v433_v20  ;;  %v477_v42 = vld [vmem:[%s1904_s15 + $0x2a0] sm:$0xff]  ;;  %v479_v43 = vld [vmem:[%s1904_s15 + $0x2b0] sm:$0xff] }
  0x2c   : > { %436 = vst [vmem:[%s1909_s16 + $0xa8] sm:$0xff] %v435_v21  ;;  %v481_v44 = vld [vmem:[%s1904_s15 + $0x2c0] sm:$0xff]  ;;  %v483_v45 = vld [vmem:[%s1904_s15 + $0x2d0] sm:$0xff] }
  0x2d   : > { %438 = vst [vmem:[%s1909_s16 + $0xb0] sm:$0xff] %v437_v22  ;;  %v485_v46 = vld [vmem:[%s1904_s15 + $0x2e0] sm:$0xff]  ;;  %v487_v47 = vld [vmem:[%s1904_s15 + $0x2f0] sm:$0xff] }
  0x2e   : > { %440 = vst [vmem:[%s1909_s16 + $0xb8] sm:$0xff] %v439_v23  ;;  %v489_v48 = vld [vmem:[%s1904_s15 + $0x300] sm:$0xff]  ;;  %v491_v49 = vld [vmem:[%s1904_s15 + $0x310] sm:$0xff] }
  0x2f   : > { %442 = vst [vmem:[%s1909_s16 + $0xc0] sm:$0xff] %v441_v24  ;;  %v493_v50 = vld [vmem:[%s1904_s15 + $0x320] sm:$0xff]  ;;  %v495_v51 = vld [vmem:[%s1904_s15 + $0x330] sm:$0xff] }
  0x30   : > { %444 = vst [vmem:[%s1909_s16 + $0xc8] sm:$0xff] %v443_v25  ;;  %v497_v52 = vld [vmem:[%s1904_s15 + $0x340] sm:$0xff]  ;;  %v499_v53 = vld [vmem:[%s1904_s15 + $0x350] sm:$0xff] }
  0x31   : > { %446 = vst [vmem:[%s1909_s16 + $0xd0] sm:$0xff] %v445_v26  ;;  %v501_v54 = vld [vmem:[%s1904_s15 + $0x360] sm:$0xff]  ;;  %v503_v55 = vld [vmem:[%s1904_s15 + $0x370] sm:$0xff] }
  0x32   : > { %448 = vst [vmem:[%s1909_s16 + $0xd8] sm:$0xff] %v447_v27  ;;  %v505_v56 = vld [vmem:[%s1904_s15 + $0x380] sm:$0xff]  ;;  %v507_v57 = vld [vmem:[%s1904_s15 + $0x390] sm:$0xff] }
  0x33   : > { %450 = vst [vmem:[%s1909_s16 + $0xe0] sm:$0xff] %v449_v28  ;;  %v509_v58 = vld [vmem:[%s1904_s15 + $0x3a0] sm:$0xff]  ;;  %v511_v59 = vld [vmem:[%s1904_s15 + $0x3b0] sm:$0xff] }
  0x34   : > { %452 = vst [vmem:[%s1909_s16 + $0xe8] sm:$0xff] %v451_v29  ;;  %v513_v60 = vld [vmem:[%s1904_s15 + $0x3c0] sm:$0xff]  ;;  %v515_v61 = vld [vmem:[%s1904_s15 + $0x3d0] sm:$0xff] }
  0x35   : > { %454 = vst [vmem:[%s1909_s16 + $0xf0] sm:$0xff] %v453_v30  ;;  %v517_v62 = vld [vmem:[%s1904_s15 + $0x3e0] sm:$0xff]  ;;  %v519_v63 = vld [vmem:[%s1904_s15 + $0x3f0] sm:$0xff] }
  0x36   : > { %456 = vst [vmem:[%s1909_s16 + $0xf8] sm:$0xff] %v455_v31 }
  0x37   : > { %458 = vst [vmem:[%s1909_s16 + $0x100] sm:$0xff] %v457_v32 }
  0x38   : > { %460 = vst [vmem:[%s1909_s16 + $0x108] sm:$0xff] %v459_v33 }
  0x39   : > { %462 = vst [vmem:[%s1909_s16 + $0x110] sm:$0xff] %v461_v34 }
  0x3a   : > { %464 = vst [vmem:[%s1909_s16 + $0x118] sm:$0xff] %v463_v35 }
  0x3b   : > { %466 = vst [vmem:[%s1909_s16 + $0x120] sm:$0xff] %v465_v36 }
  0x3c   : > { %468 = vst [vmem:[%s1909_s16 + $0x128] sm:$0xff] %v467_v37 }
  0x3d   : > { %470 = vst [vmem:[%s1909_s16 + $0x130] sm:$0xff] %v469_v38 }
  0x3e   : > { %472 = vst [vmem:[%s1909_s16 + $0x138] sm:$0xff] %v471_v39 }
  0x3f   : > { %474 = vst [vmem:[%s1909_s16 + $0x140] sm:$0xff] %v473_v40 }
  0x40   : > { %476 = vst [vmem:[%s1909_s16 + $0x148] sm:$0xff] %v475_v41 }
  0x41   : > { %478 = vst [vmem:[%s1909_s16 + $0x150] sm:$0xff] %v477_v42 }
  0x42   : > { %480 = vst [vmem:[%s1909_s16 + $0x158] sm:$0xff] %v479_v43 }
  0x43   : > { %482 = vst [vmem:[%s1909_s16 + $0x160] sm:$0xff] %v481_v44 }
  0x44   : > { %484 = vst [vmem:[%s1909_s16 + $0x168] sm:$0xff] %v483_v45 }
  0x45   : > { %486 = vst [vmem:[%s1909_s16 + $0x170] sm:$0xff] %v485_v46 }
  0x46   : > { %488 = vst [vmem:[%s1909_s16 + $0x178] sm:$0xff] %v487_v47 }
  0x47   : > { %490 = vst [vmem:[%s1909_s16 + $0x180] sm:$0xff] %v489_v48 }
  0x48   : > { %492 = vst [vmem:[%s1909_s16 + $0x188] sm:$0xff] %v491_v49 }
  0x49   : > { %494 = vst [vmem:[%s1909_s16 + $0x190] sm:$0xff] %v493_v50 }
  0x4a   : > { %496 = vst [vmem:[%s1909_s16 + $0x198] sm:$0xff] %v495_v51 }
  0x4b   : > { %498 = vst [vmem:[%s1909_s16 + $0x1a0] sm:$0xff] %v497_v52 }
  0x4c   : > { %500 = vst [vmem:[%s1909_s16 + $0x1a8] sm:$0xff] %v499_v53 }
  0x4d   : > { %502 = vst [vmem:[%s1909_s16 + $0x1b0] sm:$0xff] %v501_v54 }
  0x4e   : > { %504 = vst [vmem:[%s1909_s16 + $0x1b8] sm:$0xff] %v503_v55 }
  0x4f   : > { %506 = vst [vmem:[%s1909_s16 + $0x1c0] sm:$0xff] %v505_v56 }
  0x50   : > { %508 = vst [vmem:[%s1909_s16 + $0x1c8] sm:$0xff] %v507_v57 }
  0x51   : > { %510 = vst [vmem:[%s1909_s16 + $0x1d0] sm:$0xff] %v509_v58 }
  0x52   : > { %512 = vst [vmem:[%s1909_s16 + $0x1d8] sm:$0xff] %v511_v59 }
  0x53   : > { %514 = vst [vmem:[%s1909_s16 + $0x1e0] sm:$0xff] %v513_v60 }
  0x54   : > { %516 = vst [vmem:[%s1909_s16 + $0x1e8] sm:$0xff] %v515_v61 }
  0x55   : > { %518 = vst [vmem:[%s1909_s16 + $0x1f0] sm:$0xff] %v517_v62 }
  0x56   : > { %520 = vst [vmem:[%s1909_s16 + $0x1f8] sm:$0xff] %v519_v63 }
  0x57 PF: > { %p1365_p7 = scmp.ge.s32.totalorder %s1811_s24, 1  ;;  %p554_p8 = scmp.lt.s32.totalorder %s1811_s24, 19 }
  0x59   : > { %p555_p9 = pnand %p1365_p7, %p554_p8 }
  0x5a   : > { %s561_s17 = sand.u32 (!%p555_p9), 1, %s1787_s18   ;;  %s1367_s27 = sshll.u32 (!%p555_p9), %s1795_s20, 2 }
  0x5b   : > { %558 = sbr.rel (%p555_p9) target bundleno = 330 (0x14a), region = 74  ;;  %s1366_s28 = sshll.u32 (!%p555_p9), %s561_s17, 9 }
  0x5c   : > { %p621_p10 = scmp.lt.s32.totalorder (!%p555_p9), %s1367_s27, 35  ;;  %s1369_s29 = sshll.u32 (!%p555_p9), %s1799_s21, 1 }
  0x5d   : > { %p631_p11 = scmp.lt.s32.totalorder (!%p555_p9), %s1369_s29, 3  ;;  %s2067_s8 = scalar_lea.vmem (!%p555_p9), [#allocation3], %s1366_s28 }
  0x5e   : > { %p1375_p12 = scmp.ne.s32.totalorder (!%p555_p9), %s1795_s20, 0 }
  0x60   : > { %s2271_s27 = smov (!%p621_p10, %s1367_s27), 35  ;;  %s2273_s29 = smov (!%p631_p11, %s1369_s29), 3 }
  0x61   : > { %s1368_s30 = sshll.u32 %s2271_s27, 2  ;;  %s633_s18 = scalar_lea.vmem %s2254_s2, %s2273_s29 }
  0x62   : > { %s2044_s9 = scalar_lea.vmem %s2252_s0, %s1368_s30  ;;  %s638_s21 = scalar_lea.vmem %s2255_s3, %s2273_s29 }
  0x63   : > { %s1372_s14 = sshll.u32 %s2273_s29, 3  ;;  %663 = sbr.rel (%p1375_p12) target bundleno = 107 (0x6b), region = 82 }
  0x64   : > { %s2060_s17 = scalar_lea.vmem %s2256_s4, %s1372_s14  ;;  %s2065_s7 = scalar_lea.vmem %s2257_s5, %s1372_s14 }
  0x68   : > { %v1813_v0 = vmov 0.0  }
  0x69   : > { %664 = vst [vmem:[#allocation2] sm:$0xff] %v1813_v0 }
  0x6a   : > { %665 = vst [vmem:[#allocation2 + $0x8] sm:$0xff] %v1813_v0 }
  0x6b PF: > { %v1434_v1 = vld [vmem:[%s2067_s8 + $0x70] sm:$0xf]  ;;  %v1651_v2 = vld [vmem:[%s2067_s8 + $0x74] sm:$0xf0]  ;;  %v1426_v12 = vld [vmem:[%s2067_s8 + $0x60] sm:$0xf] }
  0x6c   : > { %v1498_v3 = vld [vmem:[%s2067_s8 + $0xf0] sm:$0xf]  ;;  %v1435_v4 = vor.u32 %v1651_v2, %v1434_v1  ;;  %v1667_v5 = vld [vmem:[%s2067_s8 + $0xf4] sm:$0xf0]  ;;  %v1649_v14 = vld [vmem:[%s2067_s8 + $0x64] sm:$0xf0] }
  0x6d   : > { %v1562_v6 = vld [vmem:[%s2067_s8 + $0x170] sm:$0xf]  ;;  %v1683_v7 = vld [vmem:[%s2067_s8 + $0x174] sm:$0xf0]  ;;  %v1499_v8 = vor.u32 %v1667_v5, %v1498_v3  ;;  %v1490_v15 = vld [vmem:[%s2067_s8 + $0xe0] sm:$0xf]  ;;  %v1427_v17 = vor.u32 %v1649_v14, %v1426_v12 }
  0x6e   : > { %v1563_v9 = vor.u32 %v1683_v7, %v1562_v6  ;;  %v1626_v10 = vld [vmem:[%s2067_s8 + $0x1f0] sm:$0xf]  ;;  %v1699_v11 = vld [vmem:[%s2067_s8 + $0x1f4] sm:$0xf0]  ;;  %1068 = vmatpush.bf16.msra.mxu0 %v1435_v4  ;;  %v1665_v16 = vld [vmem:[%s2067_s8 + $0xe4] sm:$0xf0] }
  0x6f   : > { %v1627_v13 = vor.u32 %v1699_v11, %v1626_v10  ;;  %1081 = vmatpush.bf16.msra.mxu1 %v1499_v8  ;;  %v1491_v18 = vor.u32 %v1665_v16, %v1490_v15  ;;  %v1554_v19 = vld [vmem:[%s2067_s8 + $0x160] sm:$0xf]  ;;  %v1681_v20 = vld [vmem:[%s2067_s8 + $0x164] sm:$0xf0]  ;;  %v1418_v24 = vld [vmem:[%s2067_s8 + $0x50] sm:$0xf] }
  0x70   : > { %1094 = vmatpush.bf16.msra.mxu2 %v1563_v9  ;;  %v1618_v21 = vld [vmem:[%s2067_s8 + $0x1e0] sm:$0xf]  ;;  %v1555_v22 = vor.u32 %v1681_v20, %v1554_v19  ;;  %v1697_v23 = vld [vmem:[%s2067_s8 + $0x1e4] sm:$0xf0]  ;;  %v1647_v25 = vld [vmem:[%s2067_s8 + $0x54] sm:$0xf0] }
  0x71   : > { %1107 = vmatpush.bf16.msra.mxu3 %v1627_v13  ;;  %v1619_v26 = vor.u32 %v1697_v23, %v1618_v21  ;;  %v1482_v27 = vld [vmem:[%s2067_s8 + $0xd0] sm:$0xf]  ;;  %v1663_v28 = vld [vmem:[%s2067_s8 + $0xd4] sm:$0xf0]  ;;  %v1419_v30 = vor.u32 %v1647_v25, %v1418_v24  ;;  %v1410_v36 = vld [vmem:[%s2067_s8 + $0x40] sm:$0xf] }
  0x72   : > { %v1546_v29 = vld [vmem:[%s2067_s8 + $0x150] sm:$0xf]  ;;  %1069 = vmatpush.bf16.msra.mxu0 %v1427_v17  ;;  %v1679_v31 = vld [vmem:[%s2067_s8 + $0x154] sm:$0xf0]  ;;  %v1483_v34 = vor.u32 %v1663_v28, %v1482_v27  ;;  %v1645_v37 = vld [vmem:[%s2067_s8 + $0x44] sm:$0xf0] }
  0x73   : > { %v1610_v32 = vld [vmem:[%s2067_s8 + $0x1d0] sm:$0xf]  ;;  %v1695_v33 = vld [vmem:[%s2067_s8 + $0x1d4] sm:$0xf0]  ;;  %1082 = vmatpush.bf16.msra.mxu1 %v1491_v18  ;;  %v1547_v35 = vor.u32 %v1679_v31, %v1546_v29  ;;  %v1474_v38 = vld [vmem:[%s2067_s8 + $0xc0] sm:$0xf]  ;;  %v1411_v45 = vor.u32 %v1645_v37, %v1410_v36 }
  0x74   : > { %1095 = vmatpush.bf16.msra.mxu2 %v1555_v22  ;;  %v1611_v39 = vor.u32 %v1695_v33, %v1610_v32  ;;  %v1661_v40 = vld [vmem:[%s2067_s8 + $0xc4] sm:$0xf0]  ;;  %v1538_v41 = vld [vmem:[%s2067_s8 + $0x140] sm:$0xf]  ;;  %v1402_v48 = vld [vmem:[%s2067_s8 + $0x30] sm:$0xf] }
  0x75   : > { %1108 = vmatpush.bf16.msra.mxu3 %v1619_v26  ;;  %v1677_v42 = vld [vmem:[%s2067_s8 + $0x144] sm:$0xf0]  ;;  %v1602_v43 = vld [vmem:[%s2067_s8 + $0x1c0] sm:$0xf]  ;;  %v1475_v46 = vor.u32 %v1661_v40, %v1474_v38  ;;  %v1643_v49 = vld [vmem:[%s2067_s8 + $0x34] sm:$0xf0] }
  0x76   : > { %v1693_v44 = vld [vmem:[%s2067_s8 + $0x1c4] sm:$0xf0]  ;;  %1070 = vmatpush.bf16.msra.mxu0 %v1419_v30  ;;  %v1539_v47 = vor.u32 %v1677_v42, %v1538_v41  ;;  %v1466_v50 = vld [vmem:[%s2067_s8 + $0xb0] sm:$0xf]  ;;  %v1659_v52 = vld [vmem:[%s2067_s8 + $0xb4] sm:$0xf0]  ;;  %v1403_v57 = vor.u32 %v1643_v49, %v1402_v48 }
  0x77   : > { %1083 = vmatpush.bf16.msra.mxu1 %v1483_v34  ;;  %v1603_v51 = vor.u32 %v1693_v44, %v1602_v43  ;;  %v1530_v53 = vld [vmem:[%s2067_s8 + $0x130] sm:$0xf]  ;;  %v1675_v54 = vld [vmem:[%s2067_s8 + $0x134] sm:$0xf0]  ;;  %v1467_v58 = vor.u32 %v1659_v52, %v1466_v50  ;;  %v1394_v60 = vld [vmem:[%s2067_s8 + $0x20] sm:$0xf] }
  0x78   : > { %1096 = vmatpush.bf16.msra.mxu2 %v1547_v35  ;;  %v1594_v55 = vld [vmem:[%s2067_s8 + $0x1b0] sm:$0xf]  ;;  %v1691_v56 = vld [vmem:[%s2067_s8 + $0x1b4] sm:$0xf0]  ;;  %v1531_v59 = vor.u32 %v1675_v54, %v1530_v53  ;;  %v1641_v61 = vld [vmem:[%s2067_s8 + $0x24] sm:$0xf0] }
  0x79   : > { %1109 = vmatpush.bf16.msra.mxu3 %v1611_v39  ;;  %v1458_v62 = vld [vmem:[%s2067_s8 + $0xa0] sm:$0xf]  ;;  %v1595_v63 = vor.u32 %v1691_v56, %v1594_v55  ;;  %v1657_v0 = vld [vmem:[%s2067_s8 + $0xa4] sm:$0xf0]  ;;  %v1395_v5 = vor.u32 %v1641_v61, %v1394_v60  ;;  %v1386_v8 = vld [vmem:[%s2067_s8 + $0x10] sm:$0xf] }
  0x7a   : > { %1071 = vmatpush.bf16.msra.mxu0 %v1411_v45  ;;  %v1522_v1 = vld [vmem:[%s2067_s8 + $0x120] sm:$0xf]  ;;  %v1673_v2 = vld [vmem:[%s2067_s8 + $0x124] sm:$0xf0]  ;;  %v1459_v6 = vor.u32 %v1657_v0, %v1458_v62  ;;  %v1639_v9 = vld [vmem:[%s2067_s8 + $0x14] sm:$0xf0] }
  0x7b   : > { %1084 = vmatpush.bf16.msra.mxu1 %v1475_v46  ;;  %v1586_v3 = vld [vmem:[%s2067_s8 + $0x1a0] sm:$0xf]  ;;  %v1689_v4 = vld [vmem:[%s2067_s8 + $0x1a4] sm:$0xf0]  ;;  %v1523_v7 = vor.u32 %v1673_v2, %v1522_v1  ;;  %v1450_v10 = vld [vmem:[%s2067_s8 + $0x90] sm:$0xf]  ;;  %v1387_v17 = vor.u32 %v1639_v9, %v1386_v8 }
  0x7c   : > { %1097 = vmatpush.bf16.msra.mxu2 %v1539_v47  ;;  %v1587_v11 = vor.u32 %v1689_v4, %v1586_v3  ;;  %v1655_v12 = vld [vmem:[%s2067_s8 + $0x94] sm:$0xf0]  ;;  %v1514_v13 = vld [vmem:[%s2067_s8 + $0x110] sm:$0xf]  ;;  %v1378_v18 = vld [vmem:[%s2067_s8] sm:$0xf] }
  0x7d   : > { %1110 = vmatpush.bf16.msra.mxu3 %v1603_v51  ;;  %v1671_v14 = vld [vmem:[%s2067_s8 + $0x114] sm:$0xf0]  ;;  %v1578_v15 = vld [vmem:[%s2067_s8 + $0x190] sm:$0xf]  ;;  %v1637_v19 = vld [vmem:[%s2067_s8 + $0x4] sm:$0xf0]  ;;  %v1451_v21 = vor.u32 %v1655_v12, %v1450_v10 }
  0x7e   : > { %1072 = vmatpush.bf16.msra.mxu0 %v1403_v57  ;;  %v1687_v16 = vld [vmem:[%s2067_s8 + $0x194] sm:$0xf0]  ;;  %v1442_v20 = vld [vmem:[%s2067_s8 + $0x80] sm:$0xf]  ;;  %v1515_v22 = vor.u32 %v1671_v14, %v1514_v13  ;;  %v1653_v23 = vld [vmem:[%s2067_s8 + $0x84] sm:$0xf0]  ;;  %v1379_v33 = vor.u32 %v1637_v19, %v1378_v18 }
  0x7f   : > { %1085 = vmatpush.bf16.msra.mxu1 %v1467_v58  ;;  %v1506_v24 = vld [vmem:[%s2067_s8 + $0x100] sm:$0xf]  ;;  %v1669_v25 = vld [vmem:[%s2067_s8 + $0x104] sm:$0xf0]  ;;  %v1579_v26 = vor.u32 %v1687_v16, %v1578_v15  ;;  %v1650_v29 = vld [vmem:[%s2067_s8 + $0x74] sm:$0xf]  ;;  %v1443_v38 = vor.u32 %v1653_v23, %v1442_v20 }
  0x80   : > { %1098 = vmatpush.bf16.msra.mxu2 %v1531_v59  ;;  %v1570_v27 = vld [vmem:[%s2067_s8 + $0x180] sm:$0xf]  ;;  %v1685_v28 = vld [vmem:[%s2067_s8 + $0x184] sm:$0xf0]  ;;  %v1436_v30 = vld [vmem:[%s2067_s8 + $0x78] sm:$0xf0]  ;;  %v1507_v39 = vor.u32 %v1669_v25, %v1506_v24 }
  0x81   : > { %1111 = vmatpush.bf16.msra.mxu3 %v1595_v63  ;;  %v1666_v31 = vld [vmem:[%s2067_s8 + $0xf4] sm:$0xf]  ;;  %v669_v32 = vld [vmem:[%s2044_s9 + $0x8] sm:$0xff]  ;;  %v1571_v43 = vor.u32 %v1685_v28, %v1570_v27  ;;  %v1439_v44 = vor.u32 %v1650_v29, %v1436_v30  ;;  %v1648_v48 = vld [vmem:[%s2067_s8 + $0x64] sm:$0xf]  ;;  %p1632_p13 = scmp.ne.s32.totalorder %s1795_s20, 8 }
  0x82   : > { %1073 = vmatpush.bf16.msra.mxu0 %v1395_v5  ;;  %v1500_v34 = vld [vmem:[%s2067_s8 + $0xf8] sm:$0xf0]  ;;  %v1682_v35 = vld [vmem:[%s2067_s8 + $0x174] sm:$0xf]  ;;  %v738_v37 = vunpack.c.l.b16 %v669_v32  ;;  %v739_v42 = vunpack.c.h.b16 %v669_v32  ;;  %v1428_v49 = vld [vmem:[%s2067_s8 + $0x68] sm:$0xf0] }
  0x83   : > { %1086 = vmatpush.bf16.msra.mxu1 %v1459_v6  ;;  %v1564_v36 = vld [vmem:[%s2067_s8 + $0x178] sm:$0xf0]  ;;  %v1698_v40 = vld [vmem:[%s2067_s8 + $0x1f4] sm:$0xf]  ;;  %v1503_v46 = vor.u32 %v1666_v31, %v1500_v34  ;;  %v1664_v50 = vld [vmem:[%s2067_s8 + $0xe4] sm:$0xf]  ;;  %v1431_v62 = vor.u32 %v1648_v48, %v1428_v49 }
  0x84   : > { %1099 = vmatpush.bf16.msra.mxu2 %v1523_v7  ;;  %v1628_v41 = vld [vmem:[%s2067_s8 + $0x1f8] sm:$0xf0]  ;;  %v668_v45 = vld [vmem:[%s2044_s9] sm:$0xff]  ;;  %v1567_v47 = vor.u32 %v1682_v35, %v1564_v36  ;;  %v1492_v54 = vld [vmem:[%s2067_s8 + $0xe8] sm:$0xf0]  ;;  %v2150_v57 = vpack.c.b16 %v738_v37, %v738_v37  ;;  %v2154_v60 = vpack.c.b16 %v739_v42, %v739_v42 }
  0x85   : > { %1112 = vmatpush.bf16.msra.mxu3 %v1587_v11  ;;  %v736_v51 = vunpack.c.l.b16 %v668_v45  ;;  %v737_v52 = vunpack.c.h.b16 %v668_v45  ;;  %v1631_v53 = vor.u32 %v1698_v40, %v1628_v41  ;;  %v1680_v55 = vld [vmem:[%s2067_s8 + $0x164] sm:$0xf]  ;;  %v1556_v56 = vld [vmem:[%s2067_s8 + $0x168] sm:$0xf0]  ;;  %v1495_v0 = vor.u32 %v1664_v50, %v1492_v54  ;;  %v1646_v2 = vld [vmem:[%s2067_s8 + $0x54] sm:$0xf] }
  0x86   : > { %1074 = vmatpush.bf16.msra.mxu0 %v1387_v17  ;;  %v1696_v58 = vld [vmem:[%s2067_s8 + $0x1e4] sm:$0xf]  ;;  %v1620_v59 = vld [vmem:[%s2067_s8 + $0x1e8] sm:$0xf0]  ;;  %v1559_v1 = vor.u32 %v1680_v55, %v1556_v56  ;;  %v1420_v3 = vld [vmem:[%s2067_s8 + $0x58] sm:$0xf0] }
  0x87   : > { %1087 = vmatpush.bf16.msra.mxu1 %v1451_v21  ;;  %v2156_v61 = vpack.c.b16 %v736_v51, %v736_v51  ;;  %v2158_v63 = vpack.c.b16 %v737_v52, %v737_v52  ;;  %v1662_v4 = vld [vmem:[%s2067_s8 + $0xd4] sm:$0xf]  ;;  %v1623_v5 = vor.u32 %v1696_v58, %v1620_v59  ;;  %v1484_v6 = vld [vmem:[%s2067_s8 + $0xd8] sm:$0xf0]  ;;  %v1423_v11 = vor.u32 %v1646_v2, %v1420_v3  ;;  %v1644_v14 = vld [vmem:[%s2067_s8 + $0x44] sm:$0xf] }
  0x88   : > { %1100 = vmatpush.bf16.msra.mxu2 %v1515_v22  ;;  %v1678_v7 = vld [vmem:[%s2067_s8 + $0x154] sm:$0xf]  ;;  %v1548_v8 = vld [vmem:[%s2067_s8 + $0x158] sm:$0xf0]  ;;  %v1487_v12 = vor.u32 %v1662_v4, %v1484_v6  ;;  %v1412_v15 = vld [vmem:[%s2067_s8 + $0x48] sm:$0xf0] }
  0x89   : > { %1113 = vmatpush.bf16.msra.mxu3 %v1579_v26  ;;  %v1694_v9 = vld [vmem:[%s2067_s8 + $0x1d4] sm:$0xf]  ;;  %v1612_v10 = vld [vmem:[%s2067_s8 + $0x1d8] sm:$0xf0]  ;;  %v1551_v13 = vor.u32 %v1678_v7, %v1548_v8  ;;  %v1660_v16 = vld [vmem:[%s2067_s8 + $0xc4] sm:$0xf]  ;;  %v1415_v23 = vor.u32 %v1644_v14, %v1412_v15 }
  0x8a   : > { %1075 = vmatpush.bf16.msra.mxu0 %v1379_v33  ;;  %v1615_v17 = vor.u32 %v1694_v9, %v1612_v10  ;;  %v1476_v18 = vld [vmem:[%s2067_s8 + $0xc8] sm:$0xf0]  ;;  %v1676_v19 = vld [vmem:[%s2067_s8 + $0x144] sm:$0xf]  ;;  %v1642_v26 = vld [vmem:[%s2067_s8 + $0x34] sm:$0xf] }
  0x8b   : > { %1088 = vmatpush.bf16.msra.mxu1 %v1443_v38  ;;  %v1540_v20 = vld [vmem:[%s2067_s8 + $0x148] sm:$0xf0]  ;;  %v1692_v21 = vld [vmem:[%s2067_s8 + $0x1c4] sm:$0xf]  ;;  %v1479_v24 = vor.u32 %v1660_v16, %v1476_v18  ;;  %v1404_v27 = vld [vmem:[%s2067_s8 + $0x38] sm:$0xf0] }
  0x8c   : > { %1101 = vmatpush.bf16.msra.mxu2 %v1507_v39  ;;  %v1604_v22 = vld [vmem:[%s2067_s8 + $0x1c8] sm:$0xf0]  ;;  %v1543_v25 = vor.u32 %v1676_v19, %v1540_v20  ;;  %v1658_v28 = vld [vmem:[%s2067_s8 + $0xb4] sm:$0xf]  ;;  %v1468_v30 = vld [vmem:[%s2067_s8 + $0xb8] sm:$0xf0]  ;;  %v1407_v35 = vor.u32 %v1642_v26, %v1404_v27 }
  0x8d   : > { %1114 = vmatpush.bf16.msra.mxu3 %v1571_v43  ;;  %1076 = vmatmul.bf16.vlgmr.msra.gmra.mxu0 %v2156_v61  ;;  %v1607_v29 = vor.u32 %v1692_v21, %v1604_v22  ;;  %v1674_v31 = vld [vmem:[%s2067_s8 + $0x134] sm:$0xf]  ;;  %v1532_v32 = vld [vmem:[%s2067_s8 + $0x138] sm:$0xf0]  ;;  %v1471_v36 = vor.u32 %v1658_v28, %v1468_v30  ;;  %v1640_v38 = vld [vmem:[%s2067_s8 + $0x24] sm:$0xf] }
  0x8e   : > { %1120 = vmatpush.bf16.msrb.mxu0 %v1439_v44  ;;  %1089 = vmatmul.bf16.vlgmr.msra.gmra.mxu1 %v2158_v63  ;;  %v1690_v33 = vld [vmem:[%s2067_s8 + $0x1b4] sm:$0xf]  ;;  %v1596_v34 = vld [vmem:[%s2067_s8 + $0x1b8] sm:$0xf0]  ;;  %v1535_v37 = vor.u32 %v1674_v31, %v1532_v32  ;;  %v1396_v39 = vld [vmem:[%s2067_s8 + $0x28] sm:$0xf0] }
  0x8f   : > { %1133 = vmatpush.bf16.msrb.mxu1 %v1503_v46  ;;  %1102 = vmatmul.bf16.vlgmr.msra.gmra.mxu2 %v2150_v57  ;;  %v1656_v40 = vld [vmem:[%s2067_s8 + $0xa4] sm:$0xf]  ;;  %v1599_v41 = vor.u32 %v1690_v33, %v1596_v34  ;;  %v1460_v42 = vld [vmem:[%s2067_s8 + $0xa8] sm:$0xf0]  ;;  %v1638_v50 = vld [vmem:[%s2067_s8 + $0x14] sm:$0xf] }
  0x90   : > { %1146 = vmatpush.bf16.msrb.mxu2 %v1567_v47  ;;  %1115 = vmatmul.bf16.vlgmr.msra.gmra.mxu3 %v2154_v60  ;;  %v1672_v43 = vld [vmem:[%s2067_s8 + $0x124] sm:$0xf]  ;;  %v1524_v44 = vld [vmem:[%s2067_s8 + $0x128] sm:$0xf0]  ;;  %v1399_v47 = vor.u32 %v1640_v38, %v1396_v39  ;;  %v1463_v48 = vor.u32 %v1656_v40, %v1460_v42  ;;  %v1388_v51 = vld [vmem:[%s2067_s8 + $0x18] sm:$0xf0] }
  0x91   : > { %1159 = vmatpush.bf16.msrb.mxu3 %v1631_v53  ;;  %v1688_v45 = vld [vmem:[%s2067_s8 + $0x1a4] sm:$0xf]  ;;  %v1588_v46 = vld [vmem:[%s2067_s8 + $0x1a8] sm:$0xf0]  ;;  %v1527_v49 = vor.u32 %v1672_v43, %v1524_v44  ;;  %v1654_v52 = vld [vmem:[%s2067_s8 + $0x94] sm:$0xf] }
  0x92   : > { %1121 = vmatpush.bf16.msrb.mxu0 %v1431_v62  ;;  %v1591_v53 = vor.u32 %v1688_v45, %v1588_v46  ;;  %v1452_v54 = vld [vmem:[%s2067_s8 + $0x98] sm:$0xf0]  ;;  %v1670_v55 = vld [vmem:[%s2067_s8 + $0x114] sm:$0xf]  ;;  %v1391_v62 = vor.u32 %v1638_v50, %v1388_v51  ;;  %v1636_v2 = vld [vmem:[%s2067_s8 + $0x4] sm:$0xf] }
  0x93   : > { %1134 = vmatpush.bf16.msrb.mxu1 %v1495_v0  ;;  %v1516_v56 = vld [vmem:[%s2067_s8 + $0x118] sm:$0xf0]  ;;  %v1686_v58 = vld [vmem:[%s2067_s8 + $0x194] sm:$0xf]  ;;  %v1455_v0 = vor.u32 %v1654_v52, %v1452_v54  ;;  %v1380_v3 = vld [vmem:[%s2067_s8 + $0x8] sm:$0xf0] }
  0x94   : > { %1147 = vmatpush.bf16.msrb.mxu2 %v1559_v1  ;;  %v1580_v59 = vld [vmem:[%s2067_s8 + $0x198] sm:$0xf0]  ;;  %v1519_v1 = vor.u32 %v1670_v55, %v1516_v56  ;;  %v1652_v4 = vld [vmem:[%s2067_s8 + $0x84] sm:$0xf]  ;;  %v1444_v6 = vld [vmem:[%s2067_s8 + $0x88] sm:$0xf0] }
  0x95   : > { %1160 = vmatpush.bf16.msrb.mxu3 %v1623_v5  ;;  %v1583_v5 = vor.u32 %v1686_v58, %v1580_v59  ;;  %v1668_v7 = vld [vmem:[%s2067_s8 + $0x104] sm:$0xf]  ;;  %v1508_v8 = vld [vmem:[%s2067_s8 + $0x108] sm:$0xf0]  ;;  %v666_v21 = vld [vmem:[#allocation2] sm:$0xff] }
  0x96   : > { %1122 = vmatpush.bf16.msrb.mxu0 %v1423_v11  ;;  %v1684_v9 = vld [vmem:[%s2067_s8 + $0x184] sm:$0xf]  ;;  %v1572_v10 = vld [vmem:[%s2067_s8 + $0x188] sm:$0xf0]  ;;  %v1383_v11 = vor.u32 %v1636_v2, %v1380_v3  ;;  %v667_v31 = vld [vmem:[#allocation2 + $0x8] sm:$0xff] }
  0x97   : > { %1135 = vmatpush.bf16.msrb.mxu1 %v1487_v12  ;;  %v1447_v12 = vor.u32 %v1652_v4, %v1444_v6  ;;  %v1575_v14 = vor.u32 %v1684_v9, %v1572_v10 }
  0x98   : > { %1148 = vmatpush.bf16.msrb.mxu2 %v1551_v13  ;;  %v1511_v13 = vor.u32 %v1668_v7, %v1508_v8 }
  0x99   : > { %1161 = vmatpush.bf16.msrb.mxu3 %v1615_v17 }
  0x9a   : > { %1123 = vmatpush.bf16.msrb.mxu0 %v1415_v23 }
  0x9b   : > { %1136 = vmatpush.bf16.msrb.mxu1 %v1479_v24 }
  0x9c   : > { %1149 = vmatpush.bf16.msrb.mxu2 %v1543_v25 }
  0x9d   : > { %1162 = vmatpush.bf16.msrb.mxu3 %v1607_v29 }
  0x9e   : > { %1124 = vmatpush.bf16.msrb.mxu0 %v1407_v35 }
  0x9f   : > { %1137 = vmatpush.bf16.msrb.mxu1 %v1471_v36 }
  0xa0   : > { %1150 = vmatpush.bf16.msrb.mxu2 %v1535_v37 }
  0xa1   : > { %1163 = vmatpush.bf16.msrb.mxu3 %v1599_v41 }
  0xa2   : > { %1125 = vmatpush.bf16.msrb.mxu0 %v1399_v47 }
  0xa3   : > { %1138 = vmatpush.bf16.msrb.mxu1 %v1463_v48 }
  0xa4   : > { %1151 = vmatpush.bf16.msrb.mxu2 %v1527_v49 }
  0xa5   : > { %1164 = vmatpush.bf16.msrb.mxu3 %v1591_v53 }
  0xa6   : > { %1126 = vmatpush.bf16.msrb.mxu0 %v1391_v62 }
  0xa7   : > { %1139 = vmatpush.bf16.msrb.mxu1 %v1455_v0 }
  0xa8   : > { %1152 = vmatpush.bf16.msrb.mxu2 %v1519_v1 }
  0xa9   : > { %1165 = vmatpush.bf16.msrb.mxu3 %v1583_v5 }
  0xaa   : > { %1127 = vmatpush.bf16.msrb.mxu0 %v1383_v11 }
  0xab   : > { %1140 = vmatpush.bf16.msrb.mxu1 %v1447_v12 }
  0xac   : > { %1153 = vmatpush.bf16.msrb.mxu2 %v1511_v13 }
  0xad   : > { %1166 = vmatpush.bf16.msrb.mxu3 %v1575_v14  ;;  %1128 = vmatmul.bf16.vlgmr.msrb.gmra.mxu0 %v2156_v61 }
  0xae   : > { %1141 = vmatmul.bf16.vlgmr.msrb.gmra.mxu1 %v2158_v63 }
  0xaf   : > { %1154 = vmatmul.bf16.vlgmr.msrb.gmra.mxu2 %v2150_v57 }
  0xb0   : > { %1167 = vmatmul.bf16.vlgmr.msrb.gmra.mxu3 %v2154_v60 }
 0x10a   : > { %v1077_v15 = vpop.f32.mrf.mxu0 }
 0x10b   : > { %v1090_v16 = vpop.f32.mrf.mxu1 }
 0x10c   : > { %v1091_v17 = vadd.f32 %v1090_v16, %v1077_v15 }
 0x112   : > { %v1103_v18 = vpop.f32.mrf.mxu2  ;;  %v1079_v23 = vpop.f32.mrf.mxu0 }
 0x113   : > { %v1104_v19 = vadd.f32 %v1103_v18, %v1091_v17  ;;  %v1116_v20 = vpop.f32.mrf.mxu3  ;;  %v1092_v24 = vpop.f32.mrf.mxu1 }
 0x115   : > { %v1117_v22 = vadd.f32 %v1116_v20, %v1104_v19 }
 0x117   : > { %v1172_v25 = vadd.f32 %v1117_v22, %v666_v21 }
 0x119   : > { %1174 = vst [vmem:[#allocation2] sm:$0xff] %v1172_v25 }
 0x11a   : > { %v1105_v26 = vpop.f32.mrf.mxu2 }
 0x11b   : > { %v1118_v61 = vpop.f32.mrf.mxu3 }
 0x12a   : > { %v1129_v27 = vpop.f32.mrf.mxu0 }
 0x12b   : > { %v1142_v63 = vpop.f32.mrf.mxu1 }
 0x12c   : > { %v1143_v28 = vadd.f32 %v1142_v63, %v1129_v27 }
 0x132   : > { %v1155_v57 = vpop.f32.mrf.mxu2  ;;  %v1131_v30 = vpop.f32.mrf.mxu0 }
 0x133   : > { %v1156_v29 = vadd.f32 %v1155_v57, %v1143_v28  ;;  %v1168_v60 = vpop.f32.mrf.mxu3  ;;  %v1144_v32 = vpop.f32.mrf.mxu1 }
 0x135   : > { %v1169_v33 = vadd.f32 %v1168_v60, %v1156_v29 }
 0x137   : > { %v1173_v34 = vadd.f32 %v1169_v33, %v667_v31  ;;  %1179 = sbr.rel (%p1632_p13) target bundleno = 330 (0x14a), region = 86 }
 0x139   : > { %1175 = vst [vmem:[#allocation2 + $0x8] sm:$0xff] %v1173_v34 }
 0x13a   : > { %v1157_v35 = vpop.f32.mrf.mxu2 }
 0x13b   : > { %v1170_v36 = vpop.f32.mrf.mxu3 }
 0x13c   : > { %v1180_v37 = vld [vmem:[#allocation2] sm:$0xff]  ;;  %v1199_v48 = vld [vmem:[%s2060_s17 + $0x8] sm:$0xff] }
 0x13d   : > { %v1182_v38 = vld [vmem:[%s633_s18] sm:$0x3] }
 0x13e   : > { %v1190_v39 = vld [vmem:[%s638_s21] sm:$0x3]  ;;  %v1184_v40 = vperm.slane %v1182_v38, 0  ;;  %v1185_v43 = vperm.slane %v1182_v38, 1 }
 0x13f   : > { %v1192_v41 = vperm.slane %v1190_v39, 0  ;;  %v1193_v44 = vperm.slane %v1190_v39, 1  ;;  %v1198_v47 = vld [vmem:[%s2060_s17] sm:$0xff] }
 0x140   : > { %v1181_v42 = vld [vmem:[#allocation2 + $0x8] sm:$0xff]  ;;  %v1188_v45 = vmul.f32 %v1184_v40, %v1180_v37 }
 0x141   : > { %v1189_v46 = vmul.f32 %v1185_v43, %v1181_v42 }
 0x142   : > { %v1196_v49 = vadd.f32 %v1192_v41, %v1188_v45 }
 0x143   : > { %v1197_v50 = vadd.f32 %v1193_v44, %v1189_v46 }
 0x144   : > { %v1200_v51 = vadd.f32 %v1198_v47, %v1196_v49 }
 0x145   : > { %v1201_v52 = vadd.f32 %v1199_v48, %v1197_v50 }
 0x146   : > { %v1202_v53 = vmax.f32 %v1200_v51, 0.0 }
 0x147   : > { %v1203_v54 = vmax.f32 %v1201_v52, 0.0 }
 0x148   : > { %1204 = vst [vmem:[%s2065_s7] sm:$0xff] %v1202_v53 }
 0x149   : > { %1205 = vst [vmem:[%s2065_s7 + $0x8] sm:$0xff] %v1203_v54 }
 0x14a PF: > { %s15_s24 = sadd.s32 1, %s1811_s24   ;;  %s2258_s18 = smov %s1791_s19 }
 0x14b   : > { %p12_p0 = scmp.ge.s32.totalorder %s15_s24, 20   ;;  %s2259_s19 = smov %s1895_s6 }
 0x14c   : > { %s2260_s20 = smov %s1803_s22  ;;  %s2261_s21 = smov %s1807_s23 }
 0x14d   : > { %s2262_s22 = smov %s2265_s25  ;;  %s2263_s23 = smov %s2269_s26 }
 0x14e   :  { %14 = sbr.rel (!%p12_p0) target bundleno = 4 (0x4), region = 133 }

// kernel: resnet_forward.29
= control target key start
LH: loop header
LB: loop body
LE: loop exit
PB: predicated region body
PF: predicated region fallthrough
CT: control target
= control target key end

     0   :  { %9 = vsyncpa [#allocation4], 0  ;;  %s704_s0 = inlined_call_operand.vmem [shape: bf16[8,512], index: 0, kind: input, shape index: {}]   ;;  %s705_s1 = inlined_call_operand.hbm [shape: bf16[512,128], index: 1, kind: input, shape index: {}]   ;;  %s706_s2 = inlined_call_operand.hbm [shape: f32[1,128], index: 2, kind: input, shape index: {}]   ;;  %s707_s3 = inlined_call_operand.hbm [shape: f32[1,128], index: 3, kind: input, shape index: {}]   ;;  %s708_s4 = inlined_call_operand.vmem [shape: f32[8,128], index: 4, kind: output, shape index: {}]  }
   0x1   :  { %10 = vsyncpa [#allocation6], 0  ;;  %s31_s17 = sshll.u32 %s706_s2, 4  ;;  %s656_s18 = smov [#allocation5]   ;;  %s32_s17 = int_to_ptr.hbm [resolvable:$true] %s31_s17 }
   0x2   :  { %s33_s19 = sshll.u32 %s656_s18, 4  ;;  %s17_s22 = sshll.u32 %s705_s1, 4  ;;  %s34_s19 = int_to_ptr.vmem [resolvable:$true] %s33_s19  ;;  %s18_s22 = int_to_ptr.hbm [resolvable:$true] %s17_s22 }
   0x3   :  { %36 = dma.hbm_to_vmem [thread:$0]  %s32_s17, 16, %s34_s19, [#allocation6]  }
   0x4   :  { %s657_s23 = smov [#allocation3]   ;;  %s658_s25 = smov 64  }
   0x5   :  { %s19_s24 = sshll.u32 %s657_s23, 4  ;;  %s659_s26 = smov 4   ;;  %s20_s24 = int_to_ptr.vmem [resolvable:$true] %s19_s24 }
   0x6   :  { %25 = dma.hbm_to_vmem [thread:$0]  %s18_s22, 4096, %s20_s24, [#allocation4], %s658_s25, %s658_s25, %s659_s26  }
   0x7   :  { %s42_s2 = sshll.u32 %s707_s3, 4  ;;  %s660_s29 = smov [#allocation7]   ;;  %s43_s2 = int_to_ptr.hbm [resolvable:$true] %s42_s2 }
   0x8   :  { %s44_s30 = sshll.u32 %s660_s29, 4  ;;  %s45_s30 = int_to_ptr.vmem [resolvable:$true] %s44_s30 }
   0x9   :  { %47 = dma.hbm_to_vmem [thread:$0]  %s43_s2, 16, %s45_s30, [#allocation6]  }
   0xa   :  { %652 = dma.done.wait [#allocation4], 4096  }
   0xb   :  { %653 = vsyncadd [#allocation4], 4294963200 }
   0xc   :  { %654 = dma.done.wait [#allocation6], 32  }
   0xd   :  { %655 = vsyncadd [#allocation6], 4294967264  ;;  %v548_v0 = vld [vmem:[#allocation3 + $0x38] sm:$0xff]  ;;  %v547_v4 = vld [vmem:[#allocation3 + $0x30] sm:$0xff] }
   0xe   :  { %v556_v1 = vld [vmem:[#allocation3 + $0x78] sm:$0xff]  ;;  %338 = vmatpush.bf16.msra.mxu0 %v548_v0  ;;  %v555_v5 = vld [vmem:[#allocation3 + $0x70] sm:$0xff]  ;;  %v546_v8 = vld [vmem:[#allocation3 + $0x28] sm:$0xff] }
   0xf   :  { %v564_v2 = vld [vmem:[#allocation3 + $0xb8] sm:$0xff]  ;;  %351 = vmatpush.bf16.msra.mxu1 %v556_v1  ;;  %v563_v6 = vld [vmem:[#allocation3 + $0xb0] sm:$0xff]  ;;  %v554_v9 = vld [vmem:[#allocation3 + $0x68] sm:$0xff] }
  0x10   :  { %v572_v3 = vld [vmem:[#allocation3 + $0xf8] sm:$0xff]  ;;  %364 = vmatpush.bf16.msra.mxu2 %v564_v2  ;;  %v571_v7 = vld [vmem:[#allocation3 + $0xf0] sm:$0xff]  ;;  %v562_v10 = vld [vmem:[#allocation3 + $0xa8] sm:$0xff] }
  0x11   :  { %377 = vmatpush.bf16.msra.mxu3 %v572_v3  ;;  %v570_v11 = vld [vmem:[#allocation3 + $0xe8] sm:$0xff]  ;;  %v545_v12 = vld [vmem:[#allocation3 + $0x20] sm:$0xff]  ;;  %v544_v16 = vld [vmem:[#allocation3 + $0x18] sm:$0xff] }
  0x12   :  { %339 = vmatpush.bf16.msra.mxu0 %v547_v4  ;;  %v553_v13 = vld [vmem:[#allocation3 + $0x60] sm:$0xff]  ;;  %v552_v17 = vld [vmem:[#allocation3 + $0x58] sm:$0xff]  ;;  %v543_v20 = vld [vmem:[#allocation3 + $0x10] sm:$0xff] }
  0x13   :  { %352 = vmatpush.bf16.msra.mxu1 %v555_v5  ;;  %v561_v14 = vld [vmem:[#allocation3 + $0xa0] sm:$0xff]  ;;  %v560_v18 = vld [vmem:[#allocation3 + $0x98] sm:$0xff]  ;;  %v551_v21 = vld [vmem:[#allocation3 + $0x50] sm:$0xff] }
  0x14   :  { %365 = vmatpush.bf16.msra.mxu2 %v563_v6  ;;  %v569_v15 = vld [vmem:[#allocation3 + $0xe0] sm:$0xff]  ;;  %v568_v19 = vld [vmem:[#allocation3 + $0xd8] sm:$0xff]  ;;  %v559_v22 = vld [vmem:[#allocation3 + $0x90] sm:$0xff] }
  0x15   :  { %378 = vmatpush.bf16.msra.mxu3 %v571_v7  ;;  %v567_v23 = vld [vmem:[#allocation3 + $0xd0] sm:$0xff]  ;;  %v542_v24 = vld [vmem:[#allocation3 + $0x8] sm:$0xff]  ;;  %v66_v26 = vld [vmem:[%s704_s0] sm:$0xff] }
  0x16   :  { %340 = vmatpush.bf16.msra.mxu0 %v546_v8  ;;  %v550_v25 = vld [vmem:[#allocation3 + $0x48] sm:$0xff]  ;;  %v134_v30 = vunpack.c.l.b16 %v66_v26  ;;  %v135_v31 = vunpack.c.h.b16 %v66_v26  ;;  %v541_v32 = vld [vmem:[#allocation3] sm:$0xff] }
  0x17   :  { %353 = vmatpush.bf16.msra.mxu1 %v554_v9  ;;  %v558_v27 = vld [vmem:[#allocation3 + $0x88] sm:$0xff]  ;;  %v549_v33 = vld [vmem:[#allocation3 + $0x40] sm:$0xff] }
  0x18   :  { %366 = vmatpush.bf16.msra.mxu2 %v562_v10  ;;  %v566_v28 = vld [vmem:[#allocation3 + $0xc8] sm:$0xff]  ;;  %v557_v36 = vld [vmem:[#allocation3 + $0x80] sm:$0xff]  ;;  %v138_v38 = vpack.c.b16 %v134_v30, %v134_v30  ;;  %v139_v39 = vpack.c.b16 %v135_v31, %v135_v31 }
  0x19   :  { %379 = vmatpush.bf16.msra.mxu3 %v570_v11  ;;  %v67_v29 = vld [vmem:[%s704_s0 + $0x8] sm:$0xff]  ;;  %v565_v37 = vld [vmem:[#allocation3 + $0xc0] sm:$0xff] }
  0x1a   :  { %341 = vmatpush.bf16.msra.mxu0 %v545_v12  ;;  %v136_v34 = vunpack.c.l.b16 %v67_v29  ;;  %v137_v35 = vunpack.c.h.b16 %v67_v29  ;;  %v578_v48 = vld [vmem:[#allocation5] ss:$0 sm:$0xff]  ;;  %v579_v52 = vld [vmem:[#allocation7] ss:$0 sm:$0xff] }
  0x1b   :  { %354 = vmatpush.bf16.msra.mxu1 %v553_v13 }
  0x1c   :  { %367 = vmatpush.bf16.msra.mxu2 %v561_v14  ;;  %v140_v40 = vpack.c.b16 %v136_v34, %v136_v34  ;;  %v141_v41 = vpack.c.b16 %v137_v35, %v137_v35 }
  0x1d   :  { %380 = vmatpush.bf16.msra.mxu3 %v569_v15 }
  0x1e   :  { %342 = vmatpush.bf16.msra.mxu0 %v544_v16 }
  0x1f   :  { %355 = vmatpush.bf16.msra.mxu1 %v552_v17 }
  0x20   :  { %368 = vmatpush.bf16.msra.mxu2 %v560_v18 }
  0x21   :  { %381 = vmatpush.bf16.msra.mxu3 %v568_v19 }
  0x22   :  { %343 = vmatpush.bf16.msra.mxu0 %v543_v20 }
  0x23   :  { %356 = vmatpush.bf16.msra.mxu1 %v551_v21 }
  0x24   :  { %369 = vmatpush.bf16.msra.mxu2 %v559_v22 }
  0x25   :  { %382 = vmatpush.bf16.msra.mxu3 %v567_v23 }
  0x26   :  { %344 = vmatpush.bf16.msra.mxu0 %v542_v24 }
  0x27   :  { %357 = vmatpush.bf16.msra.mxu1 %v550_v25 }
  0x28   :  { %370 = vmatpush.bf16.msra.mxu2 %v558_v27 }
  0x29   :  { %383 = vmatpush.bf16.msra.mxu3 %v566_v28 }
  0x2a   :  { %345 = vmatpush.bf16.msra.mxu0 %v541_v32 }
  0x2b   :  { %358 = vmatpush.bf16.msra.mxu1 %v549_v33 }
  0x2c   :  { %371 = vmatpush.bf16.msra.mxu2 %v557_v36 }
  0x2d   :  { %384 = vmatpush.bf16.msra.mxu3 %v565_v37  ;;  %346 = vmatmul.bf16.vlgmr.msra.gmra.mxu0 %v138_v38 }
  0x2e   :  { %359 = vmatmul.bf16.vlgmr.msra.gmra.mxu1 %v139_v39 }
  0x2f   :  { %372 = vmatmul.bf16.vlgmr.msra.gmra.mxu2 %v140_v40 }
  0x30   :  { %385 = vmatmul.bf16.vlgmr.msra.gmra.mxu3 %v141_v41 }
  0xaa   :  { %v347_v42 = vpop.f32.mrf.mxu0 }
  0xab   :  { %v360_v43 = vpop.f32.mrf.mxu1 }
  0xac   :  { %v361_v44 = vadd.f32 %v360_v43, %v347_v42 }
  0xb2   :  { %v373_v45 = vpop.f32.mrf.mxu2  ;;  %v349_v49 = vpop.f32.mrf.mxu0 }
  0xb3   :  { %v386_v46 = vpop.f32.mrf.mxu3  ;;  %v374_v47 = vadd.f32 %v373_v45, %v361_v44  ;;  %v362_v50 = vpop.f32.mrf.mxu1 }
  0xb5   :  { %v387_v51 = vadd.f32 %v386_v46, %v374_v47 }
  0xb7   :  { %v400_v53 = vmul.f32 %v578_v48, %v387_v51 }
  0xb9   :  { %v405_v54 = vadd.f32 %v579_v52, %v400_v53 }
  0xba   :  { %v375_v55 = vpop.f32.mrf.mxu2 }
  0xbb   :  { %v388_v56 = vpop.f32.mrf.mxu3  ;;  %406 = vst [vmem:[%s708_s4] sm:$0xff] %v405_v54 }
  0xbc   :  { %411 = vsyncpa [#allocation4], 1 }
  0xbd   :  { %412 = vsyncpa [#allocation6], 1 }

</bundles_post_ra>
